<compile_context>
chip_gen: v7x
topology: tpu7x:2x2x1
jax: 0.10.0
libtpu: 0.0.40
codegen_flags: <defaults>
</compile_context>

<pallas_src>
import functools

import jax
import jax.numpy as jnp
from jax.experimental import pallas as pl
from jax.experimental.pallas import tpu as pltpu


def _round_up(x, m):
    return (x + m - 1) // m * m


# ----------------------------------------------------------------------------
# Pallas kernels
# ----------------------------------------------------------------------------
def _matmul_bias_act_kernel(x_ref, w_ref, b_ref, o_ref, *, activation):
    acc = jnp.dot(x_ref[...], w_ref[...], preferred_element_type=jnp.float32)
    acc = acc + b_ref[...]                      # (1, N) broadcast over rows, f32
    if activation == "relu":
        acc = jnp.maximum(acc, 0.0)
    elif activation == "sigmoid":
        acc = 1.0 / (1.0 + jnp.exp(-acc))       # exact -> output stays in [0, 1]
    o_ref[...] = acc.astype(o_ref.dtype)


def matmul_bias_act(x, w, b, activation="none"):
    """y = act(x @ w + b); bf16 MXU operands, f32 accumulate + epilogue."""
    M, K = x.shape
    K2, N = w.shape
    assert K == K2
    x = x.astype(jnp.bfloat16)
    w = w.astype(jnp.bfloat16)
    b2 = b.reshape(1, N).astype(jnp.float32)

    TM = 256
    if M > 2 * TM:                              # M-tiled, pipelined path
        tm = TM
        Mp = _round_up(M, TM)
        if Mp != M:
            x = jnp.pad(x, ((0, Mp - M), (0, 0)))
    else:                                       # tiny M: single full block
        tm, Mp = M, M

    # size VMEM from the actual (double-buffered) tiles, plus headroom
    vmem_bytes = (2 * (tm * K + K * N) * 2      # bf16 x-tile + resident weight
                  + 2 * (tm * N + N) * 4        # f32 out tile + bias
                  + (8 << 20))
    kernel = functools.partial(_matmul_bias_act_kernel, activation=activation)
    out = pl.pallas_call(
        kernel,
        out_shape=jax.ShapeDtypeStruct((Mp, N), jnp.float32),
        grid=(Mp // tm,),
        in_specs=[
            pl.BlockSpec((tm, K), lambda i: (i, 0)),
            pl.BlockSpec((K, N), lambda i: (0, 0)),
            pl.BlockSpec((1, N), lambda i: (0, 0)),
        ],
        out_specs=pl.BlockSpec((tm, N), lambda i: (i, 0)),
        compiler_params=pltpu.CompilerParams(
            dimension_semantics=("parallel",),
            vmem_limit_bytes=int(min(vmem_bytes, 64 << 20)),
        ),
    )(x, w, b2)
    return out[:M] if Mp != M else out


def _bottleneck_kernel(h_ref, w1_ref, b1_ref, w2_ref, b2_ref, eps_ref,
                       w3_ref, b3_ref, mu_ref, lv_ref, xr_ref):
    # fused: mu = h@W1+b1 ; logvar = h@W2+b2 ; z = mu + exp(0.5*logvar)*eps ;
    #        xr = z@W3+b3   (all in one kernel, mu/logvar/z never hit HBM twice)
    h = h_ref[...]
    mu = jnp.dot(h, w1_ref[...], preferred_element_type=jnp.float32) + b1_ref[...]
    lv = jnp.dot(h, w2_ref[...], preferred_element_type=jnp.float32) + b2_ref[...]
    z = mu + jnp.exp(0.5 * lv) * eps_ref[...]
    xr = jnp.dot(z.astype(jnp.bfloat16), w3_ref[...],
                 preferred_element_type=jnp.float32) + b3_ref[...]
    mu_ref[...] = mu
    lv_ref[...] = lv
    xr_ref[...] = xr


def bottleneck(h, w1, b1, w2, b2, eps, w3, b3):
    """Fused fc1/fc2/reparameterize/fc3. Weights in PyTorch (out,in) layout."""
    B, K = h.shape
    Nz = w1.shape[0]        # 32
    Nd = w3.shape[0]        # 1024

    def full(shape):
        return pl.BlockSpec(shape, lambda i, _s=shape: tuple(0 for _ in _s))

    mu, lv, xr = pl.pallas_call(
        _bottleneck_kernel,
        out_shape=(jax.ShapeDtypeStruct((B, Nz), jnp.float32),
                   jax.ShapeDtypeStruct((B, Nz), jnp.float32),
                   jax.ShapeDtypeStruct((B, Nd), jnp.float32)),
        grid=(1,),
        in_specs=[full((B, K)),
                  full((K, Nz)), full((1, Nz)),
                  full((K, Nz)), full((1, Nz)),
                  full((B, Nz)),
                  full((Nz, Nd)), full((1, Nd))],
        out_specs=(full((B, Nz)), full((B, Nz)), full((B, Nd))),
        compiler_params=pltpu.CompilerParams(dimension_semantics=("arbitrary",)),
    )(h.astype(jnp.bfloat16),
      w1.T.astype(jnp.bfloat16), b1.reshape(1, Nz).astype(jnp.float32),
      w2.T.astype(jnp.bfloat16), b2.reshape(1, Nz).astype(jnp.float32),
      eps.astype(jnp.float32),
      w3.T.astype(jnp.bfloat16), b3.reshape(1, Nd).astype(jnp.float32))
    return mu, lv, xr


# ----------------------------------------------------------------------------
# Conv / ConvTranspose lowering (NHWC, plain-JAX glue around the Pallas matmul)
# ----------------------------------------------------------------------------
def conv2d_nhwc(x, w, bias, stride, pad, activation):
    """PyTorch-semantics Conv2d. x:(B,H,W,Cin) NHWC, w:(Cout,Cin,k,k)."""
    B, H, W, Cin = x.shape
    Cout, _, k, _ = w.shape
    Ho = (H + 2 * pad - k) // stride + 1
    Wo = (W + 2 * pad - k) // stride + 1
    x = x.astype(jnp.bfloat16)                          # cast before duplication
    xp = jnp.pad(x, ((0, 0), (pad, pad), (pad, pad), (0, 0)))
    cols = [xp[:, ki:ki + stride * Ho:stride, kj:kj + stride * Wo:stride, :]
            for ki in range(k) for kj in range(k)]      # each (B,Ho,Wo,Cin)
    patches = jnp.stack(cols, axis=3).reshape(B * Ho * Wo, k * k * Cin)
    wmat = jnp.transpose(w, (2, 3, 1, 0)).reshape(k * k * Cin, Cout)
    y = matmul_bias_act(patches, wmat, bias, activation)
    return y.reshape(B, Ho, Wo, Cout)                   # stays NHWC


def deconv1_1x1(z, w, bias, activation):
    """ConvTranspose2d(k=4,s=2,p=1) on a 1x1 spatial input -> 2x2 output.
    Only kernel taps [1:3,1:3] touch the single input pixel, so the whole layer
    is one (B, Cin) x (Cin, 4*Cout) matmul."""
    B = z.shape[0]
    Cin, Cout = w.shape[0], w.shape[1]
    wmat = jnp.transpose(w[:, :, 1:3, 1:3], (0, 2, 3, 1)).reshape(Cin, 4 * Cout)
    bmat = jnp.tile(bias, 4)                            # columns are (oh,ow,cout)
    y = matmul_bias_act(z, wmat, bmat, activation)      # (B, 4*Cout)
    return y.reshape(B, 2, 2, Cout)


def conv_transpose2d_s2(x, w, bias, pad, activation):
    """PyTorch ConvTranspose2d(k=4, stride=2, padding=pad) in NHWC via phase
    decomposition (no zero-dilated multiplies):
      y[2q+rh-p, 2s+rw-p, co] = sum_{a,b,ci} x[q-1+a, s-1+b, ci] *
                                             w[ci, co, rh+2(1-a), rw+2(1-b)]
    -> one matmul over all (H+1)x(W+1) 2x2 windows, pixel-shuffle, crop."""
    B, H, W, Cin = x.shape
    Cout = w.shape[1]
    Hout, Wout = 2 * H - 2 * pad + 2, 2 * W - 2 * pad + 2

    xp = jnp.pad(x.astype(jnp.bfloat16), ((0, 0), (1, 1), (1, 1), (0, 0)))
    cols = [xp[:, a:a + H + 1, c:c + W + 1, :] for a in (0, 1) for c in (0, 1)]
    patches = jnp.stack(cols, axis=3).reshape(B * (H + 1) * (W + 1), 4 * Cin)

    # W[(a,b,cin),(rh,rw,cout)] = w[cin,cout, rh+2*(1-a), rw+2*(1-b)]
    w6 = w.reshape(Cin, Cout, 2, 2, 2, 2)               # cin,cout,ah,rh,aw,rw
    w6 = jnp.flip(w6, axis=(2, 4))                      # a = 1-ah, b = 1-aw
    wmat = jnp.transpose(w6, (2, 4, 0, 3, 5, 1)).reshape(4 * Cin, 4 * Cout)
    bmat = jnp.tile(bias, 4)

    y = matmul_bias_act(patches, wmat, bmat, activation)  # (B*(H+1)*(W+1), 4*Cout)
    y = y.reshape(B, H + 1, W + 1, 2, 2, Cout)
    y = jnp.transpose(y, (0, 1, 3, 2, 4, 5)).reshape(B, 2 * (H + 1), 2 * (W + 1), Cout)
    return y[:, pad:pad + Hout, pad:pad + Wout, :]


# ----------------------------------------------------------------------------
# Parameters (deterministic synthetic init, PyTorch-default-like uniform)
# ----------------------------------------------------------------------------
def _uniform(key, shape, bound):
    return jax.random.uniform(key, shape, jnp.float32, -bound, bound)


def init_params(key):
    ks = iter(jax.random.split(key, 20))
    p = {}

    def conv(name, cout, cin, k):
        bound = 1.0 / float(cin * k * k) ** 0.5
        p[name + "_w"] = _uniform(next(ks), (cout, cin, k, k), bound)
        p[name + "_b"] = _uniform(next(ks), (cout,), bound)

    def deconv(name, cin, cout, k):
        bound = 1.0 / float(cout * k * k) ** 0.5
        p[name + "_w"] = _uniform(next(ks), (cin, cout, k, k), bound)
        p[name + "_b"] = _uniform(next(ks), (cout,), bound)

    def linear(name, out_f, in_f):
        bound = 1.0 / float(in_f) ** 0.5
        p[name + "_w"] = _uniform(next(ks), (out_f, in_f), bound)
        p[name + "_b"] = _uniform(next(ks), (out_f,), bound)

    conv("c1", 32, 1, 4)
    conv("c2", 64, 32, 4)
    conv("c3", 128, 64, 4)
    linear("fc1", 32, 1152)
    linear("fc2", 32, 1152)
    linear("fc3", 1024, 32)
    deconv("d1", 1024, 128, 4)
    deconv("d2", 128, 64, 4)
    deconv("d3", 64, 32, 4)
    deconv("d4", 32, 1, 4)
    return p


# ----------------------------------------------------------------------------
# VAE forward (Net.forward)
# ----------------------------------------------------------------------------
def vae_forward(params, x, eps):
    B = x.shape[0]
    x = jnp.transpose(x, (0, 2, 3, 1))                  # NCHW -> NHWC, once

    # encoder: 1->32->64->128, k=4 s=2 p=1, ReLU; 28 -> 14 -> 7 -> 3
    h = conv2d_nhwc(x, params["c1_w"], params["c1_b"], 2, 1, "relu")
    h = conv2d_nhwc(h, params["c2_w"], params["c2_b"], 2, 1, "relu")
    h = conv2d_nhwc(h, params["c3_w"], params["c3_b"], 2, 1, "relu")
    h = jnp.transpose(h, (0, 3, 1, 2)).reshape(B, -1)   # PyTorch (C,H,W) flatten -> (B,1152)

    # fused bottleneck: fc1 + fc2 + reparameterize + fc3 in one kernel
    mu, logvar, xr = bottleneck(h, params["fc1_w"], params["fc1_b"],
                                params["fc2_w"], params["fc2_b"], eps,
                                params["fc3_w"], params["fc3_b"])

    # decoder (UnFlatten to (B,1,1,1024) is implicit in the 1x1 deconv)
    xr = deconv1_1x1(xr, params["d1_w"], params["d1_b"], "relu")                 # 1 -> 2
    xr = conv_transpose2d_s2(xr, params["d2_w"], params["d2_b"], 0, "relu")      # 2 -> 6
    xr = conv_transpose2d_s2(xr, params["d3_w"], params["d3_b"], 0, "relu")      # 6 -> 14
    xr = conv_transpose2d_s2(xr, params["d4_w"], params["d4_b"], 1, "sigmoid")   # 14 -> 28
    xr = jnp.transpose(xr, (0, 3, 1, 2))                # NHWC -> NCHW
    return xr, mu, logvar


if __name__ == "__main__":
    key = jax.random.PRNGKey(0)
    k_params, k_x, k_eps = jax.random.split(key, 3)

    params = init_params(k_params)
    # module implies MNIST-like input: fc1 in_features=1152=128*3*3 -> 28x28, 1 channel
    x = jax.random.normal(k_x, (2, 1, 28, 28), jnp.float32)
    # deterministic stand-in for torch.randn_like(std) in reparameterize
    eps = jax.random.normal(k_eps, (2, 32), jnp.float32)

    x_r, mu, logvar = jax.jit(vae_forward)(params, x, eps)
    jax.block_until_ready((x_r, mu, logvar))

    assert x_r.shape == (2, 1, 28, 28) and x_r.dtype == jnp.float32
    assert mu.shape == (2, 32) and logvar.shape == (2, 32)
    assert bool(jnp.all(jnp.isfinite(x_r)))
    assert bool(jnp.all((x_r >= 0.0) & (x_r <= 1.0)))   # sigmoid output range
    print("KERNEL_OK")
</pallas_src>

<mosaic_0001>
module attributes {stable_mosaic.version = 11 : i64} {
  func.func @_matmul_bias_act_kernel(%arg0: i32, %arg1: memref<392x16xbf16, #tpu.memory_space<vmem>>, %arg2: memref<16x32xbf16, #tpu.memory_space<vmem>>, %arg3: memref<1x32xf32, #tpu.memory_space<vmem>>, %arg4: memref<392x32xf32, #tpu.memory_space<vmem>>) attributes {dimension_semantics = [#tpu.dimension_semantics<parallel>], iteration_bounds = array<i64: 1>, scalar_prefetch = 0 : i64, scratch_operands = 0 : i64, tpu.core_type = #tpu.core_type<tc>, window_params = [{transform_indices = @transform_0, window_bounds = array<i64: 392, 16>}, {pipeline_mode = #tpu.pipeline_mode<synchronous>, transform_indices = @transform_1, window_bounds = array<i64: 16, 32>}, {pipeline_mode = #tpu.pipeline_mode<synchronous>, transform_indices = @transform_2, window_bounds = array<i64: 1, 32>}, {transform_indices = @transform_3, window_bounds = array<i64: 392, 32>}]} {
    %c0 = arith.constant 0 : index
    %c0_0 = arith.constant 0 : index
    %0 = vector.load %arg1[%c0, %c0_0] : memref<392x16xbf16, #tpu.memory_space<vmem>>, vector<392x16xbf16>
    %c0_1 = arith.constant 0 : index
    %c0_2 = arith.constant 0 : index
    %1 = vector.load %arg2[%c0_1, %c0_2] : memref<16x32xbf16, #tpu.memory_space<vmem>>, vector<16x32xbf16>
    %cst = arith.constant dense<0.000000e+00> : vector<392x32xf32>
    %2 = tpu.matmul %0, %1, %cst {dimension_numbers = #tpu.dot_dimension_numbers<[1], [0], [0], [1], [0, 0, 1, 1], [], []>} : vector<392x16xbf16>, vector<16x32xbf16>, vector<392x32xf32> -> vector<392x32xf32>
    %c0_3 = arith.constant 0 : index
    %c0_4 = arith.constant 0 : index
    %3 = vector.load %arg3[%c0_3, %c0_4] : memref<1x32xf32, #tpu.memory_space<vmem>>, vector<1x32xf32>
    %4 = vector.broadcast %3 : vector<1x32xf32> to vector<392x32xf32>
    %5 = arith.addf %2, %4 : vector<392x32xf32>
    %cst_5 = arith.constant 0.000000e+00 : f32
    %6 = vector.broadcast %cst_5 : f32 to vector<392x32xf32>
    %7 = arith.maximumf %5, %6 : vector<392x32xf32>
    %c0_6 = arith.constant 0 : index
    %c0_7 = arith.constant 0 : index
    %8 = vector.load %arg4[%c0_6, %c0_7] : memref<392x32xf32, #tpu.memory_space<vmem>>, vector<392x32xf32>
    tpu.vector_store %arg4[%c0_6, %c0_7], %7 {strides = array<i32>} : memref<392x32xf32, #tpu.memory_space<vmem>>, vector<392x32xf32>,
    return
  }
  func.func @transform_0(%arg0: i32) -> (i32, i32) {
    %c0_i32 = arith.constant 0 : i32
    %c0_i32_0 = arith.constant 0 : i32
    return %arg0, %c0_i32 : i32, i32
  }
  func.func @transform_1(%arg0: i32) -> (i32, i32) {
    %c0_i32 = arith.constant 0 : i32
    %c0_i32_0 = arith.constant 0 : i32
    %c0_i32_1 = arith.constant 0 : i32
    return %c0_i32, %c0_i32_0 : i32, i32
  }
  func.func @transform_2(%arg0: i32) -> (i32, i32) {
    %c0_i32 = arith.constant 0 : i32
    %c0_i32_0 = arith.constant 0 : i32
    %c0_i32_1 = arith.constant 0 : i32
    return %c0_i32, %c0_i32_0 : i32, i32
  }
  func.func @transform_3(%arg0: i32) -> (i32, i32) {
    %c0_i32 = arith.constant 0 : i32
    %c0_i32_0 = arith.constant 0 : i32
    return %arg0, %c0_i32 : i32, i32
  }
}

module attributes {stable_mosaic.version = 11 : i64} {
  func.func @_matmul_bias_act_kernel(%arg0: i32, %arg1: memref<98x512xbf16, #tpu.memory_space<vmem>>, %arg2: memref<512x64xbf16, #tpu.memory_space<vmem>>, %arg3: memref<1x64xf32, #tpu.memory_space<vmem>>, %arg4: memref<98x64xf32, #tpu.memory_space<vmem>>) attributes {dimension_semantics = [#tpu.dimension_semantics<parallel>], iteration_bounds = array<i64: 1>, scalar_prefetch = 0 : i64, scratch_operands = 0 : i64, tpu.core_type = #tpu.core_type<tc>, window_params = [{transform_indices = @transform_0, window_bounds = array<i64: 98, 512>}, {pipeline_mode = #tpu.pipeline_mode<synchronous>, transform_indices = @transform_1, window_bounds = array<i64: 512, 64>}, {pipeline_mode = #tpu.pipeline_mode<synchronous>, transform_indices = @transform_2, window_bounds = array<i64: 1, 64>}, {transform_indices = @transform_3, window_bounds = array<i64: 98, 64>}]} {
    %c0 = arith.constant 0 : index
    %c0_0 = arith.constant 0 : index
    %0 = vector.load %arg1[%c0, %c0_0] : memref<98x512xbf16, #tpu.memory_space<vmem>>, vector<98x512xbf16>
    %c0_1 = arith.constant 0 : index
    %c0_2 = arith.constant 0 : index
    %1 = vector.load %arg2[%c0_1, %c0_2] : memref<512x64xbf16, #tpu.memory_space<vmem>>, vector<512x64xbf16>
    %cst = arith.constant dense<0.000000e+00> : vector<98x64xf32>
    %2 = tpu.matmul %0, %1, %cst {dimension_numbers = #tpu.dot_dimension_numbers<[1], [0], [0], [1], [0, 0, 1, 1], [], []>} : vector<98x512xbf16>, vector<512x64xbf16>, vector<98x64xf32> -> vector<98x64xf32>
    %c0_3 = arith.constant 0 : index
    %c0_4 = arith.constant 0 : index
    %3 = vector.load %arg3[%c0_3, %c0_4] : memref<1x64xf32, #tpu.memory_space<vmem>>, vector<1x64xf32>
    %4 = vector.broadcast %3 : vector<1x64xf32> to vector<98x64xf32>
    %5 = arith.addf %2, %4 : vector<98x64xf32>
    %cst_5 = arith.constant 0.000000e+00 : f32
    %6 = vector.broadcast %cst_5 : f32 to vector<98x64xf32>
    %7 = arith.maximumf %5, %6 : vector<98x64xf32>
    %c0_6 = arith.constant 0 : index
    %c0_7 = arith.constant 0 : index
    %8 = vector.load %arg4[%c0_6, %c0_7] : memref<98x64xf32, #tpu.memory_space<vmem>>, vector<98x64xf32>
    tpu.vector_store %arg4[%c0_6, %c0_7], %7 {strides = array<i32>} : memref<98x64xf32, #tpu.memory_space<vmem>>, vector<98x64xf32>,
    return
  }
  func.func @transform_0(%arg0: i32) -> (i32, i32) {
    %c0_i32 = arith.constant 0 : i32
    %c0_i32_0 = arith.constant 0 : i32
    return %arg0, %c0_i32 : i32, i32
  }
  func.func @transform_1(%arg0: i32) -> (i32, i32) {
    %c0_i32 = arith.constant 0 : i32
    %c0_i32_0 = arith.constant 0 : i32
    %c0_i32_1 = arith.constant 0 : i32
    return %c0_i32, %c0_i32_0 : i32, i32
  }
  func.func @transform_2(%arg0: i32) -> (i32, i32) {
    %c0_i32 = arith.constant 0 : i32
    %c0_i32_0 = arith.constant 0 : i32
    %c0_i32_1 = arith.constant 0 : i32
    return %c0_i32, %c0_i32_0 : i32, i32
  }
  func.func @transform_3(%arg0: i32) -> (i32, i32) {
    %c0_i32 = arith.constant 0 : i32
    %c0_i32_0 = arith.constant 0 : i32
    return %arg0, %c0_i32 : i32, i32
  }
}

module attributes {stable_mosaic.version = 11 : i64} {
  func.func @_matmul_bias_act_kernel(%arg0: i32, %arg1: memref<18x1024xbf16, #tpu.memory_space<vmem>>, %arg2: memref<1024x128xbf16, #tpu.memory_space<vmem>>, %arg3: memref<1x128xf32, #tpu.memory_space<vmem>>, %arg4: memref<18x128xf32, #tpu.memory_space<vmem>>) attributes {dimension_semantics = [#tpu.dimension_semantics<parallel>], iteration_bounds = array<i64: 1>, scalar_prefetch = 0 : i64, scratch_operands = 0 : i64, tpu.core_type = #tpu.core_type<tc>, window_params = [{transform_indices = @transform_0, window_bounds = array<i64: 18, 1024>}, {pipeline_mode = #tpu.pipeline_mode<synchronous>, transform_indices = @transform_1, window_bounds = array<i64: 1024, 128>}, {pipeline_mode = #tpu.pipeline_mode<synchronous>, transform_indices = @transform_2, window_bounds = array<i64: 1, 128>}, {transform_indices = @transform_3, window_bounds = array<i64: 18, 128>}]} {
    %c0 = arith.constant 0 : index
    %c0_0 = arith.constant 0 : index
    %0 = vector.load %arg1[%c0, %c0_0] : memref<18x1024xbf16, #tpu.memory_space<vmem>>, vector<18x1024xbf16>
    %c0_1 = arith.constant 0 : index
    %c0_2 = arith.constant 0 : index
    %1 = vector.load %arg2[%c0_1, %c0_2] : memref<1024x128xbf16, #tpu.memory_space<vmem>>, vector<1024x128xbf16>
    %cst = arith.constant dense<0.000000e+00> : vector<18x128xf32>
    %2 = tpu.matmul %0, %1, %cst {dimension_numbers = #tpu.dot_dimension_numbers<[1], [0], [0], [1], [0, 0, 1, 1], [], []>} : vector<18x1024xbf16>, vector<1024x128xbf16>, vector<18x128xf32> -> vector<18x128xf32>
    %c0_3 = arith.constant 0 : index
    %c0_4 = arith.constant 0 : index
    %3 = vector.load %arg3[%c0_3, %c0_4] : memref<1x128xf32, #tpu.memory_space<vmem>>, vector<1x128xf32>
    %4 = vector.broadcast %3 : vector<1x128xf32> to vector<18x128xf32>
    %5 = arith.addf %2, %4 : vector<18x128xf32>
    %cst_5 = arith.constant 0.000000e+00 : f32
    %6 = vector.broadcast %cst_5 : f32 to vector<18x128xf32>
    %7 = arith.maximumf %5, %6 : vector<18x128xf32>
    %c0_6 = arith.constant 0 : index
    %c0_7 = arith.constant 0 : index
    %8 = vector.load %arg4[%c0_6, %c0_7] : memref<18x128xf32, #tpu.memory_space<vmem>>, vector<18x128xf32>
    tpu.vector_store %arg4[%c0_6, %c0_7], %7 {strides = array<i32>} : memref<18x128xf32, #tpu.memory_space<vmem>>, vector<18x128xf32>,
    return
  }
  func.func @transform_0(%arg0: i32) -> (i32, i32) {
    %c0_i32 = arith.constant 0 : i32
    %c0_i32_0 = arith.constant 0 : i32
    return %arg0, %c0_i32 : i32, i32
  }
  func.func @transform_1(%arg0: i32) -> (i32, i32) {
    %c0_i32 = arith.constant 0 : i32
    %c0_i32_0 = arith.constant 0 : i32
    %c0_i32_1 = arith.constant 0 : i32
    return %c0_i32, %c0_i32_0 : i32, i32
  }
  func.func @transform_2(%arg0: i32) -> (i32, i32) {
    %c0_i32 = arith.constant 0 : i32
    %c0_i32_0 = arith.constant 0 : i32
    %c0_i32_1 = arith.constant 0 : i32
    return %c0_i32, %c0_i32_0 : i32, i32
  }
  func.func @transform_3(%arg0: i32) -> (i32, i32) {
    %c0_i32 = arith.constant 0 : i32
    %c0_i32_0 = arith.constant 0 : i32
    return %arg0, %c0_i32 : i32, i32
  }
}

module attributes {stable_mosaic.version = 11 : i64} {
  func.func @_bottleneck_kernel(%arg0: i32, %arg1: memref<2x1152xbf16, #tpu.memory_space<vmem>>, %arg2: memref<1152x32xbf16, #tpu.memory_space<vmem>>, %arg3: memref<1x32xf32, #tpu.memory_space<vmem>>, %arg4: memref<1152x32xbf16, #tpu.memory_space<vmem>>, %arg5: memref<1x32xf32, #tpu.memory_space<vmem>>, %arg6: memref<2x32xf32, #tpu.memory_space<vmem>>, %arg7: memref<32x1024xbf16, #tpu.memory_space<vmem>>, %arg8: memref<1x1024xf32, #tpu.memory_space<vmem>>, %arg9: memref<2x32xf32, #tpu.memory_space<vmem>>, %arg10: memref<2x32xf32, #tpu.memory_space<vmem>>, %arg11: memref<2x1024xf32, #tpu.memory_space<vmem>>) attributes {dimension_semantics = [#tpu.dimension_semantics<arbitrary>], iteration_bounds = array<i64: 1>, scalar_prefetch = 0 : i64, scratch_operands = 0 : i64, tpu.core_type = #tpu.core_type<tc>, window_params = [{pipeline_mode = #tpu.pipeline_mode<synchronous>, transform_indices = @transform_0, window_bounds = array<i64: 2, 1152>}, {pipeline_mode = #tpu.pipeline_mode<synchronous>, transform_indices = @transform_1, window_bounds = array<i64: 1152, 32>}, {pipeline_mode = #tpu.pipeline_mode<synchronous>, transform_indices = @transform_2, window_bounds = array<i64: 1, 32>}, {pipeline_mode = #tpu.pipeline_mode<synchronous>, transform_indices = @transform_3, window_bounds = array<i64: 1152, 32>}, {pipeline_mode = #tpu.pipeline_mode<synchronous>, transform_indices = @transform_4, window_bounds = array<i64: 1, 32>}, {pipeline_mode = #tpu.pipeline_mode<synchronous>, transform_indices = @transform_5, window_bounds = array<i64: 2, 32>}, {pipeline_mode = #tpu.pipeline_mode<synchronous>, transform_indices = @transform_6, window_bounds = array<i64: 32, 1024>}, {pipeline_mode = #tpu.pipeline_mode<synchronous>, transform_indices = @transform_7, window_bounds = array<i64: 1, 1024>}, {pipeline_mode = #tpu.pipeline_mode<synchronous>, transform_indices = @transform_8, window_bounds = array<i64: 2, 32>}, {pipeline_mode = #tpu.pipeline_mode<synchronous>, transform_indices = @transform_9, window_bounds = array<i64: 2, 32>}, {pipeline_mode = #tpu.pipeline_mode<synchronous>, transform_indices = @transform_10, window_bounds = array<i64: 2, 1024>}]} {
    %c0 = arith.constant 0 : index
    %c0_0 = arith.constant 0 : index
    %0 = vector.load %arg1[%c0, %c0_0] : memref<2x1152xbf16, #tpu.memory_space<vmem>>, vector<2x1152xbf16>
    %c0_1 = arith.constant 0 : index
    %c0_2 = arith.constant 0 : index
    %1 = vector.load %arg2[%c0_1, %c0_2] : memref<1152x32xbf16, #tpu.memory_space<vmem>>, vector<1152x32xbf16>
    %cst = arith.constant dense<0.000000e+00> : vector<2x32xf32>
    %2 = tpu.matmul %0, %1, %cst {dimension_numbers = #tpu.dot_dimension_numbers<[1], [0], [0], [1], [0, 0, 1, 1], [], []>} : vector<2x1152xbf16>, vector<1152x32xbf16>, vector<2x32xf32> -> vector<2x32xf32>
    %c0_3 = arith.constant 0 : index
    %c0_4 = arith.constant 0 : index
    %3 = vector.load %arg3[%c0_3, %c0_4] : memref<1x32xf32, #tpu.memory_space<vmem>>, vector<1x32xf32>
    %4 = vector.broadcast %3 : vector<1x32xf32> to vector<2x32xf32>
    %5 = arith.addf %2, %4 : vector<2x32xf32>
    %c0_5 = arith.constant 0 : index
    %c0_6 = arith.constant 0 : index
    %6 = vector.load %arg4[%c0_5, %c0_6] : memref<1152x32xbf16, #tpu.memory_space<vmem>>, vector<1152x32xbf16>
    %cst_7 = arith.constant dense<0.000000e+00> : vector<2x32xf32>
    %7 = tpu.matmul %0, %6, %cst_7 {dimension_numbers = #tpu.dot_dimension_numbers<[1], [0], [0], [1], [0, 0, 1, 1], [], []>} : vector<2x1152xbf16>, vector<1152x32xbf16>, vector<2x32xf32> -> vector<2x32xf32>
    %c0_8 = arith.constant 0 : index
    %c0_9 = arith.constant 0 : index
    %8 = vector.load %arg5[%c0_8, %c0_9] : memref<1x32xf32, #tpu.memory_space<vmem>>, vector<1x32xf32>
    %9 = vector.broadcast %8 : vector<1x32xf32> to vector<2x32xf32>
    %10 = arith.addf %7, %9 : vector<2x32xf32>
    %cst_10 = arith.constant 5.000000e-01 : f32
    %11 = vector.broadcast %cst_10 : f32 to vector<2x32xf32>
    %12 = arith.mulf %11, %10 : vector<2x32xf32>
    %13 = math.exp %12 : vector<2x32xf32>
    %c0_11 = arith.constant 0 : index
    %c0_12 = arith.constant 0 : index
    %14 = vector.load %arg6[%c0_11, %c0_12] : memref<2x32xf32, #tpu.memory_space<vmem>>, vector<2x32xf32>
    %15 = arith.mulf %13, %14 : vector<2x32xf32>
    %16 = arith.addf %5, %15 : vector<2x32xf32>
    %17 = arith.truncf %16 : vector<2x32xf32> to vector<2x32xbf16>
    %c0_13 = arith.constant 0 : index
    %c0_14 = arith.constant 0 : index
    %18 = vector.load %arg7[%c0_13, %c0_14] : memref<32x1024xbf16, #tpu.memory_space<vmem>>, vector<32x1024xbf16>
    %cst_15 = arith.constant dense<0.000000e+00> : vector<2x1024xf32>
    %19 = tpu.matmul %17, %18, %cst_15 {dimension_numbers = #tpu.dot_dimension_numbers<[1], [0], [0], [1], [0, 0, 1, 1], [], []>} : vector<2x32xbf16>, vector<32x1024xbf16>, vector<2x1024xf32> -> vector<2x1024xf32>
    %c0_16 = arith.constant 0 : index
    %c0_17 = arith.constant 0 : index
    %20 = vector.load %arg8[%c0_16, %c0_17] : memref<1x1024xf32, #tpu.memory_space<vmem>>, vector<1x1024xf32>
    %21 = vector.broadcast %20 : vector<1x1024xf32> to vector<2x1024xf32>
    %22 = arith.addf %19, %21 : vector<2x1024xf32>
    %c0_18 = arith.constant 0 : index
    %c0_19 = arith.constant 0 : index
    %23 = vector.load %arg9[%c0_18, %c0_19] : memref<2x32xf32, #tpu.memory_space<vmem>>, vector<2x32xf32>
    tpu.vector_store %arg9[%c0_18, %c0_19], %5 {strides = array<i32>} : memref<2x32xf32, #tpu.memory_space<vmem>>, vector<2x32xf32>,
    %c0_20 = arith.constant 0 : index
    %c0_21 = arith.constant 0 : index
    %24 = vector.load %arg10[%c0_20, %c0_21] : memref<2x32xf32, #tpu.memory_space<vmem>>, vector<2x32xf32>
    tpu.vector_store %arg10[%c0_20, %c0_21], %10 {strides = array<i32>} : memref<2x32xf32, #tpu.memory_space<vmem>>, vector<2x32xf32>,
    %c0_22 = arith.constant 0 : index
    %c0_23 = arith.constant 0 : index
    %25 = vector.load %arg11[%c0_22, %c0_23] : memref<2x1024xf32, #tpu.memory_space<vmem>>, vector<2x1024xf32>
    tpu.vector_store %arg11[%c0_22, %c0_23], %22 {strides = array<i32>} : memref<2x1024xf32, #tpu.memory_space<vmem>>, vector<2x1024xf32>,
    return
  }
  func.func @transform_0(%arg0: i32) -> (i32, i32) {
    %c0_i32 = arith.constant 0 : i32
    %c0_i32_0 = arith.constant 0 : i32
    %c0_i32_1 = arith.constant 0 : i32
    return %c0_i32, %c0_i32_0 : i32, i32
  }
  func.func @transform_1(%arg0: i32) -> (i32, i32) {
    %c0_i32 = arith.constant 0 : i32
    %c0_i32_0 = arith.constant 0 : i32
    %c0_i32_1 = arith.constant 0 : i32
    return %c0_i32, %c0_i32_0 : i32, i32
  }
  func.func @transform_2(%arg0: i32) -> (i32, i32) {
    %c0_i32 = arith.constant 0 : i32
    %c0_i32_0 = arith.constant 0 : i32
    %c0_i32_1 = arith.constant 0 : i32
    return %c0_i32, %c0_i32_0 : i32, i32
  }
  func.func @transform_3(%arg0: i32) -> (i32, i32) {
    %c0_i32 = arith.constant 0 : i32
    %c0_i32_0 = arith.constant 0 : i32
    %c0_i32_1 = arith.constant 0 : i32
    return %c0_i32, %c0_i32_0 : i32, i32
  }
  func.func @transform_4(%arg0: i32) -> (i32, i32) {
    %c0_i32 = arith.constant 0 : i32
    %c0_i32_0 = arith.constant 0 : i32
    %c0_i32_1 = arith.constant 0 : i32
    return %c0_i32, %c0_i32_0 : i32, i32
  }
  func.func @transform_5(%arg0: i32) -> (i32, i32) {
    %c0_i32 = arith.constant 0 : i32
    %c0_i32_0 = arith.constant 0 : i32
    %c0_i32_1 = arith.constant 0 : i32
    return %c0_i32, %c0_i32_0 : i32, i32
  }
  func.func @transform_6(%arg0: i32) -> (i32, i32) {
    %c0_i32 = arith.constant 0 : i32
    %c0_i32_0 = arith.constant 0 : i32
    %c0_i32_1 = arith.constant 0 : i32
    return %c0_i32, %c0_i32_0 : i32, i32
  }
  func.func @transform_7(%arg0: i32) -> (i32, i32) {
    %c0_i32 = arith.constant 0 : i32
    %c0_i32_0 = arith.constant 0 : i32
    %c0_i32_1 = arith.constant 0 : i32
    return %c0_i32, %c0_i32_0 : i32, i32
  }
  func.func @transform_8(%arg0: i32) -> (i32, i32) {
    %c0_i32 = arith.constant 0 : i32
    %c0_i32_0 = arith.constant 0 : i32
    %c0_i32_1 = arith.constant 0 : i32
    return %c0_i32, %c0_i32_0 : i32, i32
  }
  func.func @transform_9(%arg0: i32) -> (i32, i32) {
    %c0_i32 = arith.constant 0 : i32
    %c0_i32_0 = arith.constant 0 : i32
    %c0_i32_1 = arith.constant 0 : i32
    return %c0_i32, %c0_i32_0 : i32, i32
  }
  func.func @transform_10(%arg0: i32) -> (i32, i32) {
    %c0_i32 = arith.constant 0 : i32
    %c0_i32_0 = arith.constant 0 : i32
    %c0_i32_1 = arith.constant 0 : i32
    return %c0_i32, %c0_i32_0 : i32, i32
  }
}

module attributes {stable_mosaic.version = 11 : i64} {
  func.func @_matmul_bias_act_kernel(%arg0: i32, %arg1: memref<2x1024xbf16, #tpu.memory_space<vmem>>, %arg2: memref<1024x512xbf16, #tpu.memory_space<vmem>>, %arg3: memref<1x512xf32, #tpu.memory_space<vmem>>, %arg4: memref<2x512xf32, #tpu.memory_space<vmem>>) attributes {dimension_semantics = [#tpu.dimension_semantics<parallel>], iteration_bounds = array<i64: 1>, scalar_prefetch = 0 : i64, scratch_operands = 0 : i64, tpu.core_type = #tpu.core_type<tc>, window_params = [{transform_indices = @transform_0, window_bounds = array<i64: 2, 1024>}, {pipeline_mode = #tpu.pipeline_mode<synchronous>, transform_indices = @transform_1, window_bounds = array<i64: 1024, 512>}, {pipeline_mode = #tpu.pipeline_mode<synchronous>, transform_indices = @transform_2, window_bounds = array<i64: 1, 512>}, {transform_indices = @transform_3, window_bounds = array<i64: 2, 512>}]} {
    %c0 = arith.constant 0 : index
    %c0_0 = arith.constant 0 : index
    %0 = vector.load %arg1[%c0, %c0_0] : memref<2x1024xbf16, #tpu.memory_space<vmem>>, vector<2x1024xbf16>
    %c0_1 = arith.constant 0 : index
    %c0_2 = arith.constant 0 : index
    %1 = vector.load %arg2[%c0_1, %c0_2] : memref<1024x512xbf16, #tpu.memory_space<vmem>>, vector<1024x512xbf16>
    %cst = arith.constant dense<0.000000e+00> : vector<2x512xf32>
    %2 = tpu.matmul %0, %1, %cst {dimension_numbers = #tpu.dot_dimension_numbers<[1], [0], [0], [1], [0, 0, 1, 1], [], []>} : vector<2x1024xbf16>, vector<1024x512xbf16>, vector<2x512xf32> -> vector<2x512xf32>
    %c0_3 = arith.constant 0 : index
    %c0_4 = arith.constant 0 : index
    %3 = vector.load %arg3[%c0_3, %c0_4] : memref<1x512xf32, #tpu.memory_space<vmem>>, vector<1x512xf32>
    %4 = vector.broadcast %3 : vector<1x512xf32> to vector<2x512xf32>
    %5 = arith.addf %2, %4 : vector<2x512xf32>
    %cst_5 = arith.constant 0.000000e+00 : f32
    %6 = vector.broadcast %cst_5 : f32 to vector<2x512xf32>
    %7 = arith.maximumf %5, %6 : vector<2x512xf32>
    %c0_6 = arith.constant 0 : index
    %c0_7 = arith.constant 0 : index
    %8 = vector.load %arg4[%c0_6, %c0_7] : memref<2x512xf32, #tpu.memory_space<vmem>>, vector<2x512xf32>
    tpu.vector_store %arg4[%c0_6, %c0_7], %7 {strides = array<i32>} : memref<2x512xf32, #tpu.memory_space<vmem>>, vector<2x512xf32>,
    return
  }
  func.func @transform_0(%arg0: i32) -> (i32, i32) {
    %c0_i32 = arith.constant 0 : i32
    %c0_i32_0 = arith.constant 0 : i32
    return %arg0, %c0_i32 : i32, i32
  }
  func.func @transform_1(%arg0: i32) -> (i32, i32) {
    %c0_i32 = arith.constant 0 : i32
    %c0_i32_0 = arith.constant 0 : i32
    %c0_i32_1 = arith.constant 0 : i32
    return %c0_i32, %c0_i32_0 : i32, i32
  }
  func.func @transform_2(%arg0: i32) -> (i32, i32) {
    %c0_i32 = arith.constant 0 : i32
    %c0_i32_0 = arith.constant 0 : i32
    %c0_i32_1 = arith.constant 0 : i32
    return %c0_i32, %c0_i32_0 : i32, i32
  }
  func.func @transform_3(%arg0: i32) -> (i32, i32) {
    %c0_i32 = arith.constant 0 : i32
    %c0_i32_0 = arith.constant 0 : i32
    return %arg0, %c0_i32 : i32, i32
  }
}

module attributes {stable_mosaic.version = 11 : i64} {
  func.func @_matmul_bias_act_kernel(%arg0: i32, %arg1: memref<18x512xbf16, #tpu.memory_space<vmem>>, %arg2: memref<512x256xbf16, #tpu.memory_space<vmem>>, %arg3: memref<1x256xf32, #tpu.memory_space<vmem>>, %arg4: memref<18x256xf32, #tpu.memory_space<vmem>>) attributes {dimension_semantics = [#tpu.dimension_semantics<parallel>], iteration_bounds = array<i64: 1>, scalar_prefetch = 0 : i64, scratch_operands = 0 : i64, tpu.core_type = #tpu.core_type<tc>, window_params = [{transform_indices = @transform_0, window_bounds = array<i64: 18, 512>}, {pipeline_mode = #tpu.pipeline_mode<synchronous>, transform_indices = @transform_1, window_bounds = array<i64: 512, 256>}, {pipeline_mode = #tpu.pipeline_mode<synchronous>, transform_indices = @transform_2, window_bounds = array<i64: 1, 256>}, {transform_indices = @transform_3, window_bounds = array<i64: 18, 256>}]} {
    %c0 = arith.constant 0 : index
    %c0_0 = arith.constant 0 : index
    %0 = vector.load %arg1[%c0, %c0_0] : memref<18x512xbf16, #tpu.memory_space<vmem>>, vector<18x512xbf16>
    %c0_1 = arith.constant 0 : index
    %c0_2 = arith.constant 0 : index
    %1 = vector.load %arg2[%c0_1, %c0_2] : memref<512x256xbf16, #tpu.memory_space<vmem>>, vector<512x256xbf16>
    %cst = arith.constant dense<0.000000e+00> : vector<18x256xf32>
    %2 = tpu.matmul %0, %1, %cst {dimension_numbers = #tpu.dot_dimension_numbers<[1], [0], [0], [1], [0, 0, 1, 1], [], []>} : vector<18x512xbf16>, vector<512x256xbf16>, vector<18x256xf32> -> vector<18x256xf32>
    %c0_3 = arith.constant 0 : index
    %c0_4 = arith.constant 0 : index
    %3 = vector.load %arg3[%c0_3, %c0_4] : memref<1x256xf32, #tpu.memory_space<vmem>>, vector<1x256xf32>
    %4 = vector.broadcast %3 : vector<1x256xf32> to vector<18x256xf32>
    %5 = arith.addf %2, %4 : vector<18x256xf32>
    %cst_5 = arith.constant 0.000000e+00 : f32
    %6 = vector.broadcast %cst_5 : f32 to vector<18x256xf32>
    %7 = arith.maximumf %5, %6 : vector<18x256xf32>
    %c0_6 = arith.constant 0 : index
    %c0_7 = arith.constant 0 : index
    %8 = vector.load %arg4[%c0_6, %c0_7] : memref<18x256xf32, #tpu.memory_space<vmem>>, vector<18x256xf32>
    tpu.vector_store %arg4[%c0_6, %c0_7], %7 {strides = array<i32>} : memref<18x256xf32, #tpu.memory_space<vmem>>, vector<18x256xf32>,
    return
  }
  func.func @transform_0(%arg0: i32) -> (i32, i32) {
    %c0_i32 = arith.constant 0 : i32
    %c0_i32_0 = arith.constant 0 : i32
    return %arg0, %c0_i32 : i32, i32
  }
  func.func @transform_1(%arg0: i32) -> (i32, i32) {
    %c0_i32 = arith.constant 0 : i32
    %c0_i32_0 = arith.constant 0 : i32
    %c0_i32_1 = arith.constant 0 : i32
    return %c0_i32, %c0_i32_0 : i32, i32
  }
  func.func @transform_2(%arg0: i32) -> (i32, i32) {
    %c0_i32 = arith.constant 0 : i32
    %c0_i32_0 = arith.constant 0 : i32
    %c0_i32_1 = arith.constant 0 : i32
    return %c0_i32, %c0_i32_0 : i32, i32
  }
  func.func @transform_3(%arg0: i32) -> (i32, i32) {
    %c0_i32 = arith.constant 0 : i32
    %c0_i32_0 = arith.constant 0 : i32
    return %arg0, %c0_i32 : i32, i32
  }
}

module attributes {stable_mosaic.version = 11 : i64} {
  func.func @_matmul_bias_act_kernel(%arg0: i32, %arg1: memref<98x256xbf16, #tpu.memory_space<vmem>>, %arg2: memref<256x128xbf16, #tpu.memory_space<vmem>>, %arg3: memref<1x128xf32, #tpu.memory_space<vmem>>, %arg4: memref<98x128xf32, #tpu.memory_space<vmem>>) attributes {dimension_semantics = [#tpu.dimension_semantics<parallel>], iteration_bounds = array<i64: 1>, scalar_prefetch = 0 : i64, scratch_operands = 0 : i64, tpu.core_type = #tpu.core_type<tc>, window_params = [{transform_indices = @transform_0, window_bounds = array<i64: 98, 256>}, {pipeline_mode = #tpu.pipeline_mode<synchronous>, transform_indices = @transform_1, window_bounds = array<i64: 256, 128>}, {pipeline_mode = #tpu.pipeline_mode<synchronous>, transform_indices = @transform_2, window_bounds = array<i64: 1, 128>}, {transform_indices = @transform_3, window_bounds = array<i64: 98, 128>}]} {
    %c0 = arith.constant 0 : index
    %c0_0 = arith.constant 0 : index
    %0 = vector.load %arg1[%c0, %c0_0] : memref<98x256xbf16, #tpu.memory_space<vmem>>, vector<98x256xbf16>
    %c0_1 = arith.constant 0 : index
    %c0_2 = arith.constant 0 : index
    %1 = vector.load %arg2[%c0_1, %c0_2] : memref<256x128xbf16, #tpu.memory_space<vmem>>, vector<256x128xbf16>
    %cst = arith.constant dense<0.000000e+00> : vector<98x128xf32>
    %2 = tpu.matmul %0, %1, %cst {dimension_numbers = #tpu.dot_dimension_numbers<[1], [0], [0], [1], [0, 0, 1, 1], [], []>} : vector<98x256xbf16>, vector<256x128xbf16>, vector<98x128xf32> -> vector<98x128xf32>
    %c0_3 = arith.constant 0 : index
    %c0_4 = arith.constant 0 : index
    %3 = vector.load %arg3[%c0_3, %c0_4] : memref<1x128xf32, #tpu.memory_space<vmem>>, vector<1x128xf32>
    %4 = vector.broadcast %3 : vector<1x128xf32> to vector<98x128xf32>
    %5 = arith.addf %2, %4 : vector<98x128xf32>
    %cst_5 = arith.constant 0.000000e+00 : f32
    %6 = vector.broadcast %cst_5 : f32 to vector<98x128xf32>
    %7 = arith.maximumf %5, %6 : vector<98x128xf32>
    %c0_6 = arith.constant 0 : index
    %c0_7 = arith.constant 0 : index
    %8 = vector.load %arg4[%c0_6, %c0_7] : memref<98x128xf32, #tpu.memory_space<vmem>>, vector<98x128xf32>
    tpu.vector_store %arg4[%c0_6, %c0_7], %7 {strides = array<i32>} : memref<98x128xf32, #tpu.memory_space<vmem>>, vector<98x128xf32>,
    return
  }
  func.func @transform_0(%arg0: i32) -> (i32, i32) {
    %c0_i32 = arith.constant 0 : i32
    %c0_i32_0 = arith.constant 0 : i32
    return %arg0, %c0_i32 : i32, i32
  }
  func.func @transform_1(%arg0: i32) -> (i32, i32) {
    %c0_i32 = arith.constant 0 : i32
    %c0_i32_0 = arith.constant 0 : i32
    %c0_i32_1 = arith.constant 0 : i32
    return %c0_i32, %c0_i32_0 : i32, i32
  }
  func.func @transform_2(%arg0: i32) -> (i32, i32) {
    %c0_i32 = arith.constant 0 : i32
    %c0_i32_0 = arith.constant 0 : i32
    %c0_i32_1 = arith.constant 0 : i32
    return %c0_i32, %c0_i32_0 : i32, i32
  }
  func.func @transform_3(%arg0: i32) -> (i32, i32) {
    %c0_i32 = arith.constant 0 : i32
    %c0_i32_0 = arith.constant 0 : i32
    return %arg0, %c0_i32 : i32, i32
  }
}

module attributes {stable_mosaic.version = 11 : i64} {
  func.func @_matmul_bias_act_kernel(%arg0: i32, %arg1: memref<450x128xbf16, #tpu.memory_space<vmem>>, %arg2: memref<128x4xbf16, #tpu.memory_space<vmem>>, %arg3: memref<1x4xf32, #tpu.memory_space<vmem>>, %arg4: memref<450x4xf32, #tpu.memory_space<vmem>>) attributes {dimension_semantics = [#tpu.dimension_semantics<parallel>], iteration_bounds = array<i64: 1>, scalar_prefetch = 0 : i64, scratch_operands = 0 : i64, tpu.core_type = #tpu.core_type<tc>, window_params = [{transform_indices = @transform_0, window_bounds = array<i64: 450, 128>}, {pipeline_mode = #tpu.pipeline_mode<synchronous>, transform_indices = @transform_1, window_bounds = array<i64: 128, 4>}, {pipeline_mode = #tpu.pipeline_mode<synchronous>, transform_indices = @transform_2, window_bounds = array<i64: 1, 4>}, {transform_indices = @transform_3, window_bounds = array<i64: 450, 4>}]} {
    %c0 = arith.constant 0 : index
    %c0_0 = arith.constant 0 : index
    %0 = vector.load %arg1[%c0, %c0_0] : memref<450x128xbf16, #tpu.memory_space<vmem>>, vector<450x128xbf16>
    %c0_1 = arith.constant 0 : index
    %c0_2 = arith.constant 0 : index
    %1 = vector.load %arg2[%c0_1, %c0_2] : memref<128x4xbf16, #tpu.memory_space<vmem>>, vector<128x4xbf16>
    %cst = arith.constant dense<0.000000e+00> : vector<450x4xf32>
    %2 = tpu.matmul %0, %1, %cst {dimension_numbers = #tpu.dot_dimension_numbers<[1], [0], [0], [1], [0, 0, 1, 1], [], []>} : vector<450x128xbf16>, vector<128x4xbf16>, vector<450x4xf32> -> vector<450x4xf32>
    %c0_3 = arith.constant 0 : index
    %c0_4 = arith.constant 0 : index
    %3 = vector.load %arg3[%c0_3, %c0_4] : memref<1x4xf32, #tpu.memory_space<vmem>>, vector<1x4xf32>
    %4 = vector.broadcast %3 : vector<1x4xf32> to vector<450x4xf32>
    %5 = arith.addf %2, %4 : vector<450x4xf32>
    %cst_5 = arith.constant 0.000000e+00 : f32
    %6 = vector.broadcast %cst_5 : f32 to vector<450x4xf32>
    %7 = arith.subf %6, %5 : vector<450x4xf32>
    %8 = math.exp %7 : vector<450x4xf32>
    %cst_6 = arith.constant 1.000000e+00 : f32
    %9 = vector.broadcast %cst_6 : f32 to vector<450x4xf32>
    %10 = arith.addf %9, %8 : vector<450x4xf32>
    %cst_7 = arith.constant 1.000000e+00 : f32
    %11 = vector.broadcast %cst_7 : f32 to vector<450x4xf32>
    %12 = arith.divf %11, %10 : vector<450x4xf32>
    %c0_8 = arith.constant 0 : index
    %c0_9 = arith.constant 0 : index
    %13 = vector.load %arg4[%c0_8, %c0_9] : memref<450x4xf32, #tpu.memory_space<vmem>>, vector<450x4xf32>
    tpu.vector_store %arg4[%c0_8, %c0_9], %12 {strides = array<i32>} : memref<450x4xf32, #tpu.memory_space<vmem>>, vector<450x4xf32>,
    return
  }
  func.func @transform_0(%arg0: i32) -> (i32, i32) {
    %c0_i32 = arith.constant 0 : i32
    %c0_i32_0 = arith.constant 0 : i32
    return %arg0, %c0_i32 : i32, i32
  }
  func.func @transform_1(%arg0: i32) -> (i32, i32) {
    %c0_i32 = arith.constant 0 : i32
    %c0_i32_0 = arith.constant 0 : i32
    %c0_i32_1 = arith.constant 0 : i32
    return %c0_i32, %c0_i32_0 : i32, i32
  }
  func.func @transform_2(%arg0: i32) -> (i32, i32) {
    %c0_i32 = arith.constant 0 : i32
    %c0_i32_0 = arith.constant 0 : i32
    %c0_i32_1 = arith.constant 0 : i32
    return %c0_i32, %c0_i32_0 : i32, i32
  }
  func.func @transform_3(%arg0: i32) -> (i32, i32) {
    %c0_i32 = arith.constant 0 : i32
    %c0_i32_0 = arith.constant 0 : i32
    return %arg0, %c0_i32 : i32, i32
  }
}

</mosaic_0001>

<bundles_post_ra>
// kernel: vae_forward.8
= control target key start
LH: loop header
LB: loop body
LE: loop exit
PB: predicated region body
PF: predicated region fallthrough
CT: control target
= control target key end

     0   :  { %8 = vsyncpa [#allocation3], 0  ;;  %s861_s12 = smov [#allocation2]   ;;  %s1298_s0 = inlined_call_operand.vmem [shape: bf16[392,16], index: 0, kind: input, shape index: {}]   ;;  %s1299_s1 = inlined_call_operand.vmem [shape: bf16[16,32], index: 1, kind: input, shape index: {}]   ;;  %s1300_s2 = inlined_call_operand.hbm [shape: f32[1,32], index: 2, kind: input, shape index: {}]   ;;  %s1301_s3 = inlined_call_operand.vmem [shape: f32[392,32], index: 3, kind: output, shape index: {}]  }
   0x1   :  { %s19_s13 = sshll.u32 %s861_s12, 4  ;;  %s837_s16 = scalar_lea.hbm %s1300_s2, 16  ;;  %s20_s13 = int_to_ptr.vmem [resolvable:$true] %s19_s13 }
   0x2   :  { %p838_p0 = scmp.ne.s32.totalorder %s1300_s2, %s837_s16  ;;  %p841_p1 = scmp.lt.u32.totalorder %s837_s16, %s1300_s2 }
   0x4   :  { %p843_p2 = pnand %p841_p1, %p838_p0 }
   0x6   :  { %846 = shalt.err (!%p843_p2)
}
   0x7   :  { %s847_s21 = scalar_lea.vmem %s20_s13, 16  ;;  %s851_s22 = scalar_lea.vmem %s20_s13, 32 }
   0x8   :  { %p848_p3 = scmp.ne.s32.totalorder %s20_s13, %s847_s21  ;;  %p852_p4 = scmp.lt.s32.totalorder %s20_s13, %s20_s13 }
   0x9   :  { %p853_p5 = scmp.lt.s32.totalorder %s851_s22, %s847_s21 }
   0xb   :  { %p854_p6 = por %p853_p5, %p852_p4 }
   0xd   :  { %p855_p7 = pnand %p854_p6, %p848_p3 }
   0xf   :  { %858 = shalt.err (!%p855_p7)
}
  0x10   :  { %22 = dma.hbm_to_vmem [thread:$0]  %s1300_s2, 16, %s20_s13, [#allocation3]  }
  0x11   :  { %859 = dma.done.wait [#allocation3], 16  }
  0x12   :  { %860 = vsyncadd [#allocation3], 4294967280  ;;  %v862_v0 = vmov 0.0   ;;  %vm863_vm0 = vmmov 0   ;;  %v811_v1 = vld [vmem:[%s1299_s1] sm:$0xff]   ;;  %vm214_vm1 = vcmask 130048  }
  0x13   :  { %704 = vmatprep.subr.bf16.mxu0 %v862_v0  ;;  %706 = vmatprep.mubr.msk.bf16.mxu0 %vm863_vm0, %v862_v0  ;;  %v812_v2 = vld [vmem:[%s1298_s0] sm:$0xff]   ;;  %v813_v3 = vld [vmem:[%s1298_s0 + $0x68] sm:$0xff]   ;;  %v815_v5 = vld [vmem:[%s1298_s0 + $0x70] sm:$0xff]   ;;  %vm571_vm2 = vcmask 261120  }
  0x14   :  { %806 = vmatprep.subr.bf16.mxu1 %v862_v0  ;;  %758 = vmatprep.mubr.msk.bf16.mxu1 %vm863_vm0, %v862_v0  ;;  %v814_v4 = vld [vmem:[%s1298_s0 + $0x8] sm:$0xff]   ;;  %v816_v6 = vld [vmem:[%s1298_s0 + $0x10] sm:$0xff]   ;;  %v817_v7 = vld [vmem:[%s1298_s0 + $0x78] sm:$0xff]  }
  0x15   :  { %705 = vmatpush3.bf16.msra.mxu0 %v811_v1  ;;  %807 = vmatpush3.bf16.msra.mxu1 %v811_v1  ;;  %v818_v8 = vld [vmem:[%s1298_s0 + $0x18] sm:$0xff]   ;;  %v819_v9 = vld [vmem:[%s1298_s0 + $0x80] sm:$0xff]   ;;  %v821_v11 = vld [vmem:[%s1298_s0 + $0x88] sm:$0xff]  }
  0x16   :  { %v820_v10 = vld [vmem:[%s1298_s0 + $0x20] sm:$0xff]   ;;  %v822_v12 = vld [vmem:[%s1298_s0 + $0x28] sm:$0xff]   ;;  %v823_v13 = vld [vmem:[%s1298_s0 + $0x90] sm:$0xff]  }
  0x17   :  { %v824_v14 = vld [vmem:[%s1298_s0 + $0x30] sm:$0xff]   ;;  %v825_v15 = vld [vmem:[%s1298_s0 + $0x98] sm:$0xff]   ;;  %v827_v17 = vld [vmem:[%s1298_s0 + $0xa0] sm:$0xff]  }
  0x18   :  { %707 = vmatmul.mubr.msk.bf16.vlgmr.msra.gmra.mrb[0].mxu0 %vm214_vm1, %v812_v2  ;;  %759 = vmatmul.mubr.msk.bf16.vlgmr.msra.gmra.mrb[0].mxu1 %vm214_vm1, %v813_v3  ;;  %v826_v16 = vld [vmem:[%s1298_s0 + $0x38] sm:$0xff]   ;;  %v828_v18 = vld [vmem:[%s1298_s0 + $0x40] sm:$0xff]   ;;  %v829_v19 = vld [vmem:[%s1298_s0 + $0xa8] sm:$0xff]  }
  0x19   :  { %710 = vmatprep.mubr.msk.bf16.mxu0 %vm863_vm0, %v862_v0  ;;  %762 = vmatprep.mubr.msk.bf16.mxu1 %vm863_vm0, %v862_v0  ;;  %v830_v20 = vld [vmem:[%s1298_s0 + $0x48] sm:$0xff]   ;;  %v831_v21 = vld [vmem:[%s1298_s0 + $0xb0] sm:$0xff]   ;;  %v833_v23 = vld [vmem:[%s1298_s0 + $0xb8] sm:$0xff]  }
  0x1a   :  { %v832_v22 = vld [vmem:[%s1298_s0 + $0x50] sm:$0xff]   ;;  %v834_v24 = vld [vmem:[%s1298_s0 + $0x58] sm:$0xff]   ;;  %v835_v25 = vld [vmem:[%s1298_s0 + $0xc0] ss:$0 sps:$4 sm:$0xff]  }
  0x1b   :  { %v836_v26 = vld [vmem:[%s1298_s0 + $0x60] sm:$0xff]  }
  0x1c   :  { %v1051_v27 = vld [vmem:[#allocation2] ss:$0 sm:$0xff] }
  0x20   :  { %711 = vmatmul.mubr.msk.bf16.gmra.mrb[4].mxu0 %vm214_vm1, %v814_v4  ;;  %763 = vmatmul.mubr.msk.bf16.gmra.mrb[4].mxu1 %vm214_vm1, %v815_v5 }
  0x21   :  { %714 = vmatprep.mubr.msk.bf16.mxu0 %vm863_vm0, %v862_v0  ;;  %766 = vmatprep.mubr.msk.bf16.mxu1 %vm863_vm0, %v862_v0 }
  0x28   :  { %715 = vmatmul.mubr.msk.bf16.gmra.mrb[8].mxu0 %vm214_vm1, %v816_v6  ;;  %767 = vmatmul.mubr.msk.bf16.gmra.mrb[8].mxu1 %vm214_vm1, %v817_v7 }
  0x29   :  { %718 = vmatprep.mubr.msk.bf16.mxu0 %vm863_vm0, %v862_v0  ;;  %770 = vmatprep.mubr.msk.bf16.mxu1 %vm863_vm0, %v862_v0 }
  0x30   :  { %719 = vmatmul.mubr.msk.bf16.gmra.mrb[12].mxu0 %vm214_vm1, %v818_v8  ;;  %771 = vmatmul.mubr.msk.bf16.gmra.mrb[12].mxu1 %vm214_vm1, %v819_v9 }
  0x31   :  { %722 = vmatprep.mubr.msk.bf16.mxu0 %vm863_vm0, %v862_v0  ;;  %774 = vmatprep.mubr.msk.bf16.mxu1 %vm863_vm0, %v862_v0 }
  0x38   :  { %723 = vmatmul.mubr.msk.bf16.gmra.mrb[16].mxu0 %vm214_vm1, %v820_v10  ;;  %775 = vmatmul.mubr.msk.bf16.gmra.mrb[16].mxu1 %vm214_vm1, %v821_v11 }
  0x39   :  { %726 = vmatprep.mubr.msk.bf16.mxu0 %vm863_vm0, %v862_v0  ;;  %778 = vmatprep.mubr.msk.bf16.mxu1 %vm863_vm0, %v862_v0 }
  0x40   :  { %727 = vmatmul.mubr.msk.bf16.gmra.mrb[20].mxu0 %vm214_vm1, %v822_v12  ;;  %779 = vmatmul.mubr.msk.bf16.gmra.mrb[20].mxu1 %vm214_vm1, %v823_v13 }
  0x41   :  { %730 = vmatprep.mubr.msk.bf16.mxu0 %vm863_vm0, %v862_v0  ;;  %782 = vmatprep.mubr.msk.bf16.mxu1 %vm863_vm0, %v862_v0 }
  0x48   :  { %731 = vmatmul.mubr.msk.bf16.gmra.mrb[24].mxu0 %vm214_vm1, %v824_v14  ;;  %783 = vmatmul.mubr.msk.bf16.gmra.mrb[24].mxu1 %vm214_vm1, %v825_v15 }
  0x49   :  { %734 = vmatprep.mubr.msk.bf16.mxu0 %vm863_vm0, %v862_v0  ;;  %786 = vmatprep.mubr.msk.bf16.mxu1 %vm863_vm0, %v862_v0 }
  0x50   :  { %735 = vmatmul.mubr.msk.bf16.gmra.mrb[28].mxu0 %vm214_vm1, %v826_v16  ;;  %787 = vmatmul.mubr.msk.bf16.gmra.mrb[28].mxu1 %vm214_vm1, %v827_v17 }
  0x51   :  { %738 = vmatprep.mubr.msk.bf16.mxu0 %vm863_vm0, %v862_v0  ;;  %790 = vmatprep.mubr.msk.bf16.mxu1 %vm863_vm0, %v862_v0 }
  0x58   :  { %739 = vmatmul.mubr.msk.bf16.gmra.mrb[32].mxu0 %vm214_vm1, %v828_v18  ;;  %791 = vmatmul.mubr.msk.bf16.gmra.mrb[32].mxu1 %vm214_vm1, %v829_v19 }
  0x59   :  { %742 = vmatprep.mubr.msk.bf16.mxu0 %vm863_vm0, %v862_v0  ;;  %794 = vmatprep.mubr.msk.bf16.mxu1 %vm863_vm0, %v862_v0 }
  0x60   :  { %743 = vmatmul.mubr.msk.bf16.gmra.mrb[36].mxu0 %vm214_vm1, %v830_v20  ;;  %795 = vmatmul.mubr.msk.bf16.gmra.mrb[36].mxu1 %vm214_vm1, %v831_v21 }
  0x61   :  { %746 = vmatprep.mubr.msk.bf16.mxu0 %vm863_vm0, %v862_v0  ;;  %798 = vmatprep.mubr.msk.bf16.mxu1 %vm863_vm0, %v862_v0 }
  0x68   :  { %747 = vmatmul.mubr.msk.bf16.gmra.mrb[40].mxu0 %vm214_vm1, %v832_v22  ;;  %799 = vmatmul.mubr.msk.bf16.gmra.mrb[40].mxu1 %vm214_vm1, %v833_v23 }
  0x69   :  { %750 = vmatprep.mubr.msk.bf16.mxu0 %vm863_vm0, %v862_v0  ;;  %802 = vmatprep.mubr.msk.bf16.mxu1 %vm863_vm0, %v862_v0 }
  0x70   :  { %751 = vmatmul.mubr.msk.bf16.gmra.mrb[44].mxu0 %vm214_vm1, %v834_v24  ;;  %803 = vmatmul.mubr.msk.bf16.gmra.mrb[44].mxu1 %vm214_vm1, %v835_v25 }
  0x71   :  { %754 = vmatprep.mubr.msk.bf16.mxu0 %vm863_vm0, %v862_v0 }
  0x78   :  { %755 = vmatmul.mubr.msk.bf16.gmra.mrb[48].mxu0 %vm214_vm1, %v836_v26 }
  0xeb   :  { %v324_v28 = vpop.f32.mrb[0].mxu0  ;;  %v428_v29 = vpop.f32.mrb[0].mxu1 }
  0xec   :  { %v325_v30 = vadd.f32 %v1051_v27, %v324_v28  ;;  %v708_v31 = vpop.f32.mrb[1].mxu0  ;;  %v429_v32 = vadd.f32 %v1051_v27, %v428_v29  ;;  %v760_v33 = vpop.f32.mrb[1].mxu1 }
  0xed   :  { %v327_v34 = vpop.f32.mrb[2].mxu0  ;;  %v431_v35 = vpop.f32.mrb[2].mxu1 }
  0xee   :  { %v522_v36 = vmax.f32 %v325_v30, 0.0  ;;  %v328_v37 = vadd.f32 %v1051_v27, %v327_v34  ;;  %v709_v38 = vpop.f32.mrb[3].mxu0  ;;  %v548_v39 = vmax.f32 %v429_v32, 0.0  ;;  %v432_v40 = vadd.f32 %v1051_v27, %v431_v35  ;;  %v761_v41 = vpop.f32.mrb[3].mxu1 }
  0xf0   :  { %572 = vst.msk [vmem:[%s1301_s3] sm:$0xff] %vm571_vm2, %v522_v36  ;;  %v523_v42 = vmax.f32 %v328_v37, 0.0  ;;  %598 = vst.msk [vmem:[%s1301_s3 + $0xd0] sm:$0xff] %vm571_vm2, %v548_v39  ;;  %v549_v43 = vmax.f32 %v432_v40, 0.0 }
  0xf2   :  { %573 = vst.msk [vmem:[%s1301_s3 + $0x8] sm:$0xff] %vm571_vm2, %v523_v42  ;;  %599 = vst.msk [vmem:[%s1301_s3 + $0xd8] sm:$0xff] %vm571_vm2, %v549_v43 }
  0xf3   :  { %v332_v44 = vpop.f32.mrb[4].mxu0  ;;  %v436_v45 = vpop.f32.mrb[4].mxu1 }
  0xf4   :  { %v333_v46 = vadd.f32 %v1051_v27, %v332_v44  ;;  %v712_v47 = vpop.f32.mrb[5].mxu0  ;;  %v437_v48 = vadd.f32 %v1051_v27, %v436_v45  ;;  %v764_v49 = vpop.f32.mrb[5].mxu1 }
  0xf5   :  { %v335_v50 = vpop.f32.mrb[6].mxu0  ;;  %v439_v51 = vpop.f32.mrb[6].mxu1 }
  0xf6   :  { %v524_v52 = vmax.f32 %v333_v46, 0.0  ;;  %v336_v53 = vadd.f32 %v1051_v27, %v335_v50  ;;  %v713_v54 = vpop.f32.mrb[7].mxu0  ;;  %v550_v55 = vmax.f32 %v437_v48, 0.0  ;;  %v440_v56 = vadd.f32 %v1051_v27, %v439_v51  ;;  %v765_v57 = vpop.f32.mrb[7].mxu1 }
  0xf8   :  { %574 = vst.msk [vmem:[%s1301_s3 + $0x10] sm:$0xff] %vm571_vm2, %v524_v52  ;;  %v525_v58 = vmax.f32 %v336_v53, 0.0  ;;  %600 = vst.msk [vmem:[%s1301_s3 + $0xe0] sm:$0xff] %vm571_vm2, %v550_v55  ;;  %v551_v59 = vmax.f32 %v440_v56, 0.0 }
  0xfa   :  { %575 = vst.msk [vmem:[%s1301_s3 + $0x18] sm:$0xff] %vm571_vm2, %v525_v58  ;;  %601 = vst.msk [vmem:[%s1301_s3 + $0xe8] sm:$0xff] %vm571_vm2, %v551_v59 }
  0xfb   :  { %v340_v60 = vpop.f32.mrb[8].mxu0  ;;  %v444_v61 = vpop.f32.mrb[8].mxu1 }
  0xfc   :  { %v341_v62 = vadd.f32 %v1051_v27, %v340_v60  ;;  %v716_v63 = vpop.f32.mrb[9].mxu0  ;;  %v445_v0 = vadd.f32 %v1051_v27, %v444_v61  ;;  %v768_v1 = vpop.f32.mrb[9].mxu1 }
  0xfd   :  { %v343_v2 = vpop.f32.mrb[10].mxu0  ;;  %v447_v3 = vpop.f32.mrb[10].mxu1 }
  0xfe   :  { %v526_v4 = vmax.f32 %v341_v62, 0.0  ;;  %v344_v5 = vadd.f32 %v1051_v27, %v343_v2  ;;  %v717_v6 = vpop.f32.mrb[11].mxu0  ;;  %v552_v7 = vmax.f32 %v445_v0, 0.0  ;;  %v448_v8 = vadd.f32 %v1051_v27, %v447_v3  ;;  %v769_v9 = vpop.f32.mrb[11].mxu1 }
 0x100   :  { %576 = vst.msk [vmem:[%s1301_s3 + $0x20] sm:$0xff] %vm571_vm2, %v526_v4  ;;  %v527_v10 = vmax.f32 %v344_v5, 0.0  ;;  %602 = vst.msk [vmem:[%s1301_s3 + $0xf0] sm:$0xff] %vm571_vm2, %v552_v7  ;;  %v553_v11 = vmax.f32 %v448_v8, 0.0 }
 0x102   :  { %577 = vst.msk [vmem:[%s1301_s3 + $0x28] sm:$0xff] %vm571_vm2, %v527_v10  ;;  %603 = vst.msk [vmem:[%s1301_s3 + $0xf8] sm:$0xff] %vm571_vm2, %v553_v11 }
 0x103   :  { %v348_v12 = vpop.f32.mrb[12].mxu0  ;;  %v452_v13 = vpop.f32.mrb[12].mxu1 }
 0x104   :  { %v349_v14 = vadd.f32 %v1051_v27, %v348_v12  ;;  %v720_v15 = vpop.f32.mrb[13].mxu0  ;;  %v453_v16 = vadd.f32 %v1051_v27, %v452_v13  ;;  %v772_v17 = vpop.f32.mrb[13].mxu1 }
 0x105   :  { %v351_v18 = vpop.f32.mrb[14].mxu0  ;;  %v455_v19 = vpop.f32.mrb[14].mxu1 }
 0x106   :  { %v528_v20 = vmax.f32 %v349_v14, 0.0  ;;  %v352_v21 = vadd.f32 %v1051_v27, %v351_v18  ;;  %v721_v22 = vpop.f32.mrb[15].mxu0  ;;  %v554_v23 = vmax.f32 %v453_v16, 0.0  ;;  %v456_v24 = vadd.f32 %v1051_v27, %v455_v19  ;;  %v773_v25 = vpop.f32.mrb[15].mxu1 }
 0x108   :  { %578 = vst.msk [vmem:[%s1301_s3 + $0x30] sm:$0xff] %vm571_vm2, %v528_v20  ;;  %v529_v26 = vmax.f32 %v352_v21, 0.0  ;;  %604 = vst.msk [vmem:[%s1301_s3 + $0x100] sm:$0xff] %vm571_vm2, %v554_v23  ;;  %v555_v28 = vmax.f32 %v456_v24, 0.0 }
 0x10a   :  { %579 = vst.msk [vmem:[%s1301_s3 + $0x38] sm:$0xff] %vm571_vm2, %v529_v26  ;;  %605 = vst.msk [vmem:[%s1301_s3 + $0x108] sm:$0xff] %vm571_vm2, %v555_v28 }
 0x10b   :  { %v356_v29 = vpop.f32.mrb[16].mxu0  ;;  %v460_v30 = vpop.f32.mrb[16].mxu1 }
 0x10c   :  { %v357_v31 = vadd.f32 %v1051_v27, %v356_v29  ;;  %v724_v32 = vpop.f32.mrb[17].mxu0  ;;  %v461_v33 = vadd.f32 %v1051_v27, %v460_v30  ;;  %v776_v34 = vpop.f32.mrb[17].mxu1 }
 0x10d   :  { %v359_v35 = vpop.f32.mrb[18].mxu0  ;;  %v463_v36 = vpop.f32.mrb[18].mxu1 }
 0x10e   :  { %v530_v37 = vmax.f32 %v357_v31, 0.0  ;;  %v360_v38 = vadd.f32 %v1051_v27, %v359_v35  ;;  %v725_v39 = vpop.f32.mrb[19].mxu0  ;;  %v556_v40 = vmax.f32 %v461_v33, 0.0  ;;  %v464_v41 = vadd.f32 %v1051_v27, %v463_v36  ;;  %v777_v42 = vpop.f32.mrb[19].mxu1 }
 0x110   :  { %580 = vst.msk [vmem:[%s1301_s3 + $0x40] sm:$0xff] %vm571_vm2, %v530_v37  ;;  %v531_v43 = vmax.f32 %v360_v38, 0.0  ;;  %606 = vst.msk [vmem:[%s1301_s3 + $0x110] sm:$0xff] %vm571_vm2, %v556_v40  ;;  %v557_v44 = vmax.f32 %v464_v41, 0.0 }
 0x112   :  { %581 = vst.msk [vmem:[%s1301_s3 + $0x48] sm:$0xff] %vm571_vm2, %v531_v43  ;;  %607 = vst.msk [vmem:[%s1301_s3 + $0x118] sm:$0xff] %vm571_vm2, %v557_v44 }
 0x113   :  { %v364_v45 = vpop.f32.mrb[20].mxu0  ;;  %v468_v46 = vpop.f32.mrb[20].mxu1 }
 0x114   :  { %v365_v47 = vadd.f32 %v1051_v27, %v364_v45  ;;  %v728_v48 = vpop.f32.mrb[21].mxu0  ;;  %v469_v49 = vadd.f32 %v1051_v27, %v468_v46  ;;  %v780_v50 = vpop.f32.mrb[21].mxu1 }
 0x115   :  { %v367_v51 = vpop.f32.mrb[22].mxu0  ;;  %v471_v52 = vpop.f32.mrb[22].mxu1 }
 0x116   :  { %v532_v53 = vmax.f32 %v365_v47, 0.0  ;;  %v368_v54 = vadd.f32 %v1051_v27, %v367_v51  ;;  %v729_v55 = vpop.f32.mrb[23].mxu0  ;;  %v558_v56 = vmax.f32 %v469_v49, 0.0  ;;  %v472_v57 = vadd.f32 %v1051_v27, %v471_v52  ;;  %v781_v58 = vpop.f32.mrb[23].mxu1 }
 0x118   :  { %582 = vst.msk [vmem:[%s1301_s3 + $0x50] sm:$0xff] %vm571_vm2, %v532_v53  ;;  %v533_v59 = vmax.f32 %v368_v54, 0.0  ;;  %608 = vst.msk [vmem:[%s1301_s3 + $0x120] sm:$0xff] %vm571_vm2, %v558_v56  ;;  %v559_v60 = vmax.f32 %v472_v57, 0.0 }
 0x11a   :  { %583 = vst.msk [vmem:[%s1301_s3 + $0x58] sm:$0xff] %vm571_vm2, %v533_v59  ;;  %609 = vst.msk [vmem:[%s1301_s3 + $0x128] sm:$0xff] %vm571_vm2, %v559_v60 }
 0x11b   :  { %v372_v61 = vpop.f32.mrb[24].mxu0  ;;  %v476_v62 = vpop.f32.mrb[24].mxu1 }
 0x11c   :  { %v373_v63 = vadd.f32 %v1051_v27, %v372_v61  ;;  %v732_v0 = vpop.f32.mrb[25].mxu0  ;;  %v477_v1 = vadd.f32 %v1051_v27, %v476_v62  ;;  %v784_v2 = vpop.f32.mrb[25].mxu1 }
 0x11d   :  { %v375_v3 = vpop.f32.mrb[26].mxu0  ;;  %v479_v4 = vpop.f32.mrb[26].mxu1 }
 0x11e   :  { %v534_v5 = vmax.f32 %v373_v63, 0.0  ;;  %v376_v6 = vadd.f32 %v1051_v27, %v375_v3  ;;  %v733_v7 = vpop.f32.mrb[27].mxu0  ;;  %v560_v8 = vmax.f32 %v477_v1, 0.0  ;;  %v480_v9 = vadd.f32 %v1051_v27, %v479_v4  ;;  %v785_v10 = vpop.f32.mrb[27].mxu1 }
 0x120   :  { %584 = vst.msk [vmem:[%s1301_s3 + $0x60] sm:$0xff] %vm571_vm2, %v534_v5  ;;  %v535_v11 = vmax.f32 %v376_v6, 0.0  ;;  %610 = vst.msk [vmem:[%s1301_s3 + $0x130] sm:$0xff] %vm571_vm2, %v560_v8  ;;  %v561_v12 = vmax.f32 %v480_v9, 0.0 }
 0x122   :  { %585 = vst.msk [vmem:[%s1301_s3 + $0x68] sm:$0xff] %vm571_vm2, %v535_v11  ;;  %611 = vst.msk [vmem:[%s1301_s3 + $0x138] sm:$0xff] %vm571_vm2, %v561_v12 }
 0x123   :  { %v380_v13 = vpop.f32.mrb[28].mxu0  ;;  %v484_v14 = vpop.f32.mrb[28].mxu1 }
 0x124   :  { %v381_v15 = vadd.f32 %v1051_v27, %v380_v13  ;;  %v736_v16 = vpop.f32.mrb[29].mxu0  ;;  %v485_v17 = vadd.f32 %v1051_v27, %v484_v14  ;;  %v788_v18 = vpop.f32.mrb[29].mxu1 }
 0x125   :  { %v383_v19 = vpop.f32.mrb[30].mxu0  ;;  %v487_v20 = vpop.f32.mrb[30].mxu1 }
 0x126   :  { %v536_v21 = vmax.f32 %v381_v15, 0.0  ;;  %v384_v22 = vadd.f32 %v1051_v27, %v383_v19  ;;  %v737_v23 = vpop.f32.mrb[31].mxu0  ;;  %v562_v24 = vmax.f32 %v485_v17, 0.0  ;;  %v488_v25 = vadd.f32 %v1051_v27, %v487_v20  ;;  %v789_v26 = vpop.f32.mrb[31].mxu1 }
 0x128   :  { %586 = vst.msk [vmem:[%s1301_s3 + $0x70] sm:$0xff] %vm571_vm2, %v536_v21  ;;  %v537_v28 = vmax.f32 %v384_v22, 0.0  ;;  %612 = vst.msk [vmem:[%s1301_s3 + $0x140] sm:$0xff] %vm571_vm2, %v562_v24  ;;  %v563_v29 = vmax.f32 %v488_v25, 0.0 }
 0x12a   :  { %587 = vst.msk [vmem:[%s1301_s3 + $0x78] sm:$0xff] %vm571_vm2, %v537_v28  ;;  %613 = vst.msk [vmem:[%s1301_s3 + $0x148] sm:$0xff] %vm571_vm2, %v563_v29 }
 0x12b   :  { %v388_v30 = vpop.f32.mrb[32].mxu0  ;;  %v492_v31 = vpop.f32.mrb[32].mxu1 }
 0x12c   :  { %v389_v32 = vadd.f32 %v1051_v27, %v388_v30  ;;  %v740_v33 = vpop.f32.mrb[33].mxu0  ;;  %v493_v34 = vadd.f32 %v1051_v27, %v492_v31  ;;  %v792_v35 = vpop.f32.mrb[33].mxu1 }
 0x12d   :  { %v391_v36 = vpop.f32.mrb[34].mxu0  ;;  %v495_v37 = vpop.f32.mrb[34].mxu1 }
 0x12e   :  { %v538_v38 = vmax.f32 %v389_v32, 0.0  ;;  %v392_v39 = vadd.f32 %v1051_v27, %v391_v36  ;;  %v741_v40 = vpop.f32.mrb[35].mxu0  ;;  %v564_v41 = vmax.f32 %v493_v34, 0.0  ;;  %v496_v42 = vadd.f32 %v1051_v27, %v495_v37  ;;  %v793_v43 = vpop.f32.mrb[35].mxu1 }
 0x130   :  { %588 = vst.msk [vmem:[%s1301_s3 + $0x80] sm:$0xff] %vm571_vm2, %v538_v38  ;;  %v539_v44 = vmax.f32 %v392_v39, 0.0  ;;  %614 = vst.msk [vmem:[%s1301_s3 + $0x150] sm:$0xff] %vm571_vm2, %v564_v41  ;;  %v565_v45 = vmax.f32 %v496_v42, 0.0 }
 0x132   :  { %589 = vst.msk [vmem:[%s1301_s3 + $0x88] sm:$0xff] %vm571_vm2, %v539_v44  ;;  %615 = vst.msk [vmem:[%s1301_s3 + $0x158] sm:$0xff] %vm571_vm2, %v565_v45 }
 0x133   :  { %v396_v46 = vpop.f32.mrb[36].mxu0  ;;  %v500_v47 = vpop.f32.mrb[36].mxu1 }
 0x134   :  { %v397_v48 = vadd.f32 %v1051_v27, %v396_v46  ;;  %v744_v49 = vpop.f32.mrb[37].mxu0  ;;  %v501_v50 = vadd.f32 %v1051_v27, %v500_v47  ;;  %v796_v51 = vpop.f32.mrb[37].mxu1 }
 0x135   :  { %v399_v52 = vpop.f32.mrb[38].mxu0  ;;  %v503_v53 = vpop.f32.mrb[38].mxu1 }
 0x136   :  { %v540_v54 = vmax.f32 %v397_v48, 0.0  ;;  %v400_v55 = vadd.f32 %v1051_v27, %v399_v52  ;;  %v745_v56 = vpop.f32.mrb[39].mxu0  ;;  %v566_v57 = vmax.f32 %v501_v50, 0.0  ;;  %v504_v58 = vadd.f32 %v1051_v27, %v503_v53  ;;  %v797_v59 = vpop.f32.mrb[39].mxu1 }
 0x138   :  { %590 = vst.msk [vmem:[%s1301_s3 + $0x90] sm:$0xff] %vm571_vm2, %v540_v54  ;;  %v541_v60 = vmax.f32 %v400_v55, 0.0  ;;  %616 = vst.msk [vmem:[%s1301_s3 + $0x160] sm:$0xff] %vm571_vm2, %v566_v57  ;;  %v567_v61 = vmax.f32 %v504_v58, 0.0 }
 0x13a   :  { %591 = vst.msk [vmem:[%s1301_s3 + $0x98] sm:$0xff] %vm571_vm2, %v541_v60  ;;  %617 = vst.msk [vmem:[%s1301_s3 + $0x168] sm:$0xff] %vm571_vm2, %v567_v61 }
 0x13b   :  { %v404_v62 = vpop.f32.mrb[40].mxu0  ;;  %v508_v63 = vpop.f32.mrb[40].mxu1 }
 0x13c   :  { %v405_v0 = vadd.f32 %v1051_v27, %v404_v62  ;;  %v748_v1 = vpop.f32.mrb[41].mxu0  ;;  %v509_v2 = vadd.f32 %v1051_v27, %v508_v63  ;;  %v800_v3 = vpop.f32.mrb[41].mxu1 }
 0x13d   :  { %v407_v4 = vpop.f32.mrb[42].mxu0  ;;  %v511_v5 = vpop.f32.mrb[42].mxu1 }
 0x13e   :  { %v542_v6 = vmax.f32 %v405_v0, 0.0  ;;  %v408_v7 = vadd.f32 %v1051_v27, %v407_v4  ;;  %v749_v8 = vpop.f32.mrb[43].mxu0  ;;  %v568_v9 = vmax.f32 %v509_v2, 0.0  ;;  %v512_v10 = vadd.f32 %v1051_v27, %v511_v5  ;;  %v801_v11 = vpop.f32.mrb[43].mxu1 }
 0x140   :  { %592 = vst.msk [vmem:[%s1301_s3 + $0xa0] sm:$0xff] %vm571_vm2, %v542_v6  ;;  %v543_v12 = vmax.f32 %v408_v7, 0.0  ;;  %618 = vst.msk [vmem:[%s1301_s3 + $0x170] sm:$0xff] %vm571_vm2, %v568_v9  ;;  %v569_v13 = vmax.f32 %v512_v10, 0.0 }
 0x142   :  { %593 = vst.msk [vmem:[%s1301_s3 + $0xa8] sm:$0xff] %vm571_vm2, %v543_v12  ;;  %619 = vst.msk [vmem:[%s1301_s3 + $0x178] sm:$0xff] %vm571_vm2, %v569_v13 }
 0x143   :  { %v412_v14 = vpop.f32.mrb[44].mxu0  ;;  %v516_v15 = vpop.f32.mrb[44].mxu1 }
 0x144   :  { %v413_v16 = vadd.f32 %v1051_v27, %v412_v14  ;;  %v752_v17 = vpop.f32.mrb[45].mxu0  ;;  %v517_v18 = vadd.f32 %v1051_v27, %v516_v15  ;;  %v804_v19 = vpop.f32.mrb[45].mxu1 }
 0x145   :  { %v415_v20 = vpop.f32.mrb[46].mxu0  ;;  %v519_v21 = vpop.f32.mrb[46].mxu1 }
 0x146   :  { %v544_v22 = vmax.f32 %v413_v16, 0.0  ;;  %v416_v23 = vadd.f32 %v1051_v27, %v415_v20  ;;  %v753_v24 = vpop.f32.mrb[47].mxu0  ;;  %v570_v25 = vmax.f32 %v517_v18, 0.0  ;;  %v805_v26 = vpop.f32.mrb[47].mxu1 }
 0x148   :  { %594 = vst.msk [vmem:[%s1301_s3 + $0xb0] sm:$0xff] %vm571_vm2, %v544_v22  ;;  %v545_v28 = vmax.f32 %v416_v23, 0.0  ;;  %620 = vst.msk [vmem:[%s1301_s3 + $0x180] sm:$0xff] %vm571_vm2, %v570_v25 }
 0x14a   :  { %595 = vst.msk [vmem:[%s1301_s3 + $0xb8] sm:$0xff] %vm571_vm2, %v545_v28 }
 0x14b   :  { %v420_v29 = vpop.f32.mrb[48].mxu0 }
 0x14c   :  { %v421_v30 = vadd.f32 %v1051_v27, %v420_v29  ;;  %v756_v31 = vpop.f32.mrb[49].mxu0 }
 0x14d   :  { %v423_v32 = vpop.f32.mrb[50].mxu0 }
 0x14e   :  { %v546_v33 = vmax.f32 %v421_v30, 0.0  ;;  %v424_v34 = vadd.f32 %v1051_v27, %v423_v32  ;;  %v757_v35 = vpop.f32.mrb[51].mxu0 }
 0x150   :  { %596 = vst.msk [vmem:[%s1301_s3 + $0xc0] sm:$0xff] %vm571_vm2, %v546_v33  ;;  %v547_v36 = vmax.f32 %v424_v34, 0.0 }
 0x152   :  { %597 = vst.msk [vmem:[%s1301_s3 + $0xc8] sm:$0xff] %vm571_vm2, %v547_v36 }
 0x153   :  { %625 = vsyncpa [#allocation3], 1 }

// kernel: vae_forward.9
= control target key start
LH: loop header
LB: loop body
LE: loop exit
PB: predicated region body
PF: predicated region fallthrough
CT: control target
= control target key end

     0   :  { %8 = vsyncpa [#allocation3], 0  ;;  %s933_s12 = smov [#allocation2]   ;;  %s1206_s0 = inlined_call_operand.vmem [shape: bf16[98,512], index: 0, kind: input, shape index: {}]   ;;  %s1207_s1 = inlined_call_operand.vmem [shape: bf16[512,64], index: 1, kind: input, shape index: {}]   ;;  %s1208_s2 = inlined_call_operand.hbm [shape: f32[1,64], index: 2, kind: input, shape index: {}]   ;;  %s1209_s3 = inlined_call_operand.vmem [shape: f32[98,64], index: 3, kind: output, shape index: {}]  }
   0x1   :  { %s19_s13 = sshll.u32 %s933_s12, 4  ;;  %s909_s16 = scalar_lea.hbm %s1208_s2, 16  ;;  %s20_s13 = int_to_ptr.vmem [resolvable:$true] %s19_s13 }
   0x2   :  { %p910_p0 = scmp.ne.s32.totalorder %s1208_s2, %s909_s16  ;;  %p913_p1 = scmp.lt.u32.totalorder %s909_s16, %s1208_s2 }
   0x4   :  { %p915_p2 = pnand %p913_p1, %p910_p0 }
   0x6   :  { %918 = shalt.err (!%p915_p2)
}
   0x7   :  { %s919_s21 = scalar_lea.vmem %s20_s13, 16  ;;  %s923_s22 = scalar_lea.vmem %s20_s13, 32 }
   0x8   :  { %p920_p3 = scmp.ne.s32.totalorder %s20_s13, %s919_s21  ;;  %p924_p4 = scmp.lt.s32.totalorder %s20_s13, %s20_s13 }
   0x9   :  { %p925_p5 = scmp.lt.s32.totalorder %s923_s22, %s919_s21 }
   0xb   :  { %p926_p6 = por %p925_p5, %p924_p4 }
   0xd   :  { %p927_p7 = pnand %p926_p6, %p920_p3 }
   0xf   :  { %930 = shalt.err (!%p927_p7)
}
  0x10   :  { %22 = dma.hbm_to_vmem [thread:$0]  %s1208_s2, 16, %s20_s13, [#allocation3]  }
  0x11   :  { %931 = dma.done.wait [#allocation3], 16  }
  0x12   :  { %932 = vsyncadd [#allocation3], 4294967280  ;;  %v837_v0 = vld [vmem:[%s1207_s1 + $0x40] sm:$0xff]   ;;  %v841_v4 = vld [vmem:[%s1207_s1 + $0x48] sm:$0xff]   ;;  %vm639_vm0 = vcmask 523264   ;;  %vm652_vm1 = vcmask 517120  }
  0x13   :  { %v838_v1 = vld [vmem:[%s1207_s1 + $0xc0] sm:$0xff]   ;;  %720 = vmatprep.subr.bf16.mxu0 %v837_v0  ;;  %v842_v5 = vld [vmem:[%s1207_s1 + $0xc8] sm:$0xff]   ;;  %v845_v8 = vld [vmem:[%s1207_s1 + $0x50] sm:$0xff]  }
  0x14   :  { %v839_v2 = vld [vmem:[%s1207_s1] sm:$0xff]   ;;  %778 = vmatprep.subr.bf16.mxu1 %v838_v1  ;;  %v843_v6 = vld [vmem:[%s1207_s1 + $0x8] sm:$0xff]   ;;  %v846_v9 = vld [vmem:[%s1207_s1 + $0xd0] sm:$0xff]  }
  0x15   :  { %v840_v3 = vld [vmem:[%s1207_s1 + $0x80] sm:$0xff]   ;;  %721 = vmatpush3.bf16.msra.mxu0 %v839_v2  ;;  %v844_v7 = vld [vmem:[%s1207_s1 + $0x88] sm:$0xff]   ;;  %v847_v10 = vld [vmem:[%s1207_s1 + $0x10] sm:$0xff]  }
  0x16   :  { %779 = vmatpush3.bf16.msra.mxu1 %v840_v3  ;;  %722 = vmatprep.subr.bf16.mxu0 %v841_v4  ;;  %v848_v11 = vld [vmem:[%s1207_s1 + $0x90] sm:$0xff]   ;;  %v849_v12 = vld [vmem:[%s1207_s1 + $0x58] sm:$0xff]   ;;  %v853_v16 = vld [vmem:[%s1207_s1 + $0x60] sm:$0xff]  }
  0x17   :  { %780 = vmatprep.subr.bf16.mxu1 %v842_v5  ;;  %v850_v13 = vld [vmem:[%s1207_s1 + $0xd8] sm:$0xff]   ;;  %v854_v17 = vld [vmem:[%s1207_s1 + $0xe0] sm:$0xff]   ;;  %v857_v20 = vld [vmem:[%s1207_s1 + $0x68] sm:$0xff]  }
  0x18   :  { %v851_v14 = vld [vmem:[%s1207_s1 + $0x18] sm:$0xff]   ;;  %v855_v18 = vld [vmem:[%s1207_s1 + $0x20] sm:$0xff]   ;;  %v858_v21 = vld [vmem:[%s1207_s1 + $0xe8] sm:$0xff]  }
  0x19   :  { %723 = vmatpush3.bf16.msra.mxu0 %v843_v6  ;;  %v852_v15 = vld [vmem:[%s1207_s1 + $0x98] sm:$0xff]   ;;  %v856_v19 = vld [vmem:[%s1207_s1 + $0xa0] sm:$0xff]   ;;  %v859_v22 = vld [vmem:[%s1207_s1 + $0x28] sm:$0xff]  }
  0x1a   :  { %781 = vmatpush3.bf16.msra.mxu1 %v844_v7  ;;  %724 = vmatprep.subr.bf16.mxu0 %v845_v8  ;;  %v860_v23 = vld [vmem:[%s1207_s1 + $0xa8] sm:$0xff]   ;;  %v861_v24 = vld [vmem:[%s1207_s1 + $0x70] sm:$0xff]   ;;  %v865_v28 = vld [vmem:[%s1207_s1 + $0x78] sm:$0xff]  }
  0x1b   :  { %782 = vmatprep.subr.bf16.mxu1 %v846_v9  ;;  %v862_v25 = vld [vmem:[%s1207_s1 + $0xf0] sm:$0xff]   ;;  %v866_v29 = vld [vmem:[%s1207_s1 + $0xf8] sm:$0xff]   ;;  %v51_v54 = vld [vmem:[%s1206_s0 + $0xc0] sm:$0x11] }
  0x1c   :  { %v863_v26 = vld [vmem:[%s1207_s1 + $0x30] sm:$0xff]   ;;  %v867_v30 = vld [vmem:[%s1207_s1 + $0x38] sm:$0xff]   ;;  %v52_v55 = vld [vmem:[%s1206_s0 + $0xc8] sm:$0x11]  ;;  %v685_v58 = vcombine.high %v51_v54, %v51_v54  ;;  %v684_v60 = vcombine.low %v51_v54, %v51_v54 }
  0x1d   :  { %725 = vmatpush3.bf16.msra.mxu0 %v847_v10  ;;  %v864_v27 = vld [vmem:[%s1207_s1 + $0xb0] sm:$0xff]   ;;  %v868_v31 = vld [vmem:[%s1207_s1 + $0xb8] sm:$0xff]   ;;  %v687_v59 = vcombine.high %v52_v55, %v52_v55  ;;  %v686_v61 = vcombine.low %v52_v55, %v52_v55  ;;  %v1140_v0 = vld [vmem:[#allocation2] ss:$0 sm:$0xff] }
  0x1e   :  { %783 = vmatpush3.bf16.msra.mxu1 %v848_v11  ;;  %726 = vmatprep.subr.bf16.mxu0 %v849_v12  ;;  %v869_v32 = vld [vmem:[%s1206_s0] ss:$16 sps:$4 sm:$0xff]   ;;  %v871_v33 = vld [vmem:[%s1206_s0 + $0x4] ss:$16 sps:$4 sm:$0xff]   ;;  %v872_v34 = vld [vmem:[%s1206_s0 + $0x8] ss:$16 sps:$4 sm:$0xff]  }
  0x1f   :  { %784 = vmatprep.subr.bf16.mxu1 %v850_v13  ;;  %v874_v35 = vld [vmem:[%s1206_s0 + $0xc] ss:$16 sps:$4 sm:$0xff]   ;;  %482 = vmatprep.mubr.bf16.mxu0 %v871_v33  ;;  %v875_v36 = vld [vmem:[%s1206_s0 + $0x24] ss:$16 sps:$4 sm:$0xff]   ;;  %v879_v38 = vld [vmem:[%s1206_s0 + $0x20] ss:$16 sps:$4 sm:$0xff]  }
  0x20   :  { %570 = vmatprep.mubr.bf16.mxu1 %v874_v35  ;;  %v877_v37 = vld [vmem:[%s1206_s0 + $0x2c] ss:$16 sps:$4 sm:$0xff]   ;;  %v880_v39 = vld [vmem:[%s1206_s0 + $0x28] ss:$16 sps:$4 sm:$0xff]   ;;  %v881_v40 = vld [vmem:[%s1206_s0 + $0x44] ss:$16 sps:$4 sm:$0xff]  }
  0x21   :  { %727 = vmatpush3.bf16.msra.mxu0 %v851_v14  ;;  %v883_v41 = vld [vmem:[%s1206_s0 + $0x4c] ss:$16 sps:$4 sm:$0xff]   ;;  %v885_v42 = vld [vmem:[%s1206_s0 + $0x40] ss:$16 sps:$4 sm:$0xff]   ;;  %v886_v43 = vld [vmem:[%s1206_s0 + $0x48] ss:$16 sps:$4 sm:$0xff]  }
  0x22   :  { %785 = vmatpush3.bf16.msra.mxu1 %v852_v15  ;;  %728 = vmatprep.subr.bf16.mxu0 %v853_v16  ;;  %v887_v44 = vld [vmem:[%s1206_s0 + $0x64] ss:$16 sps:$4 sm:$0xff]   ;;  %v889_v45 = vld [vmem:[%s1206_s0 + $0x6c] ss:$16 sps:$4 sm:$0xff]   ;;  %v891_v46 = vld [vmem:[%s1206_s0 + $0x60] ss:$16 sps:$4 sm:$0xff]  }
  0x23   :  { %786 = vmatprep.subr.bf16.mxu1 %v854_v17  ;;  %v892_v47 = vld [vmem:[%s1206_s0 + $0x68] ss:$16 sps:$4 sm:$0xff]   ;;  %v893_v48 = vld [vmem:[%s1206_s0 + $0x84] ss:$16 sps:$4 sm:$0xff]   ;;  %v895_v49 = vld [vmem:[%s1206_s0 + $0x8c] ss:$16 sps:$4 sm:$0xff]  }
  0x24   :  { %v897_v50 = vld [vmem:[%s1206_s0 + $0x80] ss:$16 sps:$4 sm:$0xff]   ;;  %v898_v51 = vld [vmem:[%s1206_s0 + $0x88] ss:$16 sps:$4 sm:$0xff]   ;;  %v899_v52 = vld [vmem:[%s1206_s0 + $0xa4] ss:$16 sps:$4 sm:$0xff]  }
  0x25   :  { %729 = vmatpush3.bf16.msra.mxu0 %v855_v18  ;;  %v901_v53 = vld [vmem:[%s1206_s0 + $0xac] ss:$16 sps:$4 sm:$0xff]   ;;  %v903_v56 = vld [vmem:[%s1206_s0 + $0xa0] ss:$16 sps:$4 sm:$0xff]   ;;  %v904_v57 = vld [vmem:[%s1206_s0 + $0xa8] ss:$16 sps:$4 sm:$0xff]  }
  0x26   :  { %787 = vmatpush3.bf16.msra.mxu1 %v856_v19  ;;  %730 = vmatprep.subr.bf16.mxu0 %v857_v20 }
  0x27   :  { %788 = vmatprep.subr.bf16.mxu1 %v858_v21 }
  0x29   :  { %731 = vmatpush3.bf16.msra.mxu0 %v859_v22 }
  0x2a   :  { %789 = vmatpush3.bf16.msra.mxu1 %v860_v23  ;;  %732 = vmatprep.subr.bf16.mxu0 %v861_v24 }
  0x2b   :  { %790 = vmatprep.subr.bf16.mxu1 %v862_v25 }
  0x2d   :  { %733 = vmatpush3.bf16.msra.mxu0 %v863_v26 }
  0x2e   :  { %791 = vmatpush3.bf16.msra.mxu1 %v864_v27  ;;  %734 = vmatprep.subr.bf16.mxu0 %v865_v28 }
  0x2f   :  { %792 = vmatprep.subr.bf16.mxu1 %v866_v29 }
  0x31   :  { %735 = vmatpush3.bf16.msra.mxu0 %v867_v30 }
  0x32   :  { %793 = vmatpush3.bf16.msra.mxu1 %v868_v31 }
  0x34   :  { %483 = vmatmul.mubr.bf16.vlgmr.msra.gmra.mrb[0].mxu0 %v869_v32 }
  0x35   :  { %571 = vmatmul.mubr.bf16.vlgmr.msra.gmra.mrb[0].mxu1 %v872_v34  ;;  %490 = vmatprep.mubr.bf16.mxu0 %v875_v36 }
  0x36   :  { %578 = vmatprep.mubr.bf16.mxu1 %v877_v37 }
  0x3c   :  { %491 = vmatmul.mubr.bf16.gmra.mrb[4].mxu0 %v879_v38 }
  0x3d   :  { %579 = vmatmul.mubr.bf16.gmra.mrb[4].mxu1 %v880_v39  ;;  %498 = vmatprep.mubr.bf16.mxu0 %v881_v40 }
  0x3e   :  { %586 = vmatprep.mubr.bf16.mxu1 %v883_v41 }
  0x44   :  { %499 = vmatmul.mubr.bf16.gmra.mrb[8].mxu0 %v885_v42 }
  0x45   :  { %587 = vmatmul.mubr.bf16.gmra.mrb[8].mxu1 %v886_v43  ;;  %506 = vmatprep.mubr.bf16.mxu0 %v887_v44 }
  0x46   :  { %594 = vmatprep.mubr.bf16.mxu1 %v889_v45 }
  0x4c   :  { %507 = vmatmul.mubr.bf16.gmra.mrb[12].mxu0 %v891_v46 }
  0x4d   :  { %595 = vmatmul.mubr.bf16.gmra.mrb[12].mxu1 %v892_v47  ;;  %514 = vmatprep.mubr.bf16.mxu0 %v893_v48 }
  0x4e   :  { %602 = vmatprep.mubr.bf16.mxu1 %v895_v49 }
  0x54   :  { %515 = vmatmul.mubr.bf16.gmra.mrb[16].mxu0 %v897_v50 }
  0x55   :  { %603 = vmatmul.mubr.bf16.gmra.mrb[16].mxu1 %v898_v51  ;;  %522 = vmatprep.mubr.bf16.mxu0 %v899_v52 }
  0x56   :  { %610 = vmatprep.mubr.bf16.mxu1 %v901_v53 }
  0x5c   :  { %523 = vmatmul.mubr.bf16.gmra.mrb[20].mxu0 %v903_v56 }
  0x5d   :  { %611 = vmatmul.mubr.bf16.gmra.mrb[20].mxu1 %v904_v57  ;;  %530 = vmatprep.mubr.bf16.mxu0 %v685_v58 }
  0x5e   :  { %618 = vmatprep.mubr.bf16.mxu1 %v687_v59 }
  0x64   :  { %531 = vmatmul.mubr.bf16.gmra.mrb[24].mxu0 %v684_v60 }
  0x65   :  { %619 = vmatmul.mubr.bf16.gmra.mrb[24].mxu1 %v686_v61 }
 0x107   :  { %v736_v62 = vpop.f32.mrb[0].mxu0 }
 0x108   :  { %v794_v63 = vpop.f32.mrb[0].mxu1  ;;  %v737_v1 = vpop.f32.mrb[1].mxu0 }
 0x109   :  { %v738_v2 = vadd.f32 %v737_v1, %v736_v62  ;;  %v795_v3 = vpop.f32.mrb[1].mxu1  ;;  %v739_v4 = vpop.f32.mrb[2].mxu0 }
 0x10a   :  { %v796_v5 = vadd.f32 %v795_v3, %v794_v63  ;;  %v797_v6 = vpop.f32.mrb[2].mxu1  ;;  %v740_v7 = vpop.f32.mrb[3].mxu0 }
 0x10b   :  { %v485_v8 = vadd.f32 %v738_v2, %v1140_v0  ;;  %v741_v9 = vadd.f32 %v740_v7, %v739_v4  ;;  %v798_v10 = vpop.f32.mrb[3].mxu1 }
 0x10c   :  { %v799_v11 = vadd.f32 %v798_v10, %v797_v6 }
 0x10d   :  { %v573_v12 = vadd.f32 %v796_v5, %v485_v8  ;;  %v488_v13 = vadd.f32 %v741_v9, %v1140_v0 }
 0x10f   :  { %v626_v14 = vmax.f32 %v573_v12, 0.0  ;;  %v576_v15 = vadd.f32 %v799_v11, %v488_v13  ;;  %v742_v16 = vpop.f32.mrb[4].mxu0 }
 0x110   :  { %v800_v17 = vpop.f32.mrb[4].mxu1  ;;  %v743_v18 = vpop.f32.mrb[5].mxu0 }
 0x111   :  { %640 = vst.msk [vmem:[%s1209_s3] sm:$0xff] %vm639_vm0, %v626_v14  ;;  %v627_v19 = vmax.f32 %v576_v15, 0.0  ;;  %v744_v20 = vadd.f32 %v743_v18, %v742_v16  ;;  %v801_v21 = vpop.f32.mrb[5].mxu1  ;;  %v745_v22 = vpop.f32.mrb[6].mxu0 }
 0x112   :  { %v802_v23 = vadd.f32 %v801_v21, %v800_v17  ;;  %v803_v24 = vpop.f32.mrb[6].mxu1  ;;  %v746_v25 = vpop.f32.mrb[7].mxu0 }
 0x113   :  { %641 = vst.msk [vmem:[%s1209_s3 + $0x8] sm:$0xff] %vm639_vm0, %v627_v19  ;;  %v493_v26 = vadd.f32 %v744_v20, %v1140_v0  ;;  %v747_v27 = vadd.f32 %v746_v25, %v745_v22  ;;  %v804_v28 = vpop.f32.mrb[7].mxu1 }
 0x114   :  { %v805_v29 = vadd.f32 %v804_v28, %v803_v24 }
 0x115   :  { %v581_v30 = vadd.f32 %v802_v23, %v493_v26  ;;  %v496_v31 = vadd.f32 %v747_v27, %v1140_v0 }
 0x117   :  { %v628_v32 = vmax.f32 %v581_v30, 0.0  ;;  %v584_v33 = vadd.f32 %v805_v29, %v496_v31  ;;  %v748_v34 = vpop.f32.mrb[8].mxu0 }
 0x118   :  { %v806_v35 = vpop.f32.mrb[8].mxu1  ;;  %v749_v36 = vpop.f32.mrb[9].mxu0 }
 0x119   :  { %642 = vst.msk [vmem:[%s1209_s3 + $0x10] sm:$0xff] %vm639_vm0, %v628_v32  ;;  %v629_v37 = vmax.f32 %v584_v33, 0.0  ;;  %v750_v38 = vadd.f32 %v749_v36, %v748_v34  ;;  %v807_v39 = vpop.f32.mrb[9].mxu1  ;;  %v751_v40 = vpop.f32.mrb[10].mxu0 }
 0x11a   :  { %v808_v41 = vadd.f32 %v807_v39, %v806_v35  ;;  %v809_v42 = vpop.f32.mrb[10].mxu1  ;;  %v752_v43 = vpop.f32.mrb[11].mxu0 }
 0x11b   :  { %643 = vst.msk [vmem:[%s1209_s3 + $0x18] sm:$0xff] %vm639_vm0, %v629_v37  ;;  %v501_v44 = vadd.f32 %v750_v38, %v1140_v0  ;;  %v753_v45 = vadd.f32 %v752_v43, %v751_v40  ;;  %v810_v46 = vpop.f32.mrb[11].mxu1 }
 0x11c   :  { %v811_v47 = vadd.f32 %v810_v46, %v809_v42 }
 0x11d   :  { %v589_v48 = vadd.f32 %v808_v41, %v501_v44  ;;  %v504_v49 = vadd.f32 %v753_v45, %v1140_v0 }
 0x11f   :  { %v630_v50 = vmax.f32 %v589_v48, 0.0  ;;  %v592_v51 = vadd.f32 %v811_v47, %v504_v49  ;;  %v754_v52 = vpop.f32.mrb[12].mxu0 }
 0x120   :  { %v812_v53 = vpop.f32.mrb[12].mxu1  ;;  %v755_v54 = vpop.f32.mrb[13].mxu0 }
 0x121   :  { %644 = vst.msk [vmem:[%s1209_s3 + $0x20] sm:$0xff] %vm639_vm0, %v630_v50  ;;  %v631_v55 = vmax.f32 %v592_v51, 0.0  ;;  %v756_v56 = vadd.f32 %v755_v54, %v754_v52  ;;  %v813_v57 = vpop.f32.mrb[13].mxu1  ;;  %v757_v58 = vpop.f32.mrb[14].mxu0 }
 0x122   :  { %v814_v59 = vadd.f32 %v813_v57, %v812_v53  ;;  %v815_v60 = vpop.f32.mrb[14].mxu1  ;;  %v758_v61 = vpop.f32.mrb[15].mxu0 }
 0x123   :  { %645 = vst.msk [vmem:[%s1209_s3 + $0x28] sm:$0xff] %vm639_vm0, %v631_v55  ;;  %v509_v62 = vadd.f32 %v756_v56, %v1140_v0  ;;  %v759_v63 = vadd.f32 %v758_v61, %v757_v58  ;;  %v816_v1 = vpop.f32.mrb[15].mxu1 }
 0x124   :  { %v817_v2 = vadd.f32 %v816_v1, %v815_v60 }
 0x125   :  { %v597_v3 = vadd.f32 %v814_v59, %v509_v62  ;;  %v512_v4 = vadd.f32 %v759_v63, %v1140_v0 }
 0x127   :  { %v632_v5 = vmax.f32 %v597_v3, 0.0  ;;  %v600_v6 = vadd.f32 %v817_v2, %v512_v4  ;;  %v760_v7 = vpop.f32.mrb[16].mxu0 }
 0x128   :  { %v818_v8 = vpop.f32.mrb[16].mxu1  ;;  %v761_v9 = vpop.f32.mrb[17].mxu0 }
 0x129   :  { %646 = vst.msk [vmem:[%s1209_s3 + $0x30] sm:$0xff] %vm639_vm0, %v632_v5  ;;  %v633_v10 = vmax.f32 %v600_v6, 0.0  ;;  %v762_v11 = vadd.f32 %v761_v9, %v760_v7  ;;  %v819_v12 = vpop.f32.mrb[17].mxu1  ;;  %v763_v13 = vpop.f32.mrb[18].mxu0 }
 0x12a   :  { %v820_v14 = vadd.f32 %v819_v12, %v818_v8  ;;  %v821_v15 = vpop.f32.mrb[18].mxu1  ;;  %v764_v16 = vpop.f32.mrb[19].mxu0 }
 0x12b   :  { %647 = vst.msk [vmem:[%s1209_s3 + $0x38] sm:$0xff] %vm639_vm0, %v633_v10  ;;  %v517_v17 = vadd.f32 %v762_v11, %v1140_v0  ;;  %v765_v18 = vadd.f32 %v764_v16, %v763_v13  ;;  %v822_v19 = vpop.f32.mrb[19].mxu1 }
 0x12c   :  { %v823_v20 = vadd.f32 %v822_v19, %v821_v15 }
 0x12d   :  { %v605_v21 = vadd.f32 %v820_v14, %v517_v17  ;;  %v520_v22 = vadd.f32 %v765_v18, %v1140_v0 }
 0x12f   :  { %v634_v23 = vmax.f32 %v605_v21, 0.0  ;;  %v608_v24 = vadd.f32 %v823_v20, %v520_v22  ;;  %v766_v25 = vpop.f32.mrb[20].mxu0 }
 0x130   :  { %v824_v26 = vpop.f32.mrb[20].mxu1  ;;  %v767_v27 = vpop.f32.mrb[21].mxu0 }
 0x131   :  { %648 = vst.msk [vmem:[%s1209_s3 + $0x40] sm:$0xff] %vm639_vm0, %v634_v23  ;;  %v635_v28 = vmax.f32 %v608_v24, 0.0  ;;  %v768_v29 = vadd.f32 %v767_v27, %v766_v25  ;;  %v825_v30 = vpop.f32.mrb[21].mxu1  ;;  %v769_v31 = vpop.f32.mrb[22].mxu0 }
 0x132   :  { %v826_v32 = vadd.f32 %v825_v30, %v824_v26  ;;  %v827_v33 = vpop.f32.mrb[22].mxu1  ;;  %v770_v34 = vpop.f32.mrb[23].mxu0 }
 0x133   :  { %649 = vst.msk [vmem:[%s1209_s3 + $0x48] sm:$0xff] %vm639_vm0, %v635_v28  ;;  %v525_v35 = vadd.f32 %v768_v29, %v1140_v0  ;;  %v771_v36 = vadd.f32 %v770_v34, %v769_v31  ;;  %v828_v37 = vpop.f32.mrb[23].mxu1 }
 0x134   :  { %v829_v38 = vadd.f32 %v828_v37, %v827_v33 }
 0x135   :  { %v613_v39 = vadd.f32 %v826_v32, %v525_v35  ;;  %v528_v40 = vadd.f32 %v771_v36, %v1140_v0 }
 0x137   :  { %v636_v41 = vmax.f32 %v613_v39, 0.0  ;;  %v616_v42 = vadd.f32 %v829_v38, %v528_v40  ;;  %v772_v43 = vpop.f32.mrb[24].mxu0 }
 0x138   :  { %v830_v44 = vpop.f32.mrb[24].mxu1  ;;  %v773_v45 = vpop.f32.mrb[25].mxu0 }
 0x139   :  { %650 = vst.msk [vmem:[%s1209_s3 + $0x50] sm:$0xff] %vm639_vm0, %v636_v41  ;;  %v637_v46 = vmax.f32 %v616_v42, 0.0  ;;  %v774_v47 = vadd.f32 %v773_v45, %v772_v43  ;;  %v831_v48 = vpop.f32.mrb[25].mxu1  ;;  %v775_v49 = vpop.f32.mrb[26].mxu0 }
 0x13a   :  { %v832_v50 = vadd.f32 %v831_v48, %v830_v44  ;;  %v833_v51 = vpop.f32.mrb[26].mxu1  ;;  %v776_v52 = vpop.f32.mrb[27].mxu0 }
 0x13b   :  { %651 = vst.msk [vmem:[%s1209_s3 + $0x58] sm:$0xff] %vm639_vm0, %v637_v46  ;;  %v533_v53 = vadd.f32 %v774_v47, %v1140_v0  ;;  %v834_v54 = vpop.f32.mrb[27].mxu1 }
 0x13d   :  { %v621_v55 = vadd.f32 %v832_v50, %v533_v53 }
 0x13f   :  { %v638_v56 = vmax.f32 %v621_v55, 0.0 }
 0x141   :  { %653 = vst.msk [vmem:[%s1209_s3 + $0x60] sm:$0x3] %vm652_vm1, %v638_v56 }
 0x142   :  { %658 = vsyncpa [#allocation3], 1 }

// kernel: vae_forward.10
= control target key start
LH: loop header
LB: loop body
LE: loop exit
PB: predicated region body
PF: predicated region fallthrough
CT: control target
= control target key end

     0   :  { %s1341_s1 = inlined_call_operand.vmem [shape: bf16[1024,128], index: 1, kind: input, shape index: {}]   ;;  %s1342_s0 = inlined_call_operand.vmem [shape: bf16[18,1024], index: 0, kind: input, shape index: {}]   ;;  %s1343_s2 = inlined_call_operand.vmem [shape: f32[1,128], index: 2, kind: input, shape index: {}]   ;;  %s1344_s3 = inlined_call_operand.vmem [shape: f32[18,128], index: 3, kind: output, shape index: {}]  }
   0x1   :  { %v1009_v0 = vld [vmem:[%s1341_s1 + $0x40] sm:$0xff]   ;;  %v1013_v4 = vld [vmem:[%s1341_s1 + $0x48] sm:$0xff]   ;;  %v1017_v8 = vld [vmem:[%s1341_s1 + $0x50] sm:$0xff]  }
   0x2   :  { %v1010_v1 = vld [vmem:[%s1341_s1 + $0xc0] sm:$0xff]   ;;  %897 = vmatprep.subr.bf16.mxu0 %v1009_v0  ;;  %v1014_v5 = vld [vmem:[%s1341_s1 + $0xc8] sm:$0xff]   ;;  %v1018_v9 = vld [vmem:[%s1341_s1 + $0xd0] sm:$0xff]  }
   0x3   :  { %v1011_v2 = vld [vmem:[%s1341_s1] sm:$0xff]   ;;  %925 = vmatprep.subr.bf16.mxu1 %v1010_v1  ;;  %v1015_v6 = vld [vmem:[%s1341_s1 + $0x8] sm:$0xff]   ;;  %v1019_v10 = vld [vmem:[%s1341_s1 + $0x10] sm:$0xff]  }
   0x4   :  { %v1012_v3 = vld [vmem:[%s1341_s1 + $0x80] sm:$0xff]   ;;  %898 = vmatpush3.bf16.msra.mxu0 %v1011_v2  ;;  %v1016_v7 = vld [vmem:[%s1341_s1 + $0x88] sm:$0xff]   ;;  %v1020_v11 = vld [vmem:[%s1341_s1 + $0x90] sm:$0xff]  }
   0x5   :  { %926 = vmatpush3.bf16.msra.mxu1 %v1012_v3  ;;  %899 = vmatprep.subr.bf16.mxu0 %v1013_v4  ;;  %v1021_v12 = vld [vmem:[%s1341_s1 + $0x58] sm:$0xff]   ;;  %v1025_v16 = vld [vmem:[%s1341_s1 + $0x60] sm:$0xff]   ;;  %v1029_v20 = vld [vmem:[%s1341_s1 + $0x68] sm:$0xff]  }
   0x6   :  { %927 = vmatprep.subr.bf16.mxu1 %v1014_v5  ;;  %v1022_v13 = vld [vmem:[%s1341_s1 + $0xd8] sm:$0xff]   ;;  %v1026_v17 = vld [vmem:[%s1341_s1 + $0xe0] sm:$0xff]   ;;  %v1030_v21 = vld [vmem:[%s1341_s1 + $0xe8] sm:$0xff]  }
   0x7   :  { %v1023_v14 = vld [vmem:[%s1341_s1 + $0x18] sm:$0xff]   ;;  %v1027_v18 = vld [vmem:[%s1341_s1 + $0x20] sm:$0xff]   ;;  %v1031_v22 = vld [vmem:[%s1341_s1 + $0x28] sm:$0xff]  }
   0x8   :  { %900 = vmatpush3.bf16.msra.mxu0 %v1015_v6  ;;  %v1024_v15 = vld [vmem:[%s1341_s1 + $0x98] sm:$0xff]   ;;  %v1028_v19 = vld [vmem:[%s1341_s1 + $0xa0] sm:$0xff]   ;;  %v1032_v23 = vld [vmem:[%s1341_s1 + $0xa8] sm:$0xff]  }
   0x9   :  { %928 = vmatpush3.bf16.msra.mxu1 %v1016_v7  ;;  %901 = vmatprep.subr.bf16.mxu0 %v1017_v8  ;;  %v1033_v24 = vld [vmem:[%s1341_s1 + $0x70] sm:$0xff]   ;;  %v1037_v28 = vld [vmem:[%s1341_s1 + $0x78] sm:$0xff]   ;;  %v15_v32 = vld [vmem:[%s1342_s0] sm:$0xff] }
   0xa   :  { %929 = vmatprep.subr.bf16.mxu1 %v1018_v9  ;;  %v1034_v25 = vld [vmem:[%s1341_s1 + $0xf0] sm:$0xff]   ;;  %v1038_v29 = vld [vmem:[%s1341_s1 + $0xf8] sm:$0xff]   ;;  %v19_v33 = vld [vmem:[%s1342_s0 + $0x20] sm:$0xff] }
   0xb   :  { %v1035_v26 = vld [vmem:[%s1341_s1 + $0x30] sm:$0xff]   ;;  %v1039_v30 = vld [vmem:[%s1341_s1 + $0x38] sm:$0xff]   ;;  %v16_v34 = vld [vmem:[%s1342_s0 + $0x8] sm:$0xff]  ;;  %v817_v35 = vcombine.low %v15_v32, %v19_v33  ;;  %v818_v36 = vcombine.high %v15_v32, %v19_v33 }
   0xc   :  { %902 = vmatpush3.bf16.msra.mxu0 %v1019_v10  ;;  %v1036_v27 = vld [vmem:[%s1341_s1 + $0xb0] sm:$0xff]   ;;  %v1040_v31 = vld [vmem:[%s1341_s1 + $0xb8] sm:$0xff]   ;;  %v20_v37 = vld [vmem:[%s1342_s0 + $0x28] sm:$0xff] }
   0xd   :  { %930 = vmatpush3.bf16.msra.mxu1 %v1020_v11  ;;  %903 = vmatprep.subr.bf16.mxu0 %v1021_v12  ;;  %v819_v38 = vcombine.low %v16_v34, %v20_v37  ;;  %v820_v39 = vcombine.high %v16_v34, %v20_v37  ;;  %v1041_v40 = vld [vmem:[%s1341_s1 + $0x140] sm:$0xff]   ;;  %v1045_v44 = vld [vmem:[%s1341_s1 + $0x148] sm:$0xff]   ;;  %v1049_v48 = vld [vmem:[%s1341_s1 + $0x150] sm:$0xff]  }
   0xe   :  { %931 = vmatprep.subr.bf16.mxu1 %v1022_v13  ;;  %646 = vmatprep.mubr.bf16.mxu0 %v818_v36  ;;  %v1042_v41 = vld [vmem:[%s1341_s1 + $0x1c0] sm:$0xff]   ;;  %v1046_v45 = vld [vmem:[%s1341_s1 + $0x1c8] sm:$0xff]   ;;  %v1050_v49 = vld [vmem:[%s1341_s1 + $0x1d0] sm:$0xff]  }
   0xf   :  { %694 = vmatprep.mubr.bf16.mxu1 %v820_v39  ;;  %v1043_v42 = vld [vmem:[%s1341_s1 + $0x100] sm:$0xff]   ;;  %v1047_v46 = vld [vmem:[%s1341_s1 + $0x108] sm:$0xff]   ;;  %v1051_v50 = vld [vmem:[%s1341_s1 + $0x110] sm:$0xff]  }
  0x10   :  { %904 = vmatpush3.bf16.msra.mxu0 %v1023_v14  ;;  %v1044_v43 = vld [vmem:[%s1341_s1 + $0x180] sm:$0xff]   ;;  %v1048_v47 = vld [vmem:[%s1341_s1 + $0x188] sm:$0xff]   ;;  %v1052_v51 = vld [vmem:[%s1341_s1 + $0x190] sm:$0xff]  }
  0x11   :  { %932 = vmatpush3.bf16.msra.mxu1 %v1024_v15  ;;  %905 = vmatprep.subr.bf16.mxu0 %v1025_v16  ;;  %v1053_v52 = vld [vmem:[%s1341_s1 + $0x158] sm:$0xff]   ;;  %v1057_v56 = vld [vmem:[%s1341_s1 + $0x160] sm:$0xff]   ;;  %v1062_v62 = vld [vmem:[%s1341_s1 + $0x168] sm:$0xff]  }
  0x12   :  { %933 = vmatprep.subr.bf16.mxu1 %v1026_v17  ;;  %v1054_v53 = vld [vmem:[%s1341_s1 + $0x1d8] sm:$0xff]   ;;  %v1058_v57 = vld [vmem:[%s1341_s1 + $0x1e0] sm:$0xff]   ;;  %v1063_v0 = vld [vmem:[%s1341_s1 + $0x1e8] sm:$0xff]  }
  0x13   :  { %v1055_v54 = vld [vmem:[%s1341_s1 + $0x118] sm:$0xff]   ;;  %v1059_v58 = vld [vmem:[%s1341_s1 + $0x120] sm:$0xff]   ;;  %v1065_v1 = vld [vmem:[%s1341_s1 + $0x128] sm:$0xff]  }
  0x14   :  { %906 = vmatpush3.bf16.msra.mxu0 %v1027_v18  ;;  %v1056_v55 = vld [vmem:[%s1341_s1 + $0x198] sm:$0xff]   ;;  %v1060_v59 = vld [vmem:[%s1341_s1 + $0x1a0] sm:$0xff]   ;;  %v1066_v2 = vld [vmem:[%s1341_s1 + $0x1a8] sm:$0xff]  }
  0x15   :  { %934 = vmatpush3.bf16.msra.mxu1 %v1028_v19  ;;  %907 = vmatprep.subr.bf16.mxu0 %v1029_v20  ;;  %v23_v60 = vld [vmem:[%s1342_s0 + $0x40] sm:$0x11]  ;;  %v24_v3 = vld [vmem:[%s1342_s0 + $0x48] sm:$0x11]  ;;  %v1069_v6 = vld [vmem:[%s1341_s1 + $0x170] sm:$0xff]  }
  0x16   :  { %935 = vmatprep.subr.bf16.mxu1 %v1030_v21  ;;  %v826_v61 = vcombine.high %v23_v60, %v23_v60  ;;  %v825_v63 = vcombine.low %v23_v60, %v23_v60  ;;  %v828_v4 = vcombine.high %v24_v3, %v24_v3  ;;  %v827_v5 = vcombine.low %v24_v3, %v24_v3  ;;  %v1070_v7 = vld [vmem:[%s1341_s1 + $0x1f0] sm:$0xff]   ;;  %v1073_v10 = vld [vmem:[%s1341_s1 + $0x178] sm:$0xff]  }
  0x17   :  { %v1071_v8 = vld [vmem:[%s1341_s1 + $0x130] sm:$0xff]   ;;  %v1074_v11 = vld [vmem:[%s1341_s1 + $0x1f8] sm:$0xff]  }
  0x18   :  { %908 = vmatpush3.bf16.msra.mxu0 %v1031_v22  ;;  %v1072_v9 = vld [vmem:[%s1341_s1 + $0x1b0] sm:$0xff]   ;;  %v1075_v12 = vld [vmem:[%s1341_s1 + $0x138] sm:$0xff]  }
  0x19   :  { %936 = vmatpush3.bf16.msra.mxu1 %v1032_v23  ;;  %909 = vmatprep.subr.bf16.mxu0 %v1033_v24  ;;  %v1076_v13 = vld [vmem:[%s1341_s1 + $0x1b8] sm:$0xff]   ;;  %v17_v14 = vld [vmem:[%s1342_s0 + $0x10] sm:$0xff] }
  0x1a   :  { %937 = vmatprep.subr.bf16.mxu1 %v1034_v25  ;;  %v21_v15 = vld [vmem:[%s1342_s0 + $0x30] sm:$0xff]  ;;  %v18_v16 = vld [vmem:[%s1342_s0 + $0x18] sm:$0xff] }
  0x1b   :  { %v821_v17 = vcombine.low %v17_v14, %v21_v15  ;;  %v822_v18 = vcombine.high %v17_v14, %v21_v15  ;;  %v22_v19 = vld [vmem:[%s1342_s0 + $0x38] sm:$0xff]  ;;  %v25_v20 = vld [vmem:[%s1342_s0 + $0x50] sm:$0x11] }
  0x1c   :  { %910 = vmatpush3.bf16.msra.mxu0 %v1035_v26  ;;  %v26_v21 = vld [vmem:[%s1342_s0 + $0x58] sm:$0x11]  ;;  %v823_v22 = vcombine.low %v18_v16, %v22_v19  ;;  %v824_v23 = vcombine.high %v18_v16, %v22_v19  ;;  %v830_v24 = vcombine.high %v25_v20, %v25_v20  ;;  %v829_v26 = vcombine.low %v25_v20, %v25_v20 }
  0x1d   :  { %938 = vmatpush3.bf16.msra.mxu1 %v1036_v27  ;;  %911 = vmatprep.subr.bf16.mxu0 %v1037_v28  ;;  %v832_v25 = vcombine.high %v26_v21, %v26_v21  ;;  %v831_v27 = vcombine.low %v26_v21, %v26_v21 }
  0x1e   :  { %939 = vmatprep.subr.bf16.mxu1 %v1038_v29 }
  0x20   :  { %912 = vmatpush3.bf16.msra.mxu0 %v1039_v30  ;;  %v816_v30 = vld [vmem:[%s1343_s2] ss:$0 sm:$0xff] }
  0x21   :  { %940 = vmatpush3.bf16.msra.mxu1 %v1040_v31  ;;  %953 = vmatprep.subr.bf16.mxu0 %v1041_v40 }
  0x22   :  { %981 = vmatprep.subr.bf16.mxu1 %v1042_v41 }
  0x23   :  { %647 = vmatmul.mubr.bf16.vlgmr.msra.gmra.mrb[0].mxu0 %v817_v35 }
  0x24   :  { %695 = vmatmul.mubr.bf16.vlgmr.msra.gmra.mrb[0].mxu1 %v819_v38  ;;  %954 = vmatpush3.bf16.msra.mxu0 %v1043_v42 }
  0x25   :  { %982 = vmatpush3.bf16.msra.mxu1 %v1044_v43  ;;  %955 = vmatprep.subr.bf16.mxu0 %v1045_v44 }
  0x26   :  { %983 = vmatprep.subr.bf16.mxu1 %v1046_v45  ;;  %654 = vmatprep.mubr.bf16.mxu0 %v826_v61 }
  0x27   :  { %702 = vmatprep.mubr.bf16.mxu1 %v828_v4 }
  0x28   :  { %956 = vmatpush3.bf16.msra.mxu0 %v1047_v46 }
  0x29   :  { %984 = vmatpush3.bf16.msra.mxu1 %v1048_v47  ;;  %957 = vmatprep.subr.bf16.mxu0 %v1049_v48 }
  0x2a   :  { %985 = vmatprep.subr.bf16.mxu1 %v1050_v49 }
  0x2b   :  { %655 = vmatmul.mubr.bf16.gmra.mrb[4].mxu0 %v825_v63 }
  0x2c   :  { %958 = vmatpush3.bf16.msra.mxu0 %v1051_v50  ;;  %703 = vmatmul.mubr.bf16.gmra.mrb[4].mxu1 %v827_v5 }
  0x2d   :  { %986 = vmatpush3.bf16.msra.mxu1 %v1052_v51  ;;  %959 = vmatprep.subr.bf16.mxu0 %v1053_v52 }
  0x2e   :  { %987 = vmatprep.subr.bf16.mxu1 %v1054_v53  ;;  %742 = vmatprep.mubr.bf16.mxu0 %v822_v18 }
  0x2f   :  { %790 = vmatprep.mubr.bf16.mxu1 %v824_v23 }
  0x30   :  { %960 = vmatpush3.bf16.msra.mxu0 %v1055_v54 }
  0x31   :  { %988 = vmatpush3.bf16.msra.mxu1 %v1056_v55  ;;  %961 = vmatprep.subr.bf16.mxu0 %v1057_v56 }
  0x32   :  { %989 = vmatprep.subr.bf16.mxu1 %v1058_v57 }
  0x34   :  { %962 = vmatpush3.bf16.msra.mxu0 %v1059_v58 }
  0x35   :  { %990 = vmatpush3.bf16.msra.mxu1 %v1060_v59  ;;  %963 = vmatprep.subr.bf16.mxu0 %v1062_v62 }
  0x36   :  { %991 = vmatprep.subr.bf16.mxu1 %v1063_v0 }
  0x38   :  { %964 = vmatpush3.bf16.msra.mxu0 %v1065_v1 }
  0x39   :  { %992 = vmatpush3.bf16.msra.mxu1 %v1066_v2  ;;  %965 = vmatprep.subr.bf16.mxu0 %v1069_v6 }
  0x3a   :  { %993 = vmatprep.subr.bf16.mxu1 %v1070_v7 }
  0x3c   :  { %966 = vmatpush3.bf16.msra.mxu0 %v1071_v8 }
  0x3d   :  { %994 = vmatpush3.bf16.msra.mxu1 %v1072_v9  ;;  %967 = vmatprep.subr.bf16.mxu0 %v1073_v10 }
  0x3e   :  { %995 = vmatprep.subr.bf16.mxu1 %v1074_v11 }
  0x40   :  { %968 = vmatpush3.bf16.msra.mxu0 %v1075_v12 }
  0x41   :  { %996 = vmatpush3.bf16.msra.mxu1 %v1076_v13 }
  0x43   :  { %743 = vmatmul.mubr.bf16.vlgmr.msra.gmra.mrb[8].mxu0 %v821_v17 }
  0x44   :  { %791 = vmatmul.mubr.bf16.vlgmr.msra.gmra.mrb[8].mxu1 %v823_v22  ;;  %750 = vmatprep.mubr.bf16.mxu0 %v830_v24 }
  0x45   :  { %798 = vmatprep.mubr.bf16.mxu1 %v832_v25 }
  0x4b   :  { %751 = vmatmul.mubr.bf16.gmra.mrb[12].mxu0 %v829_v26 }
  0x4c   :  { %799 = vmatmul.mubr.bf16.gmra.mrb[12].mxu1 %v831_v27 }
  0xf6   :  { %v913_v28 = vpop.f32.mrb[0].mxu0 }
  0xf7   :  { %v941_v29 = vpop.f32.mrb[0].mxu1  ;;  %v914_v31 = vpop.f32.mrb[1].mxu0 }
  0xf8   :  { %v915_v32 = vadd.f32 %v914_v31, %v913_v28  ;;  %v942_v33 = vpop.f32.mrb[1].mxu1  ;;  %v916_v34 = vpop.f32.mrb[2].mxu0 }
  0xf9   :  { %v943_v35 = vadd.f32 %v942_v33, %v941_v29  ;;  %v944_v36 = vpop.f32.mrb[2].mxu1  ;;  %v917_v37 = vpop.f32.mrb[3].mxu0 }
  0xfa   :  { %v649_v38 = vadd.f32 %v915_v32, %v816_v30  ;;  %v918_v39 = vadd.f32 %v917_v37, %v916_v34  ;;  %v945_v40 = vpop.f32.mrb[3].mxu1 }
  0xfb   :  { %v946_v41 = vadd.f32 %v945_v40, %v944_v36 }
  0xfc   :  { %v697_v42 = vadd.f32 %v943_v35, %v649_v38  ;;  %v652_v43 = vadd.f32 %v918_v39, %v816_v30 }
  0xfe   :  { %v700_v44 = vadd.f32 %v946_v41, %v652_v43  ;;  %v919_v45 = vpop.f32.mrb[4].mxu0 }
  0xff   :  { %v920_v46 = vpop.f32.mrb[5].mxu0  ;;  %v947_v51 = vpop.f32.mrb[4].mxu1 }
 0x100   :  { %v921_v47 = vadd.f32 %v920_v46, %v919_v45  ;;  %v922_v48 = vpop.f32.mrb[6].mxu0  ;;  %v948_v52 = vpop.f32.mrb[5].mxu1 }
 0x101   :  { %v923_v49 = vpop.f32.mrb[7].mxu0  ;;  %v949_v53 = vadd.f32 %v948_v52, %v947_v51  ;;  %v950_v54 = vpop.f32.mrb[6].mxu1 }
 0x102   :  { %v657_v50 = vadd.f32 %v921_v47, %v816_v30  ;;  %v951_v55 = vpop.f32.mrb[7].mxu1 }
 0x104   :  { %v705_v56 = vadd.f32 %v949_v53, %v657_v50 }
 0x116   :  { %v969_v57 = vpop.f32.mrb[8].mxu0 }
 0x117   :  { %v997_v58 = vpop.f32.mrb[8].mxu1  ;;  %v970_v59 = vpop.f32.mrb[9].mxu0 }
 0x118   :  { %v971_v60 = vadd.f32 %v970_v59, %v969_v57  ;;  %v998_v61 = vpop.f32.mrb[9].mxu1  ;;  %v972_v62 = vpop.f32.mrb[10].mxu0 }
 0x119   :  { %v999_v63 = vadd.f32 %v998_v61, %v997_v58  ;;  %v1000_v0 = vpop.f32.mrb[10].mxu1  ;;  %v973_v1 = vpop.f32.mrb[11].mxu0 }
 0x11a   :  { %v745_v2 = vadd.f32 %v971_v60, %v697_v42  ;;  %v974_v3 = vadd.f32 %v973_v1, %v972_v62  ;;  %v1001_v4 = vpop.f32.mrb[11].mxu1 }
 0x11b   :  { %v1002_v5 = vadd.f32 %v1001_v4, %v1000_v0 }
 0x11c   :  { %v793_v6 = vadd.f32 %v999_v63, %v745_v2  ;;  %v748_v7 = vadd.f32 %v974_v3, %v700_v44 }
 0x11e   :  { %v806_v8 = vmax.f32 %v793_v6, 0.0  ;;  %v796_v9 = vadd.f32 %v1002_v5, %v748_v7  ;;  %v975_v10 = vpop.f32.mrb[12].mxu0 }
 0x11f   :  { %v1003_v11 = vpop.f32.mrb[12].mxu1  ;;  %v976_v12 = vpop.f32.mrb[13].mxu0 }
 0x120   :  { %809 = vst [vmem:[%s1344_s3] sm:$0xff] %v806_v8  ;;  %v807_v13 = vmax.f32 %v796_v9, 0.0  ;;  %v977_v14 = vadd.f32 %v976_v12, %v975_v10  ;;  %v1004_v15 = vpop.f32.mrb[13].mxu1  ;;  %v978_v16 = vpop.f32.mrb[14].mxu0 }
 0x121   :  { %v1005_v17 = vadd.f32 %v1004_v15, %v1003_v11  ;;  %v1006_v18 = vpop.f32.mrb[14].mxu1  ;;  %v979_v19 = vpop.f32.mrb[15].mxu0 }
 0x122   :  { %810 = vst [vmem:[%s1344_s3 + $0x8] sm:$0xff] %v807_v13  ;;  %v753_v20 = vadd.f32 %v977_v14, %v705_v56  ;;  %v1007_v21 = vpop.f32.mrb[15].mxu1 }
 0x124   :  { %v801_v22 = vadd.f32 %v1005_v17, %v753_v20 }
 0x126   :  { %v808_v23 = vmax.f32 %v801_v22, 0.0 }
 0x128   :  { %811 = vst [vmem:[%s1344_s3 + $0x10] sm:$0x3] %v808_v23 }

// kernel: tile.23
= control target key start
LH: loop header
LB: loop body
LE: loop exit
PB: predicated region body
PF: predicated region fallthrough
CT: control target
= control target key end

     0   :  { %s22_s0 = inlined_call_operand.vmem [shape: f32[128], index: 0, kind: input, shape index: {}]   ;;  %s23_s1 = inlined_call_operand.vmem [shape: f32[4,128], index: 1, kind: output, shape index: {}]  }
   0x1   :  { %v4_v0 = vld [vmem:[%s22_s0] ss:$0 sm:$0xff] }
   0x2   :  { %5 = vst [vmem:[%s23_s1] sm:$0xf] %v4_v0 }

// kernel: vae_forward.11
= control target key start
LH: loop header
LB: loop body
LE: loop exit
PB: predicated region body
PF: predicated region fallthrough
CT: control target
= control target key end

     0   :  { %16 = vsyncpa [#allocation3], 0  ;;  %v194_v27 = vlaneseq  ;;  %v2674_v35 = vmov 1966171168   ;;  %vm2676_vm0 = vmmov 0   ;;  %s3386_s0 = inlined_call_operand.vmem [shape: bf16[2,1152], index: 0, kind: input, shape index: {}]   ;;  %s3387_s1 = inlined_call_operand.vmem [shape: bf16[1152,32], index: 1, kind: input, shape index: {}]   ;;  %s3388_s2 = inlined_call_operand.vmem [shape: f32[1,32], index: 2, kind: input, shape index: {}]   ;;  %s3389_s3 = inlined_call_operand.vmem [shape: bf16[1152,32], index: 3, kind: input, shape index: {}]   ;;  %s3390_s4 = inlined_call_operand.vmem [shape: f32[1,32], index: 4, kind: input, shape index: {}]   ;;  %s3391_s5 = inlined_call_operand.vmem [shape: f32[2,32], index: 5, kind: input, shape index: {}]   ;;  %s3392_s6 = inlined_call_operand.vmem [shape: bf16[32,1024], index: 6, kind: input, shape index: {}]   ;;  %s3393_s7 = inlined_call_operand.vmem [shape: f32[1,1024], index: 7, kind: input, shape index: {}]   ;;  %s3394_s8 = inlined_call_operand.hbm [shape: f32[2,32], index: 8, kind: output, shape index: {0}]   ;;  %s3395_s9 = inlined_call_operand.hbm [shape: f32[2,32], index: 9, kind: output, shape index: {1}]   ;;  %s3396_s10 = inlined_call_operand.vmem [shape: f32[2,1024], index: 10, kind: output, shape index: {2}]  }
   0x1   :  { %v2479_v0 = vld [vmem:[%s3387_s1 + $0x40] sm:$0xff]   ;;  %v2483_v4 = vld [vmem:[%s3387_s1 + $0x48] sm:$0xff]   ;;  %v2487_v8 = vld [vmem:[%s3387_s1 + $0x50] sm:$0xff]   ;;  %v192_v36 = vunpack.c.l.s4 %v2674_v35 }
   0x2   :  { %v2480_v1 = vld [vmem:[%s3387_s1] sm:$0xff]   ;;  %2238 = vmatprep.subr.bf16.mxu0 %v2479_v0  ;;  %v2484_v5 = vld [vmem:[%s3387_s1 + $0x8] sm:$0xff]   ;;  %v2488_v9 = vld [vmem:[%s3387_s1 + $0x10] sm:$0xff]   ;;  %v2829_v32 = vshrl.u32 %v194_v27, 7 }
   0x3   :  { %v2481_v2 = vld [vmem:[%s3387_s1 + $0xc0] sm:$0xff]   ;;  %2239 = vmatpush3.bf16.msra.mxu0 %v2480_v1  ;;  %v2485_v6 = vld [vmem:[%s3387_s1 + $0xc8] sm:$0xff]   ;;  %v2489_v10 = vld [vmem:[%s3387_s1 + $0xd0] sm:$0xff]   ;;  %v193_v38 = vunpack.c.0.s8 %v192_v36 }
   0x4   :  { %v2482_v3 = vld [vmem:[%s3387_s1 + $0x80] sm:$0xff]   ;;  %2260 = vmatprep.subr.bf16.mxu1 %v2481_v2  ;;  %2240 = vmatprep.subr.bf16.mxu0 %v2483_v4  ;;  %v2486_v7 = vld [vmem:[%s3387_s1 + $0x88] sm:$0xff]   ;;  %v2490_v11 = vld [vmem:[%s3387_s1 + $0x90] sm:$0xff]  }
   0x5   :  { %2261 = vmatpush3.bf16.msra.mxu1 %v2482_v3  ;;  %v2491_v12 = vld [vmem:[%s3387_s1 + $0x58] sm:$0xff]   ;;  %v2495_v16 = vld [vmem:[%s3387_s1 + $0x60] sm:$0xff]   ;;  %v2499_v20 = vld [vmem:[%s3387_s1 + $0x68] sm:$0xff]   ;;  %v2844_v41 = vsub.s32 %v193_v38, %v2829_v32 }
   0x6   :  { %2262 = vmatprep.subr.bf16.mxu1 %v2485_v6  ;;  %v2492_v13 = vld [vmem:[%s3387_s1 + $0x18] sm:$0xff]   ;;  %v2496_v17 = vld [vmem:[%s3387_s1 + $0x20] sm:$0xff]   ;;  %v2500_v21 = vld [vmem:[%s3387_s1 + $0x28] sm:$0xff]  }
   0x7   :  { %2241 = vmatpush3.bf16.msra.mxu0 %v2484_v5  ;;  %v2493_v14 = vld [vmem:[%s3387_s1 + $0xd8] sm:$0xff]   ;;  %v2497_v18 = vld [vmem:[%s3387_s1 + $0xe0] sm:$0xff]   ;;  %v2501_v22 = vld [vmem:[%s3387_s1 + $0xe8] sm:$0xff]  }
   0x8   :  { %2242 = vmatprep.subr.bf16.mxu0 %v2487_v8  ;;  %v2494_v15 = vld [vmem:[%s3387_s1 + $0x98] sm:$0xff]   ;;  %v2498_v19 = vld [vmem:[%s3387_s1 + $0xa0] sm:$0xff]   ;;  %v2502_v23 = vld [vmem:[%s3387_s1 + $0xa8] sm:$0xff]  }
   0x9   :  { %2263 = vmatpush3.bf16.msra.mxu1 %v2486_v7  ;;  %v2503_v24 = vld [vmem:[%s3387_s1 + $0x70] sm:$0xff]   ;;  %v2507_v29 = vld [vmem:[%s3387_s1 + $0x78] sm:$0xff]   ;;  %v35_v33 = vld [vmem:[%s3386_s0] sm:$0xff] }
   0xa   :  { %2264 = vmatprep.subr.bf16.mxu1 %v2489_v10  ;;  %v2504_v25 = vld [vmem:[%s3387_s1 + $0x30] sm:$0xff]   ;;  %v2508_v30 = vld [vmem:[%s3387_s1 + $0x38] sm:$0xff]   ;;  %v2511_v37 = vld [vmem:[%s3387_s1 + $0x140] sm:$0xff]   ;;  %v190_v39 = vcombine.high %v35_v33, %v35_v33  ;;  %v197_v42 = vrot.slane %v35_v33, %v2844_v41 }
   0xb   :  { %2243 = vmatpush3.bf16.msra.mxu0 %v2488_v9  ;;  %v2505_v26 = vld [vmem:[%s3387_s1 + $0xf0] sm:$0xff]   ;;  %v2509_v31 = vld [vmem:[%s3387_s1 + $0xf8] sm:$0xff]   ;;  %v2513_v40 = vld [vmem:[%s3387_s1 + $0x1c0] sm:$0xff]  }
   0xc   :  { %2244 = vmatprep.subr.bf16.mxu0 %v2491_v12  ;;  %v2506_v28 = vld [vmem:[%s3387_s1 + $0xb0] sm:$0xff]   ;;  %v2510_v34 = vld [vmem:[%s3387_s1 + $0xb8] sm:$0xff]   ;;  %v2848_v43 = vrot.slane %v190_v39, %v2844_v41  ;;  %v205_v44 = vcombine.high %v197_v42, %v197_v42  ;;  %v2851_v45 = vrot.slane %v197_v42, %v2844_v41  ;;  %v2512_v48 = vld [vmem:[%s3387_s1 + $0x100] sm:$0xff]  }
   0xd   :  { %2265 = vmatpush3.bf16.msra.mxu1 %v2490_v11  ;;  %v2515_v51 = vld [vmem:[%s3387_s1 + $0x148] sm:$0xff]   ;;  %v2514_v53 = vld [vmem:[%s3387_s1 + $0x180] sm:$0xff]   ;;  %v2519_v57 = vld [vmem:[%s3387_s1 + $0x150] sm:$0xff]  }
   0xe   :  { %2266 = vmatprep.subr.bf16.mxu1 %v2493_v14  ;;  %v206_v46 = vcombine.high %v2848_v43, %v2848_v43  ;;  %v2856_v47 = vrot.slane %v205_v44, %v2844_v41  ;;  %v2866_v50 = vcombine.high %v2851_v45, %v2851_v45  ;;  %v2517_v54 = vld [vmem:[%s3387_s1 + $0x1c8] sm:$0xff]   ;;  %v2521_v59 = vld [vmem:[%s3387_s1 + $0x1d0] sm:$0xff]   ;;  %v2523_v61 = vld [vmem:[%s3387_s1 + $0x158] sm:$0xff]  }
   0xf   :  { %2245 = vmatpush3.bf16.msra.mxu0 %v2492_v13  ;;  %v2516_v56 = vld [vmem:[%s3387_s1 + $0x108] sm:$0xff]   ;;  %v2520_v60 = vld [vmem:[%s3387_s1 + $0x110] sm:$0xff]   ;;  %v2525_v63 = vld [vmem:[%s3387_s1 + $0x1d8] sm:$0xff]  }
  0x10   :  { %2246 = vmatprep.subr.bf16.mxu0 %v2495_v16  ;;  %v2862_v49 = vrot.slane %v206_v46, %v2844_v41  ;;  %726 = vmatprep.mubr.bf16.mxu0 %v2856_v47  ;;  %v2874_v52 = vcombine.high %v2856_v47, %v2856_v47  ;;  %v2518_v58 = vld [vmem:[%s3387_s1 + $0x188] sm:$0xff]   ;;  %v2522_v62 = vld [vmem:[%s3387_s1 + $0x190] sm:$0xff]   ;;  %v2524_v0 = vld [vmem:[%s3387_s1 + $0x118] sm:$0xff]  }
  0x11   :  { %2267 = vmatpush3.bf16.msra.mxu1 %v2494_v15  ;;  %v2527_v1 = vld [vmem:[%s3387_s1 + $0x160] sm:$0xff]   ;;  %v2526_v2 = vld [vmem:[%s3387_s1 + $0x198] sm:$0xff]   ;;  %v2531_v5 = vld [vmem:[%s3387_s1 + $0x168] sm:$0xff]  }
  0x12   :  { %2268 = vmatprep.subr.bf16.mxu1 %v2497_v18  ;;  %v2885_v55 = vcombine.high %v2862_v49, %v2862_v49  ;;  %766 = vmatprep.mubr.bf16.mxu1 %v2874_v52  ;;  %v2529_v3 = vld [vmem:[%s3387_s1 + $0x1e0] sm:$0xff]   ;;  %v2533_v7 = vld [vmem:[%s3387_s1 + $0x1e8] sm:$0xff]   ;;  %v2535_v9 = vld [vmem:[%s3387_s1 + $0x170] sm:$0xff]  }
  0x13   :  { %2247 = vmatpush3.bf16.msra.mxu0 %v2496_v17  ;;  %v2528_v4 = vld [vmem:[%s3387_s1 + $0x120] sm:$0xff]   ;;  %v2532_v8 = vld [vmem:[%s3387_s1 + $0x128] sm:$0xff]   ;;  %v2537_v11 = vld [vmem:[%s3387_s1 + $0x1f0] sm:$0xff]   ;;  %v2968_v17 = vrot.slane %v2848_v43, %v2844_v41 }
  0x14   :  { %2248 = vmatprep.subr.bf16.mxu0 %v2499_v20  ;;  %v2530_v6 = vld [vmem:[%s3387_s1 + $0x1a0] sm:$0xff]   ;;  %v2534_v10 = vld [vmem:[%s3387_s1 + $0x1a8] sm:$0xff]   ;;  %v2536_v12 = vld [vmem:[%s3387_s1 + $0x130] sm:$0xff]  }
  0x15   :  { %2269 = vmatpush3.bf16.msra.mxu1 %v2498_v19  ;;  %v2539_v13 = vld [vmem:[%s3387_s1 + $0x178] sm:$0xff]   ;;  %v2538_v14 = vld [vmem:[%s3387_s1 + $0x1b0] sm:$0xff]   ;;  %v2545_v19 = vld [vmem:[%s3389_s3 + $0x40] sm:$0xff]  }
  0x16   :  { %2270 = vmatprep.subr.bf16.mxu1 %v2501_v22  ;;  %v2541_v15 = vld [vmem:[%s3387_s1 + $0x1f8] sm:$0xff]   ;;  %v2544_v20 = vld [vmem:[%s3387_s1 + $0x200] sm:$0xff]   ;;  %v2982_v22 = vcombine.high %v2968_v17, %v2968_v17  ;;  %v2551_v27 = vld [vmem:[%s3389_s3 + $0x50] sm:$0xff]  }
  0x17   :  { %2249 = vmatpush3.bf16.msra.mxu0 %v2500_v21  ;;  %v2540_v16 = vld [vmem:[%s3387_s1 + $0x138] sm:$0xff]   ;;  %v2675_v21 = vmov 0.0   ;;  %v2556_v35 = vld [vmem:[%s3387_s1 + $0x220] sm:$0xff]   ;;  %v2559_v38 = vld [vmem:[%s3387_s1 + $0x228] sm:$0xff]  }
  0x18   :  { %2250 = vmatprep.subr.bf16.mxu0 %v2503_v24  ;;  %v2543_v18 = vld [vmem:[%s3387_s1 + $0x1b8] sm:$0xff]   ;;  %v2548_v24 = vld [vmem:[%s3389_s3 + $0x48] sm:$0xff]   ;;  %v2558_v36 = vld [vmem:[%s3389_s3 + $0x20] sm:$0xff]  }
  0x19   :  { %2271 = vmatpush3.bf16.msra.mxu1 %v2502_v23  ;;  %v2546_v23 = vld [vmem:[%s3389_s3] sm:$0xff]   ;;  %v2555_v33 = vld [vmem:[%s3389_s3 + $0x18] sm:$0xff]   ;;  %v2561_v39 = vld [vmem:[%s3389_s3 + $0x28] sm:$0xff]  }
  0x1a   :  { %2272 = vmatprep.subr.bf16.mxu1 %v2505_v26  ;;  %v2549_v26 = vld [vmem:[%s3389_s3 + $0x8] sm:$0xff]   ;;  %v2562_v42 = vld [vmem:[%s3387_s1 + $0x230] sm:$0xff]   ;;  %v2566_v46 = vld [vmem:[%s3389_s3 + $0x78] sm:$0xff]  }
  0x1b   :  { %2251 = vmatpush3.bf16.msra.mxu0 %v2504_v25  ;;  %v2547_v25 = vld [vmem:[%s3387_s1 + $0x208] sm:$0xff]   ;;  %v2564_v43 = vld [vmem:[%s3389_s3 + $0x30] sm:$0xff]  }
  0x1c   :  { %2252 = vmatprep.subr.bf16.mxu0 %v2507_v29  ;;  %v2552_v29 = vld [vmem:[%s3389_s3 + $0x10] sm:$0xff]   ;;  %v2072_v44 = vld.sshfl [vmem:[%s3386_s0 + $0x8] sm:$0x1 pattern:$0x75316420] }
  0x1d   :  { %2273 = vmatpush3.bf16.msra.mxu1 %v2506_v28  ;;  %v2550_v28 = vld [vmem:[%s3387_s1 + $0x210] sm:$0xff]  }
  0x1e   :  { %2274 = vmatprep.subr.bf16.mxu1 %v2509_v31  ;;  %v2553_v31 = vld [vmem:[%s3387_s1 + $0x218] sm:$0xff]  }
  0x1f   :  { %2253 = vmatpush3.bf16.msra.mxu0 %v2508_v30  ;;  %v2554_v30 = vld [vmem:[%s3389_s3 + $0x58] sm:$0xff]  }
  0x20   :  { %2282 = vmatprep.subr.bf16.mxu0 %v2511_v37  ;;  %v2560_v37 = vld [vmem:[%s3389_s3 + $0x68] sm:$0xff]  }
  0x21   :  { %2275 = vmatpush3.bf16.msra.mxu1 %v2510_v34  ;;  %v2557_v34 = vld [vmem:[%s3389_s3 + $0x60] sm:$0xff]  }
  0x22   :  { %2304 = vmatprep.subr.bf16.mxu1 %v2513_v40  ;;  %727 = vmatmul.mubr.bf16.vlgmr.msra.gmra.mrb[0].mxu0 %v2851_v45  ;;  %v2563_v40 = vld [vmem:[%s3389_s3 + $0x70] sm:$0xff]  }
  0x23   :  { %2283 = vmatpush3.bf16.msra.mxu0 %v2512_v48  ;;  %806 = vmatprep.mubr.bf16.mxu0 %v2862_v49  ;;  %v2568_v48 = vld [vmem:[%s3389_s3 + $0xc0] sm:$0xff]  }
  0x24   :  { %767 = vmatmul.mubr.bf16.vlgmr.msra.gmra.mrb[0].mxu1 %v2866_v50  ;;  %2284 = vmatprep.subr.bf16.mxu0 %v2515_v51  ;;  %v2567_v51 = vld [vmem:[%s3389_s3 + $0x38] sm:$0xff]  }
  0x25   :  { %2305 = vmatpush3.bf16.msra.mxu1 %v2514_v53  ;;  %846 = vmatprep.mubr.bf16.mxu1 %v2885_v55  ;;  %v3069_v53 = vrot.slane %v2072_v44, %v2844_v41  ;;  %v2571_v41 = vld [vmem:[%s3389_s3 + $0x100] sm:$0xff]  }
  0x26   :  { %2306 = vmatprep.subr.bf16.mxu1 %v2517_v54  ;;  %v2570_v54 = vld [vmem:[%s3389_s3 + $0x140] sm:$0xff]  }
  0x27   :  { %2285 = vmatpush3.bf16.msra.mxu0 %v2516_v56  ;;  %v2569_v56 = vld [vmem:[%s3389_s3 + $0x80] sm:$0xff]  }
  0x28   :  { %2286 = vmatprep.subr.bf16.mxu0 %v2519_v57  ;;  %v2572_v57 = vld [vmem:[%s3389_s3 + $0xc8] sm:$0xff]  }
  0x29   :  { %2307 = vmatpush3.bf16.msra.mxu1 %v2518_v58  ;;  %v2574_v58 = vld [vmem:[%s3389_s3 + $0x148] sm:$0xff]  }
  0x2a   :  { %2308 = vmatprep.subr.bf16.mxu1 %v2521_v59  ;;  %v2573_v59 = vld [vmem:[%s3389_s3 + $0x88] sm:$0xff]  }
  0x2b   :  { %2287 = vmatpush3.bf16.msra.mxu0 %v2520_v60  ;;  %v2576_v60 = vld [vmem:[%s3389_s3 + $0xd0] sm:$0xff]  }
  0x2c   :  { %2288 = vmatprep.subr.bf16.mxu0 %v2523_v61  ;;  %v2575_v61 = vld [vmem:[%s3389_s3 + $0x108] sm:$0xff]  }
  0x2d   :  { %2309 = vmatpush3.bf16.msra.mxu1 %v2522_v62  ;;  %v2578_v62 = vld [vmem:[%s3389_s3 + $0x150] sm:$0xff]  }
  0x2e   :  { %2310 = vmatprep.subr.bf16.mxu1 %v2525_v63  ;;  %v2582_v63 = vld [vmem:[%s3389_s3 + $0x158] sm:$0xff]  }
  0x2f   :  { %2289 = vmatpush3.bf16.msra.mxu0 %v2524_v0  ;;  %v2581_v0 = vld [vmem:[%s3389_s3 + $0x98] sm:$0xff]  }
  0x30   :  { %2290 = vmatprep.subr.bf16.mxu0 %v2527_v1  ;;  %v2584_v1 = vld [vmem:[%s3389_s3 + $0xe0] sm:$0xff]  }
  0x31   :  { %2311 = vmatpush3.bf16.msra.mxu1 %v2526_v2  ;;  %v2583_v2 = vld [vmem:[%s3389_s3 + $0x118] sm:$0xff]  }
  0x32   :  { %2312 = vmatprep.subr.bf16.mxu1 %v2529_v3  ;;  %v2586_v3 = vld [vmem:[%s3389_s3 + $0x160] sm:$0xff]  }
  0x33   :  { %2291 = vmatpush3.bf16.msra.mxu0 %v2528_v4  ;;  %v2585_v4 = vld [vmem:[%s3389_s3 + $0xa0] sm:$0xff]  }
  0x34   :  { %2292 = vmatprep.subr.bf16.mxu0 %v2531_v5  ;;  %v2588_v5 = vld [vmem:[%s3389_s3 + $0xe8] sm:$0xff]  }
  0x35   :  { %2313 = vmatpush3.bf16.msra.mxu1 %v2530_v6  ;;  %v2587_v6 = vld [vmem:[%s3389_s3 + $0x120] sm:$0xff]  }
  0x36   :  { %2314 = vmatprep.subr.bf16.mxu1 %v2533_v7  ;;  %v2590_v7 = vld [vmem:[%s3389_s3 + $0x168] sm:$0xff]  }
  0x37   :  { %2293 = vmatpush3.bf16.msra.mxu0 %v2532_v8  ;;  %v2589_v8 = vld [vmem:[%s3389_s3 + $0xa8] sm:$0xff]  }
  0x38   :  { %2294 = vmatprep.subr.bf16.mxu0 %v2535_v9  ;;  %v2592_v9 = vld [vmem:[%s3389_s3 + $0xf0] sm:$0xff]  }
  0x39   :  { %2315 = vmatpush3.bf16.msra.mxu1 %v2534_v10  ;;  %v2591_v10 = vld [vmem:[%s3389_s3 + $0x128] sm:$0xff]  }
  0x3a   :  { %2316 = vmatprep.subr.bf16.mxu1 %v2537_v11  ;;  %v2594_v11 = vld [vmem:[%s3389_s3 + $0x170] sm:$0xff]  }
  0x3b   :  { %2295 = vmatpush3.bf16.msra.mxu0 %v2536_v12  ;;  %v2593_v12 = vld [vmem:[%s3389_s3 + $0xb0] sm:$0xff]  }
  0x3c   :  { %2296 = vmatprep.subr.bf16.mxu0 %v2539_v13  ;;  %v2596_v13 = vld [vmem:[%s3389_s3 + $0xf8] sm:$0xff]  }
  0x3d   :  { %2317 = vmatpush3.bf16.msra.mxu1 %v2538_v14  ;;  %v2595_v14 = vld [vmem:[%s3389_s3 + $0x130] sm:$0xff]  }
  0x3e   :  { %2318 = vmatprep.subr.bf16.mxu1 %v2541_v15  ;;  %v2598_v15 = vld [vmem:[%s3389_s3 + $0x178] sm:$0xff]  }
  0x3f   :  { %2297 = vmatpush3.bf16.msra.mxu0 %v2540_v16  ;;  %v2597_v16 = vld [vmem:[%s3389_s3 + $0xb8] sm:$0xff]  }
  0x40   :  { %2432 = vmatprep.subr.bf16.mxu0 %v2675_v21 }
  0x41   :  { %2319 = vmatpush3.bf16.msra.mxu1 %v2543_v18  ;;  %v2600_v18 = vld [vmem:[%s3389_s3 + $0x1c0] sm:$0xff]  }
  0x42   :  { %807 = vmatmul.mubr.bf16.vlgmr.msra.gmra.mrb[4].mxu0 %v2968_v17  ;;  %2335 = vmatprep.subr.bf16.mxu1 %v2545_v19  ;;  %v2599_v19 = vld [vmem:[%s3389_s3 + $0x138] sm:$0xff]  }
  0x43   :  { %2433 = vmatpush3.bf16.msra.mxu0 %v2544_v20  ;;  %2448 = vmatprep.mubr.msk.bf16.mxu0 %vm2676_vm0, %v2675_v21  ;;  %v2601_v20 = vld [vmem:[%s3389_s3 + $0x180] sm:$0xff]  }
  0x44   :  { %847 = vmatmul.mubr.bf16.vlgmr.msra.gmra.mrb[4].mxu1 %v2982_v22  ;;  %2434 = vmatprep.subr.bf16.mxu0 %v2675_v21 }
  0x45   :  { %2336 = vmatpush3.bf16.msra.mxu1 %v2546_v23  ;;  %1509 = vmatprep.mubr.bf16.mxu1 %v2856_v47  ;;  %v2565_v47 = vld [vmem:[%s3387_s1 + $0x238] sm:$0xff]   ;;  %v2603_v23 = vld [vmem:[%s3389_s3 + $0x1c8] sm:$0xff]  }
  0x46   :  { %2337 = vmatprep.subr.bf16.mxu1 %v2548_v24  ;;  %v2602_v24 = vld [vmem:[%s3389_s3 + $0x200] sm:$0xff]  }
  0x47   :  { %2435 = vmatpush3.bf16.msra.mxu0 %v2547_v25  ;;  %v2604_v25 = vld [vmem:[%s3389_s3 + $0x188] sm:$0xff]  }
  0x48   :  { %2436 = vmatprep.subr.bf16.mxu0 %v2675_v21 }
  0x49   :  { %2338 = vmatpush3.bf16.msra.mxu1 %v2549_v26  ;;  %v2606_v26 = vld [vmem:[%s3389_s3 + $0x1d0] sm:$0xff]  }
  0x4a   :  { %2339 = vmatprep.subr.bf16.mxu1 %v2551_v27 }
  0x4b   :  { %2437 = vmatpush3.bf16.msra.mxu0 %v2550_v28 }
  0x4c   :  { %2438 = vmatprep.subr.bf16.mxu0 %v2675_v21 }
  0x4d   :  { %2340 = vmatpush3.bf16.msra.mxu1 %v2552_v29 }
  0x4e   :  { %2341 = vmatprep.subr.bf16.mxu1 %v2554_v30 }
  0x4f   :  { %2439 = vmatpush3.bf16.msra.mxu0 %v2553_v31 }
  0x50   :  { %2440 = vmatprep.subr.bf16.mxu0 %v2675_v21 }
  0x51   :  { %2342 = vmatpush3.bf16.msra.mxu1 %v2555_v33 }
  0x52   :  { %2343 = vmatprep.subr.bf16.mxu1 %v2557_v34 }
  0x53   :  { %2441 = vmatpush3.bf16.msra.mxu0 %v2556_v35 }
  0x54   :  { %2442 = vmatprep.subr.bf16.mxu0 %v2675_v21 }
  0x55   :  { %2344 = vmatpush3.bf16.msra.mxu1 %v2558_v36 }
  0x56   :  { %2345 = vmatprep.subr.bf16.mxu1 %v2560_v37 }
  0x57   :  { %2443 = vmatpush3.bf16.msra.mxu0 %v2559_v38 }
  0x58   :  { %2444 = vmatprep.subr.bf16.mxu0 %v2675_v21 }
  0x59   :  { %2346 = vmatpush3.bf16.msra.mxu1 %v2561_v39 }
  0x5a   :  { %2347 = vmatprep.subr.bf16.mxu1 %v2563_v40 }
  0x5b   :  { %2445 = vmatpush3.bf16.msra.mxu0 %v2562_v42 }
  0x5c   :  { %2446 = vmatprep.subr.bf16.mxu0 %v2675_v21 }
  0x5d   :  { %2348 = vmatpush3.bf16.msra.mxu1 %v2564_v43 }
  0x5e   :  { %2349 = vmatprep.subr.bf16.mxu1 %v2566_v46 }
  0x5f   :  { %2447 = vmatpush3.bf16.msra.mxu0 %v2565_v47 }
  0x60   :  { %2357 = vmatprep.subr.bf16.mxu0 %v2568_v48 }
  0x61   :  { %2350 = vmatpush3.bf16.msra.mxu1 %v2567_v51 }
  0x62   :  { %2449 = vmatmul.mubr.bf16.vlgmr.msra.gmra.mrb[8].mxu0 %v3069_v53  ;;  %2379 = vmatprep.subr.bf16.mxu1 %v2570_v54 }
  0x63   :  { %2358 = vmatpush3.bf16.msra.mxu0 %v2569_v56  ;;  %1549 = vmatprep.mubr.bf16.mxu0 %v2874_v52  ;;  %v2580_v52 = vld [vmem:[%s3389_s3 + $0xd8] sm:$0xff]  }
  0x64   :  { %1510 = vmatmul.mubr.bf16.vlgmr.msra.gmra.mrb[8].mxu1 %v2851_v45  ;;  %2359 = vmatprep.subr.bf16.mxu0 %v2572_v57  ;;  %v2577_v45 = vld [vmem:[%s3389_s3 + $0x90] sm:$0xff]  }
  0x65   :  { %2380 = vmatpush3.bf16.msra.mxu1 %v2571_v41  ;;  %1589 = vmatprep.mubr.bf16.mxu1 %v2862_v49  ;;  %v2579_v49 = vld [vmem:[%s3389_s3 + $0x110] sm:$0xff]  }
  0x66   :  { %2381 = vmatprep.subr.bf16.mxu1 %v2574_v58 }
  0x67   :  { %2360 = vmatpush3.bf16.msra.mxu0 %v2573_v59 }
  0x68   :  { %2361 = vmatprep.subr.bf16.mxu0 %v2576_v60 }
  0x69   :  { %2382 = vmatpush3.bf16.msra.mxu1 %v2575_v61 }
  0x6a   :  { %2383 = vmatprep.subr.bf16.mxu1 %v2578_v62 }
  0x6b   :  { %2362 = vmatpush3.bf16.msra.mxu0 %v2577_v45 }
  0x6c   :  { %2363 = vmatprep.subr.bf16.mxu0 %v2580_v52 }
  0x6d   :  { %2384 = vmatpush3.bf16.msra.mxu1 %v2579_v49 }
  0x6e   :  { %2385 = vmatprep.subr.bf16.mxu1 %v2582_v63 }
  0x6f   :  { %2364 = vmatpush3.bf16.msra.mxu0 %v2581_v0 }
  0x70   :  { %2365 = vmatprep.subr.bf16.mxu0 %v2584_v1 }
  0x71   :  { %2386 = vmatpush3.bf16.msra.mxu1 %v2583_v2 }
  0x72   :  { %2387 = vmatprep.subr.bf16.mxu1 %v2586_v3 }
  0x73   :  { %2366 = vmatpush3.bf16.msra.mxu0 %v2585_v4 }
  0x74   :  { %2367 = vmatprep.subr.bf16.mxu0 %v2588_v5 }
  0x75   :  { %2388 = vmatpush3.bf16.msra.mxu1 %v2587_v6 }
  0x76   :  { %2389 = vmatprep.subr.bf16.mxu1 %v2590_v7 }
  0x77   :  { %2368 = vmatpush3.bf16.msra.mxu0 %v2589_v8 }
  0x78   :  { %2369 = vmatprep.subr.bf16.mxu0 %v2592_v9 }
  0x79   :  { %2390 = vmatpush3.bf16.msra.mxu1 %v2591_v10 }
  0x7a   :  { %2391 = vmatprep.subr.bf16.mxu1 %v2594_v11 }
  0x7b   :  { %2370 = vmatpush3.bf16.msra.mxu0 %v2593_v12 }
  0x7c   :  { %2371 = vmatprep.subr.bf16.mxu0 %v2596_v13 }
  0x7d   :  { %2392 = vmatpush3.bf16.msra.mxu1 %v2595_v14 }
  0x7e   :  { %2393 = vmatprep.subr.bf16.mxu1 %v2598_v15 }
  0x7f   :  { %2372 = vmatpush3.bf16.msra.mxu0 %v2597_v16 }
  0x80   :  { %2401 = vmatprep.subr.bf16.mxu0 %v2600_v18 }
  0x81   :  { %2394 = vmatpush3.bf16.msra.mxu1 %v2599_v19 }
  0x82   :  { %1550 = vmatmul.mubr.bf16.vlgmr.msra.gmra.mrb[12].mxu0 %v2866_v50  ;;  %2452 = vmatprep.subr.bf16.mxu1 %v2675_v21  ;;  %v2605_v50 = vld [vmem:[%s3389_s3 + $0x208] sm:$0xff]  }
  0x83   :  { %2402 = vmatpush3.bf16.msra.mxu0 %v2601_v20  ;;  %1629 = vmatprep.mubr.bf16.mxu0 %v2885_v55 }
  0x84   :  { %1590 = vmatmul.mubr.bf16.vlgmr.msra.gmra.mrb[12].mxu1 %v2968_v17  ;;  %2403 = vmatprep.subr.bf16.mxu0 %v2603_v23 }
  0x85   :  { %2453 = vmatpush3.bf16.msra.mxu1 %v2602_v24  ;;  %2468 = vmatprep.mubr.msk.bf16.mxu1 %vm2676_vm0, %v2675_v21 }
  0x86   :  { %2454 = vmatprep.subr.bf16.mxu1 %v2675_v21 }
  0x87   :  { %17 = vsyncpa [#allocation5], 0  ;;  %2404 = vmatpush3.bf16.msra.mxu0 %v2604_v25  ;;  %v2607_v55 = vld [vmem:[%s3389_s3 + $0x190] sm:$0xff]   ;;  %v2609_v17 = vld [vmem:[%s3389_s3 + $0x1d8] sm:$0xff]   ;;  %v2677_v0 = vmov 0   ;;  %vm1990_vm1 = vcmask 254976  }
  0x88   :  { %2405 = vmatprep.subr.bf16.mxu0 %v2606_v26  ;;  %v2608_v27 = vld [vmem:[%s3389_s3 + $0x210] sm:$0xff]   ;;  %v2610_v28 = vld [vmem:[%s3389_s3 + $0x198] sm:$0xff]   ;;  %v2612_v29 = vld [vmem:[%s3389_s3 + $0x1e0] sm:$0xff]   ;;  %vm1822_vm2 = vcmask 261120   ;;  %s2679_s24 = smov [#allocation4]  }
  0x89   :  { %2455 = vmatpush3.bf16.msra.mxu1 %v2605_v50  ;;  %v2611_v30 = vld [vmem:[%s3389_s3 + $0x218] sm:$0xff]   ;;  %v2613_v31 = vld [vmem:[%s3389_s3 + $0x1a0] sm:$0xff]   ;;  %v2615_v33 = vld [vmem:[%s3389_s3 + $0x1e8] sm:$0xff]   ;;  %s2055_s25 = sshll.u32 %s2679_s24, 4  ;;  %s2056_s25 = int_to_ptr.vmem [resolvable:$true] %s2055_s25 }
  0x8a   :  { %2456 = vmatprep.subr.bf16.mxu1 %v2675_v21  ;;  %v2614_v34 = vld [vmem:[%s3389_s3 + $0x220] sm:$0xff]   ;;  %v2616_v35 = vld [vmem:[%s3389_s3 + $0x1a8] sm:$0xff]   ;;  %v2618_v36 = vld [vmem:[%s3389_s3 + $0x1f0] sm:$0xff]  }
  0x8b   :  { %2406 = vmatpush3.bf16.msra.mxu0 %v2607_v55  ;;  %v2617_v37 = vld [vmem:[%s3389_s3 + $0x228] sm:$0xff]   ;;  %v2619_v38 = vld [vmem:[%s3389_s3 + $0x1b0] sm:$0xff]   ;;  %v2621_v39 = vld [vmem:[%s3389_s3 + $0x1f8] sm:$0xff]  }
  0x8c   :  { %2407 = vmatprep.subr.bf16.mxu0 %v2609_v17  ;;  %v2620_v40 = vld [vmem:[%s3389_s3 + $0x230] sm:$0xff]   ;;  %v2622_v42 = vld [vmem:[%s3389_s3 + $0x1b8] sm:$0xff]   ;;  %v2071_v46 = vld [vmem:[%s3388_s2] ss:$0 sm:$0xff] }
  0x8d   :  { %2457 = vmatpush3.bf16.msra.mxu1 %v2608_v27  ;;  %v2623_v43 = vld [vmem:[%s3389_s3 + $0x238] sm:$0xff]   ;;  %v1685_v61 = vld [vmem:[%s3392_s6 + $0x8] sm:$0xff]  ;;  %v1692_v49 = vld [vmem:[%s3392_s6 + $0x40] sm:$0xff] }
  0x8e   :  { %2458 = vmatprep.subr.bf16.mxu1 %v2675_v21  ;;  %v1689_v52 = vld [vmem:[%s3392_s6 + $0x28] sm:$0xff]  ;;  %v1696_v63 = vld [vmem:[%s3392_s6 + $0x60] sm:$0xff]  ;;  %v3287_v6 = vld [vmem:[%s3392_s6 + $0x10] sm:$0xff] }
  0x8f   :  { %2408 = vmatpush3.bf16.msra.mxu0 %v2610_v28  ;;  %v2220_v1 = vcombine.low %v1685_v61, %v1689_v52  ;;  %v2221_v2 = vcombine.high %v1685_v61, %v1689_v52  ;;  %v2227_v3 = vcombine.high %v1692_v49, %v1696_v63  ;;  %v1693_v4 = vld [vmem:[%s3392_s6 + $0x48] sm:$0xff]  ;;  %v3292_v8 = vld [vmem:[%s3392_s6 + $0x30] sm:$0xff]  ;;  %v3297_v9 = vld [vmem:[%s3392_s6 + $0x18] sm:$0xff]  ;;  %v2226_v11 = vcombine.low %v1692_v49, %v1696_v63 }
  0x90   :  { %2409 = vmatprep.subr.bf16.mxu0 %v2612_v29  ;;  %v1697_v5 = vld [vmem:[%s3392_s6 + $0x68] sm:$0xff]  ;;  %v3302_v10 = vld [vmem:[%s3392_s6 + $0x38] sm:$0xff]  ;;  %v2222_v12 = vcombine.low %v3287_v6, %v3292_v8  ;;  %v2223_v15 = vcombine.high %v3287_v6, %v3292_v8 }
  0x91   :  { %2459 = vmatpush3.bf16.msra.mxu1 %v2611_v30  ;;  %v2229_v7 = vcombine.high %v1693_v4, %v1697_v5  ;;  %v2224_v13 = vcombine.low %v3297_v9, %v3302_v10  ;;  %v2228_v14 = vcombine.low %v1693_v4, %v1697_v5  ;;  %v2225_v16 = vcombine.high %v3297_v9, %v3302_v10  ;;  %v1680_v4 = vld [vmem:[%s3391_s5] sm:$0x3]  ;;  %s2678_s5 = smov [#allocation2]  }
  0x92   :  { %2460 = vmatprep.subr.bf16.mxu1 %v2675_v21 }
  0x93   :  { %2410 = vmatpush3.bf16.msra.mxu0 %v2613_v31 }
  0x94   :  { %2411 = vmatprep.subr.bf16.mxu0 %v2615_v33 }
  0x95   :  { %2461 = vmatpush3.bf16.msra.mxu1 %v2614_v34 }
  0x96   :  { %2462 = vmatprep.subr.bf16.mxu1 %v2675_v21 }
  0x97   :  { %2412 = vmatpush3.bf16.msra.mxu0 %v2616_v35 }
  0x98   :  { %2413 = vmatprep.subr.bf16.mxu0 %v2618_v36 }
  0x99   :  { %2463 = vmatpush3.bf16.msra.mxu1 %v2617_v37 }
  0x9a   :  { %2464 = vmatprep.subr.bf16.mxu1 %v2675_v21 }
  0x9b   :  { %2414 = vmatpush3.bf16.msra.mxu0 %v2619_v38 }
  0x9c   :  { %2415 = vmatprep.subr.bf16.mxu0 %v2621_v39 }
  0x9d   :  { %2465 = vmatpush3.bf16.msra.mxu1 %v2620_v40  ;;  %v2145_v40 = vld [vmem:[%s3390_s4] ss:$0 sm:$0xff] }
  0x9e   :  { %2466 = vmatprep.subr.bf16.mxu1 %v2675_v21 }
  0x9f   :  { %2416 = vmatpush3.bf16.msra.mxu0 %v2622_v42 }
  0xa1   :  { %2467 = vmatpush3.bf16.msra.mxu1 %v2623_v43 }
  0xa2   :  { %1630 = vmatmul.mubr.bf16.vlgmr.msra.gmra.mrb[16].mxu0 %v2982_v22  ;;  %v1684_v22 = vld [vmem:[%s3392_s6] sm:$0xff]  ;;  %1867 = vmatprep.subr.bf16.mxu1 %v2221_v2 }
  0xa3   :  { %1858 = vmatprep.mubr.bf16.mxu0 %v2677_v0 }
  0xa4   :  { %2469 = vmatmul.mubr.bf16.vlgmr.msra.gmra.mrb[16].mxu1 %v3069_v53  ;;  %v1688_v53 = vld [vmem:[%s3392_s6 + $0x20] sm:$0xff] }
  0xa5   :  { %v2218_v62 = vcombine.low %v1684_v22, %v1688_v53  ;;  %v2219_v45 = vcombine.high %v1684_v22, %v1688_v53  ;;  %1899 = vmatprep.mubr.bf16.mxu1 %v2677_v0  ;;  %1868 = vmatpush1.bf16.msra.mxu1 %v2220_v1 }
  0xa6   :  { %1869 = vmatprep.subr.bf16.mxu1 %v2229_v7 }
  0xa7   :  { %1826 = vmatprep.subr.bf16.mxu0 %v2219_v45 }
  0xa8   :  { %1827 = vmatpush1.bf16.msra.mxu0 %v2218_v62 }
  0xa9   :  { %1828 = vmatprep.subr.bf16.mxu0 %v2227_v3  ;;  %1870 = vmatpush1.bf16.msra.mxu1 %v2228_v14  ;;  %v1698_v14 = vld [vmem:[%s3392_s6 + $0x70] sm:$0xff] }
  0xaa   :  { %1949 = vmatprep.subr.bf16.mxu1 %v2225_v16  ;;  %v1699_v16 = vld [vmem:[%s3392_s6 + $0x78] sm:$0xff] }
  0xac   :  { %1829 = vmatpush1.bf16.msra.mxu0 %v2226_v11  ;;  %v1694_v11 = vld [vmem:[%s3392_s6 + $0x50] sm:$0xff] }
  0xad   :  { %1908 = vmatprep.subr.bf16.mxu0 %v2223_v15  ;;  %v1695_v15 = vld [vmem:[%s3392_s6 + $0x58] sm:$0xff]  ;;  %s2045_s6 = sshll.u32 %s2678_s5, 4  ;;  %s2046_s6 = int_to_ptr.vmem [resolvable:$true] %s2045_s6 }
  0xae   :  { %s2626_s26 = scalar_lea.vmem %s2046_s6, 32  ;;  %p2631_p1 = scmp.lt.s32.totalorder %s2046_s6, %s2046_s6 }
  0xaf   :  { %p2627_p0 = scmp.ne.s32.totalorder %s2046_s6, %s2626_s26  ;;  %p2632_p2 = scmp.lt.s32.totalorder %s2626_s26, %s2626_s26 }
  0xb1   :  { %p2633_p3 = por %p2632_p2, %p2631_p1 }
  0xb3   :  { %p2634_p4 = pnand %p2633_p3, %p2627_p0 }
  0xf5   :  { %v2254_v44 = vpop.f32.mrb[0].mxu0 }
  0xf6   :  { %v2255_v47 = vpop.f32.mrb[1].mxu0 }
  0xf7   :  { %v2256_v48 = vadd.f32 %v2255_v47, %v2254_v44  ;;  %v2257_v51 = vpop.f32.mrb[2].mxu0  ;;  %v2276_v54 = vpop.f32.mrb[0].mxu1 }
  0xf8   :  { %v2258_v56 = vpop.f32.mrb[3].mxu0  ;;  %v2277_v57 = vpop.f32.mrb[1].mxu1 }
  0xf9   :  { %v729_v41 = vadd.f32 %v2256_v48, %v2071_v46  ;;  %v2278_v58 = vadd.f32 %v2277_v57, %v2276_v54  ;;  %v2279_v21 = vpop.f32.mrb[2].mxu1 }
  0xfa   :  { %v2280_v59 = vpop.f32.mrb[3].mxu1 }
  0xfb   :  { %v769_v60 = vadd.f32 %v2278_v58, %v729_v41 }
 0x115   :  { %v2298_v18 = vpop.f32.mrb[4].mxu0 }
 0x116   :  { %v2299_v19 = vpop.f32.mrb[5].mxu0 }
 0x117   :  { %v2300_v20 = vadd.f32 %v2299_v19, %v2298_v18  ;;  %v2301_v23 = vpop.f32.mrb[6].mxu0  ;;  %v2320_v24 = vpop.f32.mrb[4].mxu1 }
 0x118   :  { %v2302_v25 = vpop.f32.mrb[7].mxu0  ;;  %v2321_v26 = vpop.f32.mrb[5].mxu1  ;;  %v2233_v23 = vcombine.high %v1695_v15, %v1699_v16 }
 0x119   :  { %v809_v50 = vadd.f32 %v2300_v20, %v769_v60  ;;  %v2322_v55 = vadd.f32 %v2321_v26, %v2320_v24  ;;  %v2323_v17 = vpop.f32.mrb[6].mxu1  ;;  %v2231_v20 = vcombine.high %v1694_v11, %v1698_v14  ;;  %v2230_v24 = vcombine.low %v1694_v11, %v1698_v14 }
 0x11a   :  { %v2324_v27 = vpop.f32.mrb[7].mxu1  ;;  %v2232_v25 = vcombine.low %v1695_v15, %v1699_v16 }
 0x11b   :  { %v849_v28 = vadd.f32 %v2322_v55, %v809_v50 }
 0x135   :  { %v888_v29 = vpop.f32.mrb[8].mxu0 }
 0x136   :  { %v889_v30 = vadd.f32 %v888_v29, %v849_v28  ;;  %v2450_v31 = vpop.f32.mrb[9].mxu0 }
 0x137   :  { %v891_v33 = vpop.f32.mrb[10].mxu0  ;;  %v2351_v34 = vpop.f32.mrb[8].mxu1 }
 0x138   :  { %v2451_v35 = vpop.f32.mrb[11].mxu0  ;;  %v2352_v36 = vpop.f32.mrb[9].mxu1  ;;  %1991 = vst.msk [vmem:[#allocation2] sm:$0x3] %vm1990_vm1, %v889_v30 }
 0x139   :  { %v2353_v37 = vadd.f32 %v2352_v36, %v2351_v34  ;;  %v2354_v38 = vpop.f32.mrb[10].mxu1 }
 0x13a   :  { %v2355_v39 = vpop.f32.mrb[11].mxu1 }
 0x13b   :  { %v1512_v44 = vadd.f32 %v2353_v37, %v2145_v40 }
 0x155   :  { %v2373_v42 = vpop.f32.mrb[12].mxu0 }
 0x156   :  { %v2374_v43 = vpop.f32.mrb[13].mxu0 }
 0x157   :  { %v2375_v46 = vadd.f32 %v2374_v43, %v2373_v42  ;;  %v2376_v47 = vpop.f32.mrb[14].mxu0  ;;  %v2395_v48 = vpop.f32.mrb[12].mxu1 }
 0x158   :  { %v2377_v51 = vpop.f32.mrb[15].mxu0  ;;  %v2396_v54 = vpop.f32.mrb[13].mxu1 }
 0x159   :  { %v1552_v56 = vadd.f32 %v2375_v46, %v1512_v44  ;;  %v2397_v57 = vadd.f32 %v2396_v54, %v2395_v48  ;;  %v2398_v41 = vpop.f32.mrb[14].mxu1 }
 0x15a   :  { %v2399_v58 = vpop.f32.mrb[15].mxu1 }
 0x15b   :  { %v1592_v21 = vadd.f32 %v2397_v57, %v1552_v56 }
 0x175   :  { %v2417_v59 = vpop.f32.mrb[16].mxu0 }
 0x176   :  { %v2418_v60 = vpop.f32.mrb[17].mxu0 }
 0x177   :  { %v2419_v22 = vadd.f32 %v2418_v60, %v2417_v59  ;;  %v2420_v53 = vpop.f32.mrb[18].mxu0  ;;  %v1671_v61 = vpop.f32.mrb[16].mxu1 }
 0x178   :  { %v2421_v62 = vpop.f32.mrb[19].mxu0  ;;  %v2470_v45 = vpop.f32.mrb[17].mxu1 }
 0x179   :  { %v1632_v52 = vadd.f32 %v2419_v22, %v1592_v21  ;;  %v1674_v49 = vpop.f32.mrb[18].mxu1 }
 0x17a   :  { %v2471_v63 = vpop.f32.mrb[19].mxu1 }
 0x17b   :  { %v1672_v1 = vadd.f32 %v1671_v61, %v1632_v52 }
 0x17d   :  { %v1677_v2 = vmul.f32 0.5, %v1672_v1  ;;  %1992 = vst.msk [vmem:[#allocation4] sm:$0x3] %vm1990_vm1, %v1672_v1 }
 0x17f   :  { %v1678_v3 = vmul.f32 1.442695, %v1677_v2 }
 0x181   :  { %2624 = vpow2.f32 %v1678_v3 }
 0x18b   :  { %v2625_v5 = vpop.eup %2624 }
 0x18c   :  { %v1681_v7 = vmul.f32 %v2625_v5, %v1680_v4 }
 0x18e   :  { %v1682_v18 = vadd.f32 %v1681_v7, %v889_v30 }
 0x190   :  { %v1683_v19 = vpack.c.bf16 %v1682_v18, %v1682_v18 }
 0x192   :  { %2234 = vmatmul.mubr.msk.bf16.vlgmr.msra.gmra.mrb[20].mxu0 %vm1822_vm2, %v1683_v19  ;;  %2235 = vmatmul.mubr.msk.bf16.vlgmr.msra.gmra.mrb[20].mxu1 %vm1822_vm2, %v1683_v19 }
 0x193   :  { %1909 = vmatpush1.bf16.msra.mxu0 %v2222_v12  ;;  %1950 = vmatpush1.bf16.msra.mxu1 %v2224_v13 }
 0x194   :  { %1910 = vmatprep.subr.bf16.mxu0 %v2231_v20  ;;  %1951 = vmatprep.subr.bf16.mxu1 %v2233_v23 }
 0x195   :  { %1940 = vmatprep.mubr.bf16.mxu0 %v2677_v0  ;;  %1981 = vmatprep.mubr.bf16.mxu1 %v2677_v0 }
 0x197   :  { %1911 = vmatpush1.bf16.msra.mxu0 %v2230_v24  ;;  %1952 = vmatpush1.bf16.msra.mxu1 %v2232_v25 }
 0x19a   :  { %2236 = vmatmul.mubr.msk.bf16.vlgmr.msra.gmra.mrb[24].mxu0 %vm1822_vm2, %v1683_v19  ;;  %2237 = vmatmul.mubr.msk.bf16.vlgmr.msra.gmra.mrb[24].mxu1 %vm1822_vm2, %v1683_v19 }
 0x19b   :  { %2637 = shalt.err (!%p2634_p4)
}
 0x19c   :  { %s2638_s29 = scalar_lea.hbm %s3394_s8, 32 }
 0x19d   :  { %p2639_p5 = scmp.ne.s32.totalorder %s3394_s8, %s2638_s29  ;;  %p2642_p6 = scmp.lt.u32.totalorder %s2638_s29, %s3394_s8 }
 0x19f   :  { %p2644_p7 = pnand %p2642_p6, %p2639_p5 }
 0x1a1   :  { %2647 = shalt.err (!%p2644_p7)
}
 0x1a2   :  { %2048 = dma.vmem_to_hbm [thread:$0]  %s2046_s6, 32, %s3394_s8, [#allocation3]  }
 0x1a3   :  { %s2648_s15 = scalar_lea.vmem %s2056_s25, 32  ;;  %p2653_p9 = scmp.lt.s32.totalorder %s2056_s25, %s2056_s25 }
 0x1a4   :  { %p2649_p8 = scmp.ne.s32.totalorder %s2056_s25, %s2648_s15  ;;  %p2654_p10 = scmp.lt.s32.totalorder %s2648_s15, %s2648_s15 }
 0x1a6   :  { %p2655_p11 = por %p2654_p10, %p2653_p9 }
 0x1a8   :  { %p2656_p12 = pnand %p2655_p11, %p2649_p8 }
 0x1aa   :  { %2659 = shalt.err (!%p2656_p12)
}
 0x1ab   :  { %s2660_s4 = scalar_lea.hbm %s3395_s9, 32 }
 0x1ac   :  { %p2661_p13 = scmp.ne.s32.totalorder %s3395_s9, %s2660_s4  ;;  %p2664_p0 = scmp.lt.u32.totalorder %s2660_s4, %s3395_s9 }
 0x1ae   :  { %p2666_p1 = pnand %p2664_p0, %p2661_p13 }
 0x1b0   :  { %2669 = shalt.err (!%p2666_p1)
}
 0x1b1   :  { %2058 = dma.vmem_to_hbm [thread:$0]  %s2056_s25, 32, %s3395_s9, [#allocation5]   ;;  %v2680_v0 = vmov 1983009808   ;;  %v1704_v8 = vsub.s32 0, %v2829_v32  ;;  %v1712_v9 = vsub.s32 2, %v2829_v32 }
 0x1b2   :  { %v2004_v6 = vunpack.c.l.s4 %v2680_v0  ;;  %v1700_v10 = vld [vmem:[%s3393_s7] sm:$0xff]  ;;  %v1708_v12 = vsub.s32 1, %v2829_v32  ;;  %v1716_v13 = vsub.s32 3, %v2829_v32  ;;  %v1720_v36 = vsub.s32 4, %v2829_v32 }
 0x1b3   :  { %v1705_v50 = vrot.slane %v1700_v10, %v1704_v8  ;;  %v1713_v55 = vrot.slane %v1700_v10, %v1712_v9  ;;  %v1728_v37 = vsub.s32 6, %v2829_v32  ;;  %v1724_v43 = vsub.s32 5, %v2829_v32 }
 0x1b4   :  { %v2005_v26 = vunpack.c.0.s8 %v2004_v6  ;;  %v1709_v17 = vrot.slane %v1700_v10, %v1708_v12  ;;  %v1717_v27 = vrot.slane %v1700_v10, %v1716_v13  ;;  %v1732_v44 = vsub.s32 7, %v2829_v32 }
 0x1b5   :  { %v1721_v54 = vrot.slane %v1700_v10, %v1720_v36  ;;  %v1729_v56 = vrot.slane %v1700_v10, %v1728_v37  ;;  %v1725_v58 = vrot.slane %v1700_v10, %v1724_v43 }
 0x1b6   :  { %v2008_v30 = vsub.s32 %v2005_v26, %v2829_v32  ;;  %v1733_v21 = vrot.slane %v1700_v10, %v1732_v44 }
 0x265   :  { %v1860_v28 = vpop.f32.mrb[20].mxu0  ;;  %v1901_v29 = vpop.f32.mrb[20].mxu1 }
 0x266   :  { %v1861_v31 = vadd.f32 %v1860_v28, %v1705_v50  ;;  %v1902_v33 = vadd.f32 %v1901_v29, %v1713_v55  ;;  %v1862_v34 = vpop.f32.mrb[21].mxu0  ;;  %v1903_v35 = vpop.f32.mrb[21].mxu1 }
 0x267   :  { %v1863_v38 = vadd.f32 %v1862_v34, %v1709_v17  ;;  %v1904_v39 = vadd.f32 %v1903_v35, %v1717_v27  ;;  %v1864_v40 = vpop.f32.mrb[22].mxu0  ;;  %v1905_v42 = vpop.f32.mrb[22].mxu1 }
 0x268   :  { %v1865_v46 = vpop.f32.mrb[23].mxu0  ;;  %v1906_v47 = vpop.f32.mrb[23].mxu1 }
 0x269   :  { %v2001_v48 = vcombine.low %v1861_v31, %v1863_v38  ;;  %v2002_v51 = vcombine.low %v1902_v33, %v1904_v39 }
 0x26b   :  { %v2009_v57 = vrot.slane %v2001_v48, %v2008_v30  ;;  %v2016_v41 = vrot.slane %v2002_v51, %v2008_v30 }
 0x26d   :  { %v2017_v59 = vcombine.low %v2009_v57, %v2016_v41  ;;  %v1942_v60 = vpop.f32.mrb[24].mxu0  ;;  %v1983_v22 = vpop.f32.mrb[24].mxu1 }
 0x26e   :  { %v1943_v53 = vadd.f32 %v1942_v60, %v1721_v54  ;;  %v1984_v61 = vadd.f32 %v1983_v22, %v1729_v56  ;;  %v1944_v62 = vpop.f32.mrb[25].mxu0  ;;  %v1985_v45 = vpop.f32.mrb[25].mxu1 }
 0x26f   :  { %2037 = vst [vmem:[%s3396_s10] sm:$0xff] %v2017_v59  ;;  %v1945_v32 = vadd.f32 %v1944_v62, %v1725_v58  ;;  %v1986_v52 = vadd.f32 %v1985_v45, %v1733_v21  ;;  %v1946_v49 = vpop.f32.mrb[26].mxu0  ;;  %v1987_v63 = vpop.f32.mrb[26].mxu1 }
 0x270   :  { %v1947_v1 = vpop.f32.mrb[27].mxu0  ;;  %v1988_v2 = vpop.f32.mrb[27].mxu1 }
 0x271   :  { %v2018_v3 = vcombine.low %v1943_v53, %v1945_v32  ;;  %v2019_v4 = vcombine.low %v1984_v61, %v1986_v52 }
 0x273   :  { %v2026_v5 = vrot.slane %v2018_v3, %v2008_v30  ;;  %v2033_v7 = vrot.slane %v2019_v4, %v2008_v30 }
 0x275   :  { %v2034_v11 = vcombine.low %v2026_v5, %v2033_v7 }
 0x277   :  { %2038 = vst [vmem:[%s3396_s10 + $0x8] sm:$0xff] %v2034_v11 }
 0x278   :  { %2670 = dma.done.wait [#allocation3], 32  }
 0x279   :  { %2671 = vsyncadd [#allocation3], 4294967264 }
 0x27a   :  { %2672 = dma.done.wait [#allocation5], 32  }
 0x27b   :  { %2673 = vsyncadd [#allocation5], 4294967264 }
 0x27c   :  { %2069 = vsyncpa [#allocation3], 1 }
 0x27d   :  { %2070 = vsyncpa [#allocation5], 1 }

// kernel: vae_forward.12
= control target key start
LH: loop header
LB: loop body
LE: loop exit
PB: predicated region body
PF: predicated region fallthrough
CT: control target
= control target key end

     0   :  { %v273_v36 = vlaneseq  ;;  %v2661_v37 = vmov 1966171168   ;;  %s3494_s1 = inlined_call_operand.vmem [shape: bf16[1024,512], index: 1, kind: input, shape index: {}]   ;;  %s3495_s0 = inlined_call_operand.vmem [shape: bf16[2,1024], index: 0, kind: input, shape index: {}]   ;;  %s3496_s2 = inlined_call_operand.vmem [shape: f32[1,512], index: 2, kind: input, shape index: {}]   ;;  %s3497_s3 = inlined_call_operand.vmem [shape: f32[2,512], index: 3, kind: output, shape index: {}]  }
   0x1   :  { %v2276_v0 = vld [vmem:[%s3494_s1 + $0x4] ss:$16 sps:$4 sm:$0xff]   ;;  %v2278_v1 = vld [vmem:[%s3494_s1 + $0xc] ss:$16 sps:$4 sm:$0xff]   ;;  %v2280_v2 = vld [vmem:[%s3494_s1] ss:$16 sps:$4 sm:$0xff]   ;;  %v296_v38 = vunpack.c.l.s4 %v2661_v37 }
   0x2   :  { %1631 = vmatprep.subr.bf16.mxu0 %v2276_v0  ;;  %v2281_v3 = vld [vmem:[%s3494_s1 + $0x8] ss:$16 sps:$4 sm:$0xff]   ;;  %1795 = vmatprep.subr.bf16.mxu1 %v2278_v1  ;;  %v2282_v4 = vld [vmem:[%s3494_s1 + $0x24] ss:$16 sps:$4 sm:$0xff]   ;;  %v2284_v5 = vld [vmem:[%s3494_s1 + $0x2c] ss:$16 sps:$4 sm:$0xff]  }
   0x3   :  { %1632 = vmatpush1.bf16.msra.mxu0 %v2280_v2  ;;  %1796 = vmatpush1.bf16.msra.mxu1 %v2281_v3  ;;  %v2286_v6 = vld [vmem:[%s3494_s1 + $0x20] ss:$16 sps:$4 sm:$0xff]   ;;  %v2287_v7 = vld [vmem:[%s3494_s1 + $0x28] ss:$16 sps:$4 sm:$0xff]   ;;  %v2288_v8 = vld [vmem:[%s3494_s1 + $0x44] ss:$16 sps:$4 sm:$0xff]   ;;  %v297_v43 = vunpack.c.0.s8 %v296_v38 }
   0x4   :  { %1633 = vmatprep.subr.bf16.mxu0 %v2282_v4  ;;  %1797 = vmatprep.subr.bf16.mxu1 %v2284_v5  ;;  %v2290_v9 = vld [vmem:[%s3494_s1 + $0x4c] ss:$16 sps:$4 sm:$0xff]   ;;  %v2292_v10 = vld [vmem:[%s3494_s1 + $0x40] ss:$16 sps:$4 sm:$0xff]   ;;  %v2293_v11 = vld [vmem:[%s3494_s1 + $0x48] ss:$16 sps:$4 sm:$0xff]  }
   0x5   :  { %v2294_v12 = vld [vmem:[%s3494_s1 + $0x64] ss:$16 sps:$4 sm:$0xff]   ;;  %v2296_v13 = vld [vmem:[%s3494_s1 + $0x6c] ss:$16 sps:$4 sm:$0xff]   ;;  %v2298_v14 = vld [vmem:[%s3494_s1 + $0x60] ss:$16 sps:$4 sm:$0xff]  }
   0x6   :  { %v2299_v15 = vld [vmem:[%s3494_s1 + $0x68] ss:$16 sps:$4 sm:$0xff]   ;;  %v2300_v16 = vld [vmem:[%s3494_s1 + $0x84] ss:$16 sps:$4 sm:$0xff]   ;;  %v2302_v17 = vld [vmem:[%s3494_s1 + $0x8c] ss:$16 sps:$4 sm:$0xff]  }
   0x7   :  { %1634 = vmatpush1.bf16.msra.mxu0 %v2286_v6  ;;  %1798 = vmatpush1.bf16.msra.mxu1 %v2287_v7  ;;  %v2304_v18 = vld [vmem:[%s3494_s1 + $0x80] ss:$16 sps:$4 sm:$0xff]   ;;  %v2305_v19 = vld [vmem:[%s3494_s1 + $0x88] ss:$16 sps:$4 sm:$0xff]   ;;  %v2306_v20 = vld [vmem:[%s3494_s1 + $0xa4] ss:$16 sps:$4 sm:$0xff]  }
   0x8   :  { %1635 = vmatprep.subr.bf16.mxu0 %v2288_v8  ;;  %1799 = vmatprep.subr.bf16.mxu1 %v2290_v9  ;;  %v2308_v21 = vld [vmem:[%s3494_s1 + $0xac] ss:$16 sps:$4 sm:$0xff]   ;;  %v2310_v22 = vld [vmem:[%s3494_s1 + $0xa0] ss:$16 sps:$4 sm:$0xff]   ;;  %v2311_v23 = vld [vmem:[%s3494_s1 + $0xa8] ss:$16 sps:$4 sm:$0xff]  }
   0x9   :  { %v2312_v24 = vld [vmem:[%s3494_s1 + $0xc4] ss:$16 sps:$4 sm:$0xff]   ;;  %v2314_v25 = vld [vmem:[%s3494_s1 + $0xcc] ss:$16 sps:$4 sm:$0xff]   ;;  %v2316_v26 = vld [vmem:[%s3494_s1 + $0xc0] ss:$16 sps:$4 sm:$0xff]  }
   0xa   :  { %v2317_v27 = vld [vmem:[%s3494_s1 + $0xc8] ss:$16 sps:$4 sm:$0xff]   ;;  %v2318_v28 = vld [vmem:[%s3494_s1 + $0xe4] ss:$16 sps:$4 sm:$0xff]   ;;  %v2320_v29 = vld [vmem:[%s3494_s1 + $0xec] ss:$16 sps:$4 sm:$0xff]  }
   0xb   :  { %1636 = vmatpush1.bf16.msra.mxu0 %v2292_v10  ;;  %1800 = vmatpush1.bf16.msra.mxu1 %v2293_v11  ;;  %v2322_v30 = vld [vmem:[%s3494_s1 + $0xe0] ss:$16 sps:$4 sm:$0xff]   ;;  %v2323_v31 = vld [vmem:[%s3494_s1 + $0xe8] ss:$16 sps:$4 sm:$0xff]   ;;  %v2324_v32 = vld [vmem:[%s3494_s1 + $0x104] ss:$16 sps:$4 sm:$0xff]  }
   0xc   :  { %1637 = vmatprep.subr.bf16.mxu0 %v2294_v12  ;;  %1801 = vmatprep.subr.bf16.mxu1 %v2296_v13  ;;  %v2326_v33 = vld [vmem:[%s3494_s1 + $0x10c] ss:$16 sps:$4 sm:$0xff]   ;;  %v2328_v34 = vld [vmem:[%s3494_s1 + $0x100] ss:$16 sps:$4 sm:$0xff]   ;;  %v2329_v35 = vld [vmem:[%s3494_s1 + $0x108] ss:$16 sps:$4 sm:$0xff]  }
   0xd   :  { %v2330_v39 = vld [vmem:[%s3494_s1 + $0x124] ss:$16 sps:$4 sm:$0xff]   ;;  %v2332_v40 = vld [vmem:[%s3494_s1 + $0x12c] ss:$16 sps:$4 sm:$0xff]   ;;  %v2334_v41 = vld [vmem:[%s3494_s1 + $0x120] ss:$16 sps:$4 sm:$0xff]  }
   0xe   :  { %v2800_v42 = vshrl.u32 %v273_v36, 7  ;;  %v2335_v44 = vld [vmem:[%s3494_s1 + $0x128] ss:$16 sps:$4 sm:$0xff]   ;;  %v2336_v45 = vld [vmem:[%s3494_s1 + $0x144] ss:$16 sps:$4 sm:$0xff]  }
   0xf   :  { %1638 = vmatpush1.bf16.msra.mxu0 %v2298_v14  ;;  %1802 = vmatpush1.bf16.msra.mxu1 %v2299_v15  ;;  %v2338_v46 = vld [vmem:[%s3494_s1 + $0x14c] ss:$16 sps:$4 sm:$0xff]   ;;  %v2340_v47 = vld [vmem:[%s3494_s1 + $0x140] ss:$16 sps:$4 sm:$0xff]   ;;  %v2341_v48 = vld [vmem:[%s3494_s1 + $0x148] ss:$16 sps:$4 sm:$0xff]  }
  0x10   :  { %1639 = vmatprep.subr.bf16.mxu0 %v2300_v16  ;;  %1803 = vmatprep.subr.bf16.mxu1 %v2302_v17  ;;  %v2818_v49 = vsub.s32 %v297_v43, %v2800_v42  ;;  %v2342_v50 = vld [vmem:[%s3494_s1 + $0x164] ss:$16 sps:$4 sm:$0xff]   ;;  %v2344_v51 = vld [vmem:[%s3494_s1 + $0x16c] ss:$16 sps:$4 sm:$0xff]   ;;  %v2346_v53 = vld [vmem:[%s3494_s1 + $0x160] ss:$16 sps:$4 sm:$0xff]  }
  0x11   :  { %v14_v52 = vld [vmem:[%s3495_s0] sm:$0xff]  ;;  %v2347_v55 = vld [vmem:[%s3494_s1 + $0x168] ss:$16 sps:$4 sm:$0xff]   ;;  %v2350_v57 = vld [vmem:[%s3494_s1 + $0x18c] ss:$16 sps:$4 sm:$0xff]  }
  0x12   :  { %v301_v54 = vrot.slane %v14_v52, %v2818_v49  ;;  %v2348_v56 = vld [vmem:[%s3494_s1 + $0x184] ss:$16 sps:$4 sm:$0xff]   ;;  %v2352_v59 = vld [vmem:[%s3494_s1 + $0x180] ss:$16 sps:$4 sm:$0xff]   ;;  %v2353_v61 = vld [vmem:[%s3494_s1 + $0x188] ss:$16 sps:$4 sm:$0xff]   ;;  %v294_v9 = vcombine.high %v14_v52, %v14_v52 }
  0x13   :  { %1640 = vmatpush1.bf16.msra.mxu0 %v2304_v18  ;;  %1804 = vmatpush1.bf16.msra.mxu1 %v2305_v19  ;;  %v2354_v62 = vld [vmem:[%s3494_s1 + $0x1a4] ss:$16 sps:$4 sm:$0xff]   ;;  %v2356_v63 = vld [vmem:[%s3494_s1 + $0x1ac] ss:$16 sps:$4 sm:$0xff]   ;;  %v2358_v0 = vld [vmem:[%s3494_s1 + $0x1a0] ss:$16 sps:$4 sm:$0xff]  }
  0x14   :  { %1641 = vmatprep.subr.bf16.mxu0 %v2306_v20  ;;  %1805 = vmatprep.subr.bf16.mxu1 %v2308_v21  ;;  %v309_v58 = vcombine.high %v301_v54, %v301_v54  ;;  %v2359_v1 = vld [vmem:[%s3494_s1 + $0x1a8] ss:$16 sps:$4 sm:$0xff]   ;;  %v2360_v2 = vld [vmem:[%s3494_s1 + $0x1c4] ss:$16 sps:$4 sm:$0xff]   ;;  %v2362_v3 = vld [vmem:[%s3494_s1 + $0x1cc] ss:$16 sps:$4 sm:$0xff]   ;;  %v308_v13 = vrot.slane %v294_v9, %v2818_v49  ;;  %v2896_v15 = vrot.slane %v301_v54, %v2818_v49 }
  0x15   :  { %v2364_v4 = vld [vmem:[%s3494_s1 + $0x1c0] ss:$16 sps:$4 sm:$0xff]   ;;  %v2365_v5 = vld [vmem:[%s3494_s1 + $0x1c8] ss:$16 sps:$4 sm:$0xff]   ;;  %v2366_v6 = vld [vmem:[%s3494_s1 + $0x1e4] ss:$16 sps:$4 sm:$0xff]  }
  0x16   :  { %v331_v60 = vrot.slane %v309_v58, %v2818_v49  ;;  %v2368_v7 = vld [vmem:[%s3494_s1 + $0x1ec] ss:$16 sps:$4 sm:$0xff]   ;;  %v2370_v8 = vld [vmem:[%s3494_s1 + $0x1e0] ss:$16 sps:$4 sm:$0xff]   ;;  %v2371_v10 = vld [vmem:[%s3494_s1 + $0x1e8] ss:$16 sps:$4 sm:$0xff]   ;;  %v310_v16 = vcombine.high %v308_v13, %v308_v13  ;;  %v2911_v21 = vrot.slane %v308_v13, %v2818_v49 }
  0x17   :  { %1642 = vmatpush1.bf16.msra.mxu0 %v2310_v22  ;;  %1806 = vmatpush1.bf16.msra.mxu1 %v2311_v23  ;;  %v2374_v11 = vld [vmem:[%s3494_s1 + $0x204] ss:$16 sps:$4 sm:$0xff]   ;;  %v2377_v12 = vld [vmem:[%s3494_s1 + $0x20c] ss:$16 sps:$4 sm:$0xff]   ;;  %v2372_v14 = vld [vmem:[%s3494_s1 + $0x200] ss:$16 sps:$4 sm:$0xff]  }
  0x18   :  { %1643 = vmatprep.subr.bf16.mxu0 %v2312_v24  ;;  %1807 = vmatprep.subr.bf16.mxu1 %v2314_v25  ;;  %v2375_v17 = vld [vmem:[%s3494_s1 + $0x208] ss:$16 sps:$4 sm:$0xff]   ;;  %v2380_v18 = vld [vmem:[%s3494_s1 + $0x224] ss:$16 sps:$4 sm:$0xff]   ;;  %v2383_v19 = vld [vmem:[%s3494_s1 + $0x22c] ss:$16 sps:$4 sm:$0xff]   ;;  %v2908_v20 = vrot.slane %v310_v16, %v2818_v49  ;;  %v341_v22 = vcombine.high %v331_v60, %v331_v60 }
  0x19   :  { %1663 = vmatprep.mubr.bf16.mxu0 %v331_v60  ;;  %1827 = vmatprep.mubr.bf16.mxu1 %v331_v60  ;;  %v2378_v23 = vld [vmem:[%s3494_s1 + $0x220] ss:$16 sps:$4 sm:$0xff]   ;;  %v2381_v24 = vld [vmem:[%s3494_s1 + $0x228] ss:$16 sps:$4 sm:$0xff]   ;;  %v2386_v25 = vld [vmem:[%s3494_s1 + $0x244] ss:$16 sps:$4 sm:$0xff]  }
  0x1a   :  { %v2399_v36 = vld [vmem:[%s3494_s1 + $0x288] ss:$16 sps:$4 sm:$0xff]   ;;  %v2404_v37 = vld [vmem:[%s3494_s1 + $0x2a4] ss:$16 sps:$4 sm:$0xff]   ;;  %v2407_v38 = vld [vmem:[%s3494_s1 + $0x2ac] ss:$16 sps:$4 sm:$0xff]  }
  0x1b   :  { %1644 = vmatpush1.bf16.msra.mxu0 %v2316_v26  ;;  %1808 = vmatpush1.bf16.msra.mxu1 %v2317_v27  ;;  %v2389_v26 = vld [vmem:[%s3494_s1 + $0x24c] ss:$16 sps:$4 sm:$0xff]   ;;  %v2384_v27 = vld [vmem:[%s3494_s1 + $0x240] ss:$16 sps:$4 sm:$0xff]   ;;  %v2417_v49 = vld [vmem:[%s3494_s1 + $0x2e8] ss:$16 sps:$4 sm:$0xff]  }
  0x1c   :  { %1645 = vmatprep.subr.bf16.mxu0 %v2318_v28  ;;  %1809 = vmatprep.subr.bf16.mxu1 %v2320_v29  ;;  %v2387_v28 = vld [vmem:[%s3494_s1 + $0x248] ss:$16 sps:$4 sm:$0xff]   ;;  %v2392_v29 = vld [vmem:[%s3494_s1 + $0x264] ss:$16 sps:$4 sm:$0xff]   ;;  %v2413_v43 = vld [vmem:[%s3494_s1 + $0x2cc] ss:$16 sps:$4 sm:$0xff]  }
  0x1d   :  { %v2420_v52 = vld [vmem:[%s3494_s1 + $0x300] ss:$16 sps:$4 sm:$0xff]   ;;  %v2428_v54 = vld [vmem:[%s3494_s1 + $0x324] ss:$16 sps:$4 sm:$0xff]   ;;  %v2453_v9 = vld [vmem:[%s3494_s1 + $0x3a8] ss:$16 sps:$4 sm:$0xff]  }
  0x1e   :  { %v2434_v58 = vld [vmem:[%s3494_s1 + $0x344] ss:$16 sps:$4 sm:$0xff]   ;;  %v2432_v60 = vld [vmem:[%s3494_s1 + $0x340] ss:$16 sps:$4 sm:$0xff]   ;;  %v2459_v13 = vld [vmem:[%s3494_s1 + $0x3c8] ss:$16 sps:$4 sm:$0xff]  }
  0x1f   :  { %1646 = vmatpush1.bf16.msra.mxu0 %v2322_v30  ;;  %1810 = vmatpush1.bf16.msra.mxu1 %v2323_v31  ;;  %v2395_v30 = vld [vmem:[%s3494_s1 + $0x26c] ss:$16 sps:$4 sm:$0xff]   ;;  %v2390_v31 = vld [vmem:[%s3494_s1 + $0x260] ss:$16 sps:$4 sm:$0xff]  }
  0x20   :  { %1647 = vmatprep.subr.bf16.mxu0 %v2324_v32  ;;  %1811 = vmatprep.subr.bf16.mxu1 %v2326_v33  ;;  %v2393_v32 = vld [vmem:[%s3494_s1 + $0x268] ss:$16 sps:$4 sm:$0xff]   ;;  %v2398_v33 = vld [vmem:[%s3494_s1 + $0x284] ss:$16 sps:$4 sm:$0xff]   ;;  %v2467_v16 = vld [vmem:[%s3494_s1 + $0x3ec] ss:$16 sps:$4 sm:$0xff]  }
  0x23   :  { %1648 = vmatpush1.bf16.msra.mxu0 %v2328_v34  ;;  %1812 = vmatpush1.bf16.msra.mxu1 %v2329_v35  ;;  %v2401_v34 = vld [vmem:[%s3494_s1 + $0x28c] ss:$16 sps:$4 sm:$0xff]   ;;  %v2396_v35 = vld [vmem:[%s3494_s1 + $0x280] ss:$16 sps:$4 sm:$0xff]  }
  0x24   :  { %1649 = vmatprep.subr.bf16.mxu0 %v2330_v39  ;;  %1813 = vmatprep.subr.bf16.mxu1 %v2332_v40  ;;  %v2402_v39 = vld [vmem:[%s3494_s1 + $0x2a0] ss:$16 sps:$4 sm:$0xff]   ;;  %v2405_v40 = vld [vmem:[%s3494_s1 + $0x2a8] ss:$16 sps:$4 sm:$0xff]  }
  0x27   :  { %1650 = vmatpush1.bf16.msra.mxu0 %v2334_v41  ;;  %1814 = vmatpush1.bf16.msra.mxu1 %v2335_v44  ;;  %v2410_v41 = vld [vmem:[%s3494_s1 + $0x2c4] ss:$16 sps:$4 sm:$0xff]   ;;  %v2408_v44 = vld [vmem:[%s3494_s1 + $0x2c0] ss:$16 sps:$4 sm:$0xff]  }
  0x28   :  { %1651 = vmatprep.subr.bf16.mxu0 %v2336_v45  ;;  %1815 = vmatprep.subr.bf16.mxu1 %v2338_v46  ;;  %v2411_v45 = vld [vmem:[%s3494_s1 + $0x2c8] ss:$16 sps:$4 sm:$0xff]   ;;  %v2416_v46 = vld [vmem:[%s3494_s1 + $0x2e4] ss:$16 sps:$4 sm:$0xff]  }
  0x2b   :  { %1652 = vmatpush1.bf16.msra.mxu0 %v2340_v47  ;;  %1816 = vmatpush1.bf16.msra.mxu1 %v2341_v48  ;;  %v2419_v47 = vld [vmem:[%s3494_s1 + $0x2ec] ss:$16 sps:$4 sm:$0xff]   ;;  %v2414_v48 = vld [vmem:[%s3494_s1 + $0x2e0] ss:$16 sps:$4 sm:$0xff]  }
  0x2c   :  { %1653 = vmatprep.subr.bf16.mxu0 %v2342_v50  ;;  %1817 = vmatprep.subr.bf16.mxu1 %v2344_v51  ;;  %v2422_v50 = vld [vmem:[%s3494_s1 + $0x304] ss:$16 sps:$4 sm:$0xff]   ;;  %v2425_v51 = vld [vmem:[%s3494_s1 + $0x30c] ss:$16 sps:$4 sm:$0xff]  }
  0x2f   :  { %1654 = vmatpush1.bf16.msra.mxu0 %v2346_v53  ;;  %1818 = vmatpush1.bf16.msra.mxu1 %v2347_v55  ;;  %v2423_v53 = vld [vmem:[%s3494_s1 + $0x308] ss:$16 sps:$4 sm:$0xff]   ;;  %v2431_v55 = vld [vmem:[%s3494_s1 + $0x32c] ss:$16 sps:$4 sm:$0xff]  }
  0x30   :  { %1655 = vmatprep.subr.bf16.mxu0 %v2348_v56  ;;  %1819 = vmatprep.subr.bf16.mxu1 %v2350_v57  ;;  %v2426_v56 = vld [vmem:[%s3494_s1 + $0x320] ss:$16 sps:$4 sm:$0xff]   ;;  %v2429_v57 = vld [vmem:[%s3494_s1 + $0x328] ss:$16 sps:$4 sm:$0xff]  }
  0x33   :  { %1656 = vmatpush1.bf16.msra.mxu0 %v2352_v59  ;;  %1820 = vmatpush1.bf16.msra.mxu1 %v2353_v61  ;;  %v2437_v59 = vld [vmem:[%s3494_s1 + $0x34c] ss:$16 sps:$4 sm:$0xff]   ;;  %v2435_v61 = vld [vmem:[%s3494_s1 + $0x348] ss:$16 sps:$4 sm:$0xff]  }
  0x34   :  { %1657 = vmatprep.subr.bf16.mxu0 %v2354_v62  ;;  %1821 = vmatprep.subr.bf16.mxu1 %v2356_v63  ;;  %v2440_v62 = vld [vmem:[%s3494_s1 + $0x364] ss:$16 sps:$4 sm:$0xff]   ;;  %v2443_v63 = vld [vmem:[%s3494_s1 + $0x36c] ss:$16 sps:$4 sm:$0xff]  }
  0x37   :  { %1658 = vmatpush1.bf16.msra.mxu0 %v2358_v0  ;;  %1822 = vmatpush1.bf16.msra.mxu1 %v2359_v1  ;;  %v2438_v0 = vld [vmem:[%s3494_s1 + $0x360] ss:$16 sps:$4 sm:$0xff]   ;;  %v2441_v1 = vld [vmem:[%s3494_s1 + $0x368] ss:$16 sps:$4 sm:$0xff]  }
  0x38   :  { %1659 = vmatprep.subr.bf16.mxu0 %v2360_v2  ;;  %1823 = vmatprep.subr.bf16.mxu1 %v2362_v3  ;;  %v2446_v2 = vld [vmem:[%s3494_s1 + $0x384] ss:$16 sps:$4 sm:$0xff]   ;;  %v2449_v3 = vld [vmem:[%s3494_s1 + $0x38c] ss:$16 sps:$4 sm:$0xff]  }
  0x3b   :  { %1660 = vmatpush1.bf16.msra.mxu0 %v2364_v4  ;;  %1824 = vmatpush1.bf16.msra.mxu1 %v2365_v5  ;;  %v2444_v4 = vld [vmem:[%s3494_s1 + $0x380] ss:$16 sps:$4 sm:$0xff]   ;;  %v2447_v5 = vld [vmem:[%s3494_s1 + $0x388] ss:$16 sps:$4 sm:$0xff]  }
  0x3c   :  { %1661 = vmatprep.subr.bf16.mxu0 %v2366_v6  ;;  %1825 = vmatprep.subr.bf16.mxu1 %v2368_v7  ;;  %v2452_v6 = vld [vmem:[%s3494_s1 + $0x3a4] ss:$16 sps:$4 sm:$0xff]   ;;  %v2455_v7 = vld [vmem:[%s3494_s1 + $0x3ac] ss:$16 sps:$4 sm:$0xff]  }
  0x3f   :  { %1662 = vmatpush1.bf16.msra.mxu0 %v2370_v8  ;;  %1826 = vmatpush1.bf16.msra.mxu1 %v2371_v10  ;;  %v2450_v8 = vld [vmem:[%s3494_s1 + $0x3a0] ss:$16 sps:$4 sm:$0xff]   ;;  %v2458_v10 = vld [vmem:[%s3494_s1 + $0x3c4] ss:$16 sps:$4 sm:$0xff]  }
  0x40   :  { %1672 = vmatprep.subr.bf16.mxu0 %v2374_v11  ;;  %1836 = vmatprep.subr.bf16.mxu1 %v2377_v12  ;;  %v2461_v11 = vld [vmem:[%s3494_s1 + $0x3cc] ss:$16 sps:$4 sm:$0xff]   ;;  %v2456_v12 = vld [vmem:[%s3494_s1 + $0x3c0] ss:$16 sps:$4 sm:$0xff]  }
  0x42   :  { %1664 = vmatmul.mubr.bf16.vlgmr.msra.gmra.mrb[0].mxu0 %v2896_v15  ;;  %1828 = vmatmul.mubr.bf16.vlgmr.msra.gmra.mrb[0].mxu1 %v2896_v15 }
  0x43   :  { %1673 = vmatpush1.bf16.msra.mxu0 %v2372_v14  ;;  %1837 = vmatpush1.bf16.msra.mxu1 %v2375_v17  ;;  %v2464_v14 = vld [vmem:[%s3494_s1 + $0x3e4] ss:$16 sps:$4 sm:$0xff]   ;;  %v2462_v17 = vld [vmem:[%s3494_s1 + $0x3e0] ss:$16 sps:$4 sm:$0xff]  }
  0x44   :  { %1674 = vmatprep.subr.bf16.mxu0 %v2380_v18  ;;  %1838 = vmatprep.subr.bf16.mxu1 %v2383_v19  ;;  %v2465_v18 = vld [vmem:[%s3494_s1 + $0x3e8] ss:$16 sps:$4 sm:$0xff]   ;;  %v2470_v19 = vld [vmem:[%s3494_s1 + $0x404] ss:$16 sps:$4 sm:$0xff]  }
  0x45   :  { %1704 = vmatprep.mubr.bf16.mxu0 %v341_v22  ;;  %1868 = vmatprep.mubr.bf16.mxu1 %v341_v22  ;;  %v2473_v22 = vld [vmem:[%s3494_s1 + $0x40c] ss:$16 sps:$4 sm:$0xff]  }
  0x47   :  { %1675 = vmatpush1.bf16.msra.mxu0 %v2378_v23  ;;  %1839 = vmatpush1.bf16.msra.mxu1 %v2381_v24  ;;  %v2468_v23 = vld [vmem:[%s3494_s1 + $0x400] ss:$16 sps:$4 sm:$0xff]   ;;  %v339_v24 = vcombine.high %v2896_v15, %v2896_v15 }
  0x48   :  { %1676 = vmatprep.subr.bf16.mxu0 %v2386_v25  ;;  %1840 = vmatprep.subr.bf16.mxu1 %v2389_v26  ;;  %v2471_v25 = vld [vmem:[%s3494_s1 + $0x408] ss:$16 sps:$4 sm:$0xff]   ;;  %v2476_v26 = vld [vmem:[%s3494_s1 + $0x424] ss:$16 sps:$4 sm:$0xff]   ;;  %v2474_v15 = vld [vmem:[%s3494_s1 + $0x420] ss:$16 sps:$4 sm:$0xff]  }
  0x4b   :  { %1677 = vmatpush1.bf16.msra.mxu0 %v2384_v27  ;;  %1841 = vmatpush1.bf16.msra.mxu1 %v2387_v28  ;;  %v2479_v27 = vld [vmem:[%s3494_s1 + $0x42c] ss:$16 sps:$4 sm:$0xff]   ;;  %v2477_v28 = vld [vmem:[%s3494_s1 + $0x428] ss:$16 sps:$4 sm:$0xff]  }
  0x4c   :  { %1678 = vmatprep.subr.bf16.mxu0 %v2392_v29  ;;  %1842 = vmatprep.subr.bf16.mxu1 %v2395_v30  ;;  %v2482_v29 = vld [vmem:[%s3494_s1 + $0x444] ss:$16 sps:$4 sm:$0xff]   ;;  %v2485_v30 = vld [vmem:[%s3494_s1 + $0x44c] ss:$16 sps:$4 sm:$0xff]  }
  0x4f   :  { %1679 = vmatpush1.bf16.msra.mxu0 %v2390_v31  ;;  %1843 = vmatpush1.bf16.msra.mxu1 %v2393_v32  ;;  %v2480_v31 = vld [vmem:[%s3494_s1 + $0x440] ss:$16 sps:$4 sm:$0xff]   ;;  %v2483_v32 = vld [vmem:[%s3494_s1 + $0x448] ss:$16 sps:$4 sm:$0xff]  }
  0x50   :  { %1680 = vmatprep.subr.bf16.mxu0 %v2398_v33  ;;  %1844 = vmatprep.subr.bf16.mxu1 %v2401_v34  ;;  %v2488_v33 = vld [vmem:[%s3494_s1 + $0x464] ss:$16 sps:$4 sm:$0xff]   ;;  %v2491_v34 = vld [vmem:[%s3494_s1 + $0x46c] ss:$16 sps:$4 sm:$0xff]  }
  0x53   :  { %1681 = vmatpush1.bf16.msra.mxu0 %v2396_v35  ;;  %1845 = vmatpush1.bf16.msra.mxu1 %v2399_v36  ;;  %v2486_v35 = vld [vmem:[%s3494_s1 + $0x460] ss:$16 sps:$4 sm:$0xff]   ;;  %v2489_v36 = vld [vmem:[%s3494_s1 + $0x468] ss:$16 sps:$4 sm:$0xff]  }
  0x54   :  { %1682 = vmatprep.subr.bf16.mxu0 %v2404_v37  ;;  %1846 = vmatprep.subr.bf16.mxu1 %v2407_v38  ;;  %v2494_v37 = vld [vmem:[%s3494_s1 + $0x484] ss:$16 sps:$4 sm:$0xff]   ;;  %v2497_v38 = vld [vmem:[%s3494_s1 + $0x48c] ss:$16 sps:$4 sm:$0xff]  }
  0x57   :  { %1683 = vmatpush1.bf16.msra.mxu0 %v2402_v39  ;;  %1847 = vmatpush1.bf16.msra.mxu1 %v2405_v40  ;;  %v2492_v39 = vld [vmem:[%s3494_s1 + $0x480] ss:$16 sps:$4 sm:$0xff]   ;;  %v2495_v40 = vld [vmem:[%s3494_s1 + $0x488] ss:$16 sps:$4 sm:$0xff]  }
  0x58   :  { %1684 = vmatprep.subr.bf16.mxu0 %v2410_v41  ;;  %1848 = vmatprep.subr.bf16.mxu1 %v2413_v43  ;;  %v2500_v41 = vld [vmem:[%s3494_s1 + $0x4a4] ss:$16 sps:$4 sm:$0xff]   ;;  %v2503_v43 = vld [vmem:[%s3494_s1 + $0x4ac] ss:$16 sps:$4 sm:$0xff]  }
  0x5b   :  { %1685 = vmatpush1.bf16.msra.mxu0 %v2408_v44  ;;  %1849 = vmatpush1.bf16.msra.mxu1 %v2411_v45  ;;  %v2498_v44 = vld [vmem:[%s3494_s1 + $0x4a0] ss:$16 sps:$4 sm:$0xff]   ;;  %v2501_v45 = vld [vmem:[%s3494_s1 + $0x4a8] ss:$16 sps:$4 sm:$0xff]  }
  0x5c   :  { %1686 = vmatprep.subr.bf16.mxu0 %v2416_v46  ;;  %1850 = vmatprep.subr.bf16.mxu1 %v2419_v47  ;;  %v2506_v46 = vld [vmem:[%s3494_s1 + $0x4c4] ss:$16 sps:$4 sm:$0xff]   ;;  %v2509_v47 = vld [vmem:[%s3494_s1 + $0x4cc] ss:$16 sps:$4 sm:$0xff]  }
  0x5f   :  { %1687 = vmatpush1.bf16.msra.mxu0 %v2414_v48  ;;  %1851 = vmatpush1.bf16.msra.mxu1 %v2417_v49  ;;  %v2504_v48 = vld [vmem:[%s3494_s1 + $0x4c0] ss:$16 sps:$4 sm:$0xff]   ;;  %v2507_v49 = vld [vmem:[%s3494_s1 + $0x4c8] ss:$16 sps:$4 sm:$0xff]  }
  0x60   :  { %1688 = vmatprep.subr.bf16.mxu0 %v2422_v50  ;;  %1852 = vmatprep.subr.bf16.mxu1 %v2425_v51  ;;  %v2512_v50 = vld [vmem:[%s3494_s1 + $0x4e4] ss:$16 sps:$4 sm:$0xff]   ;;  %v2515_v51 = vld [vmem:[%s3494_s1 + $0x4ec] ss:$16 sps:$4 sm:$0xff]  }
  0x63   :  { %1689 = vmatpush1.bf16.msra.mxu0 %v2420_v52  ;;  %1853 = vmatpush1.bf16.msra.mxu1 %v2423_v53  ;;  %v2510_v52 = vld [vmem:[%s3494_s1 + $0x4e0] ss:$16 sps:$4 sm:$0xff]   ;;  %v2513_v53 = vld [vmem:[%s3494_s1 + $0x4e8] ss:$16 sps:$4 sm:$0xff]  }
  0x64   :  { %1690 = vmatprep.subr.bf16.mxu0 %v2428_v54  ;;  %1854 = vmatprep.subr.bf16.mxu1 %v2431_v55  ;;  %v2518_v54 = vld [vmem:[%s3494_s1 + $0x504] ss:$16 sps:$4 sm:$0xff]   ;;  %v2521_v55 = vld [vmem:[%s3494_s1 + $0x50c] ss:$16 sps:$4 sm:$0xff]  }
  0x67   :  { %1691 = vmatpush1.bf16.msra.mxu0 %v2426_v56  ;;  %1855 = vmatpush1.bf16.msra.mxu1 %v2429_v57  ;;  %v2516_v56 = vld [vmem:[%s3494_s1 + $0x500] ss:$16 sps:$4 sm:$0xff]   ;;  %v2519_v57 = vld [vmem:[%s3494_s1 + $0x508] ss:$16 sps:$4 sm:$0xff]  }
  0x68   :  { %1692 = vmatprep.subr.bf16.mxu0 %v2434_v58  ;;  %1856 = vmatprep.subr.bf16.mxu1 %v2437_v59  ;;  %v2524_v58 = vld [vmem:[%s3494_s1 + $0x524] ss:$16 sps:$4 sm:$0xff]   ;;  %v2527_v59 = vld [vmem:[%s3494_s1 + $0x52c] ss:$16 sps:$4 sm:$0xff]  }
  0x6b   :  { %1693 = vmatpush1.bf16.msra.mxu0 %v2432_v60  ;;  %1857 = vmatpush1.bf16.msra.mxu1 %v2435_v61  ;;  %v2522_v60 = vld [vmem:[%s3494_s1 + $0x520] ss:$16 sps:$4 sm:$0xff]   ;;  %v2525_v61 = vld [vmem:[%s3494_s1 + $0x528] ss:$16 sps:$4 sm:$0xff]  }
  0x6c   :  { %1694 = vmatprep.subr.bf16.mxu0 %v2440_v62  ;;  %1858 = vmatprep.subr.bf16.mxu1 %v2443_v63  ;;  %v2530_v62 = vld [vmem:[%s3494_s1 + $0x544] ss:$16 sps:$4 sm:$0xff]   ;;  %v2533_v63 = vld [vmem:[%s3494_s1 + $0x54c] ss:$16 sps:$4 sm:$0xff]  }
  0x6f   :  { %1695 = vmatpush1.bf16.msra.mxu0 %v2438_v0  ;;  %1859 = vmatpush1.bf16.msra.mxu1 %v2441_v1  ;;  %v2528_v0 = vld [vmem:[%s3494_s1 + $0x540] ss:$16 sps:$4 sm:$0xff]   ;;  %v2531_v1 = vld [vmem:[%s3494_s1 + $0x548] ss:$16 sps:$4 sm:$0xff]  }
  0x70   :  { %1696 = vmatprep.subr.bf16.mxu0 %v2446_v2  ;;  %1860 = vmatprep.subr.bf16.mxu1 %v2449_v3  ;;  %v2536_v2 = vld [vmem:[%s3494_s1 + $0x564] ss:$16 sps:$4 sm:$0xff]   ;;  %v2539_v3 = vld [vmem:[%s3494_s1 + $0x56c] ss:$16 sps:$4 sm:$0xff]  }
  0x73   :  { %1697 = vmatpush1.bf16.msra.mxu0 %v2444_v4  ;;  %1861 = vmatpush1.bf16.msra.mxu1 %v2447_v5  ;;  %v2534_v4 = vld [vmem:[%s3494_s1 + $0x560] ss:$16 sps:$4 sm:$0xff]   ;;  %v2537_v5 = vld [vmem:[%s3494_s1 + $0x568] ss:$16 sps:$4 sm:$0xff]  }
  0x74   :  { %1698 = vmatprep.subr.bf16.mxu0 %v2452_v6  ;;  %1862 = vmatprep.subr.bf16.mxu1 %v2455_v7  ;;  %v2542_v6 = vld [vmem:[%s3494_s1 + $0x584] ss:$16 sps:$4 sm:$0xff]   ;;  %v2545_v7 = vld [vmem:[%s3494_s1 + $0x58c] ss:$16 sps:$4 sm:$0xff]  }
  0x77   :  { %1699 = vmatpush1.bf16.msra.mxu0 %v2450_v8  ;;  %1863 = vmatpush1.bf16.msra.mxu1 %v2453_v9  ;;  %v2540_v8 = vld [vmem:[%s3494_s1 + $0x580] ss:$16 sps:$4 sm:$0xff]   ;;  %v2543_v9 = vld [vmem:[%s3494_s1 + $0x588] ss:$16 sps:$4 sm:$0xff]  }
  0x78   :  { %1700 = vmatprep.subr.bf16.mxu0 %v2458_v10  ;;  %1864 = vmatprep.subr.bf16.mxu1 %v2461_v11  ;;  %v2548_v10 = vld [vmem:[%s3494_s1 + $0x5a4] ss:$16 sps:$4 sm:$0xff]   ;;  %v2551_v11 = vld [vmem:[%s3494_s1 + $0x5ac] ss:$16 sps:$4 sm:$0xff]  }
  0x7b   :  { %1701 = vmatpush1.bf16.msra.mxu0 %v2456_v12  ;;  %1865 = vmatpush1.bf16.msra.mxu1 %v2459_v13  ;;  %v2546_v12 = vld [vmem:[%s3494_s1 + $0x5a0] ss:$16 sps:$4 sm:$0xff]   ;;  %v2549_v13 = vld [vmem:[%s3494_s1 + $0x5a8] ss:$16 sps:$4 sm:$0xff]  }
  0x7c   :  { %1702 = vmatprep.subr.bf16.mxu0 %v2464_v14  ;;  %1866 = vmatprep.subr.bf16.mxu1 %v2467_v16  ;;  %v2554_v14 = vld [vmem:[%s3494_s1 + $0x5c4] ss:$16 sps:$4 sm:$0xff]   ;;  %v2557_v16 = vld [vmem:[%s3494_s1 + $0x5cc] ss:$16 sps:$4 sm:$0xff]  }
  0x7f   :  { %1703 = vmatpush1.bf16.msra.mxu0 %v2462_v17  ;;  %1867 = vmatpush1.bf16.msra.mxu1 %v2465_v18  ;;  %v2552_v17 = vld [vmem:[%s3494_s1 + $0x5c0] ss:$16 sps:$4 sm:$0xff]   ;;  %v2555_v18 = vld [vmem:[%s3494_s1 + $0x5c8] ss:$16 sps:$4 sm:$0xff]  }
  0x80   :  { %1713 = vmatprep.subr.bf16.mxu0 %v2470_v19  ;;  %1877 = vmatprep.subr.bf16.mxu1 %v2473_v22  ;;  %v2560_v19 = vld [vmem:[%s3494_s1 + $0x5e4] ss:$16 sps:$4 sm:$0xff]   ;;  %v2563_v22 = vld [vmem:[%s3494_s1 + $0x5ec] ss:$16 sps:$4 sm:$0xff]  }
  0x82   :  { %1705 = vmatmul.mubr.bf16.vlgmr.msra.gmra.mrb[0].mxu0 %v339_v24  ;;  %1869 = vmatmul.mubr.bf16.vlgmr.msra.gmra.mrb[0].mxu1 %v339_v24  ;;  %v2561_v24 = vld [vmem:[%s3494_s1 + $0x5e8] ss:$16 sps:$4 sm:$0xff]  }
  0x83   :  { %1714 = vmatpush1.bf16.msra.mxu0 %v2468_v23  ;;  %1878 = vmatpush1.bf16.msra.mxu1 %v2471_v25  ;;  %v2558_v23 = vld [vmem:[%s3494_s1 + $0x5e0] ss:$16 sps:$4 sm:$0xff]   ;;  %v2567_v25 = vld [vmem:[%s3494_s1 + $0x604] ss:$16 sps:$4 sm:$0xff]  }
  0x84   :  { %1715 = vmatprep.subr.bf16.mxu0 %v2476_v26  ;;  %1879 = vmatprep.subr.bf16.mxu1 %v2479_v27  ;;  %v2570_v26 = vld [vmem:[%s3494_s1 + $0x60c] ss:$16 sps:$4 sm:$0xff]   ;;  %v2565_v27 = vld [vmem:[%s3494_s1 + $0x600] ss:$16 sps:$4 sm:$0xff]  }
  0x85   :  { %1745 = vmatprep.mubr.bf16.mxu0 %v2908_v20  ;;  %1909 = vmatprep.mubr.bf16.mxu1 %v2908_v20 }
  0x87   :  { %1716 = vmatpush1.bf16.msra.mxu0 %v2474_v15  ;;  %1880 = vmatpush1.bf16.msra.mxu1 %v2477_v28  ;;  %v2568_v15 = vld [vmem:[%s3494_s1 + $0x608] ss:$16 sps:$4 sm:$0xff]   ;;  %v2573_v28 = vld [vmem:[%s3494_s1 + $0x624] ss:$16 sps:$4 sm:$0xff]  }
  0x88   :  { %1717 = vmatprep.subr.bf16.mxu0 %v2482_v29  ;;  %1881 = vmatprep.subr.bf16.mxu1 %v2485_v30  ;;  %v2576_v29 = vld [vmem:[%s3494_s1 + $0x62c] ss:$16 sps:$4 sm:$0xff]   ;;  %v342_v30 = vcombine.high %v2908_v20, %v2908_v20  ;;  %v2579_v20 = vld [vmem:[%s3494_s1 + $0x644] ss:$16 sps:$4 sm:$0xff]  }
  0x8b   :  { %1718 = vmatpush1.bf16.msra.mxu0 %v2480_v31  ;;  %1882 = vmatpush1.bf16.msra.mxu1 %v2483_v32  ;;  %v2571_v31 = vld [vmem:[%s3494_s1 + $0x620] ss:$16 sps:$4 sm:$0xff]   ;;  %v2574_v32 = vld [vmem:[%s3494_s1 + $0x628] ss:$16 sps:$4 sm:$0xff]  }
  0x8c   :  { %1719 = vmatprep.subr.bf16.mxu0 %v2488_v33  ;;  %1883 = vmatprep.subr.bf16.mxu1 %v2491_v34  ;;  %v2582_v33 = vld [vmem:[%s3494_s1 + $0x64c] ss:$16 sps:$4 sm:$0xff]   ;;  %v2577_v34 = vld [vmem:[%s3494_s1 + $0x640] ss:$16 sps:$4 sm:$0xff]  }
  0x8f   :  { %1720 = vmatpush1.bf16.msra.mxu0 %v2486_v35  ;;  %1884 = vmatpush1.bf16.msra.mxu1 %v2489_v36  ;;  %v2580_v35 = vld [vmem:[%s3494_s1 + $0x648] ss:$16 sps:$4 sm:$0xff]   ;;  %v2585_v36 = vld [vmem:[%s3494_s1 + $0x664] ss:$16 sps:$4 sm:$0xff]  }
  0x90   :  { %1721 = vmatprep.subr.bf16.mxu0 %v2494_v37  ;;  %1885 = vmatprep.subr.bf16.mxu1 %v2497_v38  ;;  %v2588_v37 = vld [vmem:[%s3494_s1 + $0x66c] ss:$16 sps:$4 sm:$0xff]   ;;  %v2583_v38 = vld [vmem:[%s3494_s1 + $0x660] ss:$16 sps:$4 sm:$0xff]  }
  0x93   :  { %1722 = vmatpush1.bf16.msra.mxu0 %v2492_v39  ;;  %1886 = vmatpush1.bf16.msra.mxu1 %v2495_v40  ;;  %v2586_v39 = vld [vmem:[%s3494_s1 + $0x668] ss:$16 sps:$4 sm:$0xff]   ;;  %v2591_v40 = vld [vmem:[%s3494_s1 + $0x684] ss:$16 sps:$4 sm:$0xff]  }
  0x94   :  { %1723 = vmatprep.subr.bf16.mxu0 %v2500_v41  ;;  %1887 = vmatprep.subr.bf16.mxu1 %v2503_v43  ;;  %v2594_v41 = vld [vmem:[%s3494_s1 + $0x68c] ss:$16 sps:$4 sm:$0xff]   ;;  %v2589_v43 = vld [vmem:[%s3494_s1 + $0x680] ss:$16 sps:$4 sm:$0xff]  }
  0x97   :  { %1724 = vmatpush1.bf16.msra.mxu0 %v2498_v44  ;;  %1888 = vmatpush1.bf16.msra.mxu1 %v2501_v45  ;;  %v2592_v44 = vld [vmem:[%s3494_s1 + $0x688] ss:$16 sps:$4 sm:$0xff]   ;;  %v2597_v45 = vld [vmem:[%s3494_s1 + $0x6a4] ss:$16 sps:$4 sm:$0xff]  }
  0x98   :  { %1725 = vmatprep.subr.bf16.mxu0 %v2506_v46  ;;  %1889 = vmatprep.subr.bf16.mxu1 %v2509_v47  ;;  %v2600_v46 = vld [vmem:[%s3494_s1 + $0x6ac] ss:$16 sps:$4 sm:$0xff]   ;;  %v2595_v47 = vld [vmem:[%s3494_s1 + $0x6a0] ss:$16 sps:$4 sm:$0xff]  }
  0x9b   :  { %1726 = vmatpush1.bf16.msra.mxu0 %v2504_v48  ;;  %1890 = vmatpush1.bf16.msra.mxu1 %v2507_v49  ;;  %v2598_v48 = vld [vmem:[%s3494_s1 + $0x6a8] ss:$16 sps:$4 sm:$0xff]   ;;  %v2603_v49 = vld [vmem:[%s3494_s1 + $0x6c4] ss:$16 sps:$4 sm:$0xff]  }
  0x9c   :  { %1727 = vmatprep.subr.bf16.mxu0 %v2512_v50  ;;  %1891 = vmatprep.subr.bf16.mxu1 %v2515_v51  ;;  %v2606_v50 = vld [vmem:[%s3494_s1 + $0x6cc] ss:$16 sps:$4 sm:$0xff]   ;;  %v2601_v51 = vld [vmem:[%s3494_s1 + $0x6c0] ss:$16 sps:$4 sm:$0xff]  }
  0x9f   :  { %1728 = vmatpush1.bf16.msra.mxu0 %v2510_v52  ;;  %1892 = vmatpush1.bf16.msra.mxu1 %v2513_v53  ;;  %v2604_v52 = vld [vmem:[%s3494_s1 + $0x6c8] ss:$16 sps:$4 sm:$0xff]   ;;  %v2609_v53 = vld [vmem:[%s3494_s1 + $0x6e4] ss:$16 sps:$4 sm:$0xff]  }
  0xa0   :  { %1729 = vmatprep.subr.bf16.mxu0 %v2518_v54  ;;  %1893 = vmatprep.subr.bf16.mxu1 %v2521_v55  ;;  %v2612_v54 = vld [vmem:[%s3494_s1 + $0x6ec] ss:$16 sps:$4 sm:$0xff]   ;;  %v2607_v55 = vld [vmem:[%s3494_s1 + $0x6e0] ss:$16 sps:$4 sm:$0xff]  }
  0xa3   :  { %1730 = vmatpush1.bf16.msra.mxu0 %v2516_v56  ;;  %1894 = vmatpush1.bf16.msra.mxu1 %v2519_v57  ;;  %v2610_v56 = vld [vmem:[%s3494_s1 + $0x6e8] ss:$16 sps:$4 sm:$0xff]   ;;  %v2615_v57 = vld [vmem:[%s3494_s1 + $0x704] ss:$16 sps:$4 sm:$0xff]  }
  0xa4   :  { %1731 = vmatprep.subr.bf16.mxu0 %v2524_v58  ;;  %1895 = vmatprep.subr.bf16.mxu1 %v2527_v59  ;;  %v2618_v58 = vld [vmem:[%s3494_s1 + $0x70c] ss:$16 sps:$4 sm:$0xff]   ;;  %v2613_v59 = vld [vmem:[%s3494_s1 + $0x700] ss:$16 sps:$4 sm:$0xff]  }
  0xa7   :  { %1732 = vmatpush1.bf16.msra.mxu0 %v2522_v60  ;;  %1896 = vmatpush1.bf16.msra.mxu1 %v2525_v61  ;;  %v2616_v60 = vld [vmem:[%s3494_s1 + $0x708] ss:$16 sps:$4 sm:$0xff]   ;;  %v2621_v61 = vld [vmem:[%s3494_s1 + $0x724] ss:$16 sps:$4 sm:$0xff]  }
  0xa8   :  { %1733 = vmatprep.subr.bf16.mxu0 %v2530_v62  ;;  %1897 = vmatprep.subr.bf16.mxu1 %v2533_v63  ;;  %v2624_v62 = vld [vmem:[%s3494_s1 + $0x72c] ss:$16 sps:$4 sm:$0xff]   ;;  %v2619_v63 = vld [vmem:[%s3494_s1 + $0x720] ss:$16 sps:$4 sm:$0xff]  }
  0xab   :  { %1734 = vmatpush1.bf16.msra.mxu0 %v2528_v0  ;;  %1898 = vmatpush1.bf16.msra.mxu1 %v2531_v1  ;;  %v2622_v0 = vld [vmem:[%s3494_s1 + $0x728] ss:$16 sps:$4 sm:$0xff]   ;;  %v2627_v1 = vld [vmem:[%s3494_s1 + $0x744] ss:$16 sps:$4 sm:$0xff]  }
  0xac   :  { %1735 = vmatprep.subr.bf16.mxu0 %v2536_v2  ;;  %1899 = vmatprep.subr.bf16.mxu1 %v2539_v3  ;;  %v2630_v2 = vld [vmem:[%s3494_s1 + $0x74c] ss:$16 sps:$4 sm:$0xff]   ;;  %v2625_v3 = vld [vmem:[%s3494_s1 + $0x740] ss:$16 sps:$4 sm:$0xff]  }
  0xaf   :  { %1736 = vmatpush1.bf16.msra.mxu0 %v2534_v4  ;;  %1900 = vmatpush1.bf16.msra.mxu1 %v2537_v5  ;;  %v2628_v4 = vld [vmem:[%s3494_s1 + $0x748] ss:$16 sps:$4 sm:$0xff]   ;;  %v2633_v5 = vld [vmem:[%s3494_s1 + $0x764] ss:$16 sps:$4 sm:$0xff]  }
  0xb0   :  { %1737 = vmatprep.subr.bf16.mxu0 %v2542_v6  ;;  %1901 = vmatprep.subr.bf16.mxu1 %v2545_v7  ;;  %v2636_v6 = vld [vmem:[%s3494_s1 + $0x76c] ss:$16 sps:$4 sm:$0xff]   ;;  %v2631_v7 = vld [vmem:[%s3494_s1 + $0x760] ss:$16 sps:$4 sm:$0xff]  }
  0xb3   :  { %1738 = vmatpush1.bf16.msra.mxu0 %v2540_v8  ;;  %1902 = vmatpush1.bf16.msra.mxu1 %v2543_v9  ;;  %v2634_v8 = vld [vmem:[%s3494_s1 + $0x768] ss:$16 sps:$4 sm:$0xff]   ;;  %v2639_v9 = vld [vmem:[%s3494_s1 + $0x784] ss:$16 sps:$4 sm:$0xff]  }
  0xb4   :  { %1739 = vmatprep.subr.bf16.mxu0 %v2548_v10  ;;  %1903 = vmatprep.subr.bf16.mxu1 %v2551_v11  ;;  %v2642_v10 = vld [vmem:[%s3494_s1 + $0x78c] ss:$16 sps:$4 sm:$0xff]   ;;  %v2637_v11 = vld [vmem:[%s3494_s1 + $0x780] ss:$16 sps:$4 sm:$0xff]  }
  0xb7   :  { %1740 = vmatpush1.bf16.msra.mxu0 %v2546_v12  ;;  %1904 = vmatpush1.bf16.msra.mxu1 %v2549_v13  ;;  %v2640_v12 = vld [vmem:[%s3494_s1 + $0x788] ss:$16 sps:$4 sm:$0xff]   ;;  %v2645_v13 = vld [vmem:[%s3494_s1 + $0x7a4] ss:$16 sps:$4 sm:$0xff]  }
  0xb8   :  { %1741 = vmatprep.subr.bf16.mxu0 %v2554_v14  ;;  %1905 = vmatprep.subr.bf16.mxu1 %v2557_v16  ;;  %v2648_v14 = vld [vmem:[%s3494_s1 + $0x7ac] ss:$16 sps:$4 sm:$0xff]   ;;  %v2643_v16 = vld [vmem:[%s3494_s1 + $0x7a0] ss:$16 sps:$4 sm:$0xff]  }
  0xbb   :  { %1742 = vmatpush1.bf16.msra.mxu0 %v2552_v17  ;;  %1906 = vmatpush1.bf16.msra.mxu1 %v2555_v18  ;;  %v2646_v17 = vld [vmem:[%s3494_s1 + $0x7a8] ss:$16 sps:$4 sm:$0xff]   ;;  %v2651_v18 = vld [vmem:[%s3494_s1 + $0x7c4] ss:$16 sps:$4 sm:$0xff]  }
  0xbc   :  { %1743 = vmatprep.subr.bf16.mxu0 %v2560_v19  ;;  %1907 = vmatprep.subr.bf16.mxu1 %v2563_v22  ;;  %v2654_v19 = vld [vmem:[%s3494_s1 + $0x7cc] ss:$16 sps:$4 sm:$0xff]   ;;  %v2649_v22 = vld [vmem:[%s3494_s1 + $0x7c0] ss:$16 sps:$4 sm:$0xff]  }
  0xbf   :  { %1744 = vmatpush1.bf16.msra.mxu0 %v2558_v23  ;;  %1908 = vmatpush1.bf16.msra.mxu1 %v2561_v24  ;;  %v2652_v23 = vld [vmem:[%s3494_s1 + $0x7c8] ss:$16 sps:$4 sm:$0xff]   ;;  %v2657_v24 = vld [vmem:[%s3494_s1 + $0x7e4] ss:$16 sps:$4 sm:$0xff]  }
  0xc0   :  { %1754 = vmatprep.subr.bf16.mxu0 %v2567_v25  ;;  %1918 = vmatprep.subr.bf16.mxu1 %v2570_v26  ;;  %v2660_v25 = vld [vmem:[%s3494_s1 + $0x7ec] ss:$16 sps:$4 sm:$0xff]   ;;  %v2655_v26 = vld [vmem:[%s3494_s1 + $0x7e0] ss:$16 sps:$4 sm:$0xff]  }
  0xc2   :  { %1746 = vmatmul.mubr.bf16.vlgmr.msra.gmra.mrb[0].mxu0 %v2911_v21  ;;  %1910 = vmatmul.mubr.bf16.vlgmr.msra.gmra.mrb[0].mxu1 %v2911_v21 }
  0xc3   :  { %1755 = vmatpush1.bf16.msra.mxu0 %v2565_v27  ;;  %1919 = vmatpush1.bf16.msra.mxu1 %v2568_v15  ;;  %v2658_v27 = vld [vmem:[%s3494_s1 + $0x7e8] ss:$16 sps:$4 sm:$0xff]   ;;  %v340_v15 = vcombine.high %v2911_v21, %v2911_v21 }
  0xc4   :  { %1756 = vmatprep.subr.bf16.mxu0 %v2573_v28  ;;  %1920 = vmatprep.subr.bf16.mxu1 %v2576_v29  ;;  %v275_v28 = vsub.s32 0, %v2800_v42  ;;  %v283_v29 = vsub.s32 2, %v2800_v42 }
  0xc5   :  { %1786 = vmatprep.mubr.bf16.mxu0 %v342_v30  ;;  %1950 = vmatprep.mubr.bf16.mxu1 %v342_v30  ;;  %v271_v30 = vld [vmem:[%s3496_s2] sm:$0xf] }
  0xc6   :  { %v284_v21 = vrot.slane %v271_v30, %v283_v29 }
  0xc7   :  { %1757 = vmatpush1.bf16.msra.mxu0 %v2571_v31  ;;  %1921 = vmatpush1.bf16.msra.mxu1 %v2574_v32  ;;  %v279_v31 = vsub.s32 1, %v2800_v42  ;;  %v287_v32 = vsub.s32 3, %v2800_v42 }
  0xc8   :  { %1758 = vmatprep.subr.bf16.mxu0 %v2579_v20  ;;  %1922 = vmatprep.subr.bf16.mxu1 %v2582_v33  ;;  %v2662_v20 = vmov 1983009808  }
  0xc9   :  { %v1970_v33 = vunpack.c.l.s4 %v2662_v20 }
  0xcb   :  { %1759 = vmatpush1.bf16.msra.mxu0 %v2577_v34  ;;  %1923 = vmatpush1.bf16.msra.mxu1 %v2580_v35  ;;  %v276_v34 = vrot.slane %v271_v30, %v275_v28  ;;  %v280_v35 = vrot.slane %v271_v30, %v279_v31 }
  0xcc   :  { %1760 = vmatprep.subr.bf16.mxu0 %v2585_v36  ;;  %1924 = vmatprep.subr.bf16.mxu1 %v2588_v37  ;;  %v288_v36 = vrot.slane %v271_v30, %v287_v32 }
  0xcf   :  { %1761 = vmatpush1.bf16.msra.mxu0 %v2583_v38  ;;  %1925 = vmatpush1.bf16.msra.mxu1 %v2586_v39  ;;  %v1971_v39 = vunpack.c.0.s8 %v1970_v33 }
  0xd0   :  { %1762 = vmatprep.subr.bf16.mxu0 %v2591_v40  ;;  %1926 = vmatprep.subr.bf16.mxu1 %v2594_v41 }
  0xd3   :  { %1763 = vmatpush1.bf16.msra.mxu0 %v2589_v43  ;;  %1927 = vmatpush1.bf16.msra.mxu1 %v2592_v44 }
  0xd4   :  { %1764 = vmatprep.subr.bf16.mxu0 %v2597_v45  ;;  %1928 = vmatprep.subr.bf16.mxu1 %v2600_v46 }
  0xd7   :  { %1765 = vmatpush1.bf16.msra.mxu0 %v2595_v47  ;;  %1929 = vmatpush1.bf16.msra.mxu1 %v2598_v48 }
  0xd8   :  { %1766 = vmatprep.subr.bf16.mxu0 %v2603_v49  ;;  %1930 = vmatprep.subr.bf16.mxu1 %v2606_v50 }
  0xdb   :  { %1767 = vmatpush1.bf16.msra.mxu0 %v2601_v51  ;;  %1931 = vmatpush1.bf16.msra.mxu1 %v2604_v52 }
  0xdc   :  { %1768 = vmatprep.subr.bf16.mxu0 %v2609_v53  ;;  %1932 = vmatprep.subr.bf16.mxu1 %v2612_v54  ;;  %v1974_v54 = vsub.s32 %v1971_v39, %v2800_v42 }
  0xdf   :  { %1769 = vmatpush1.bf16.msra.mxu0 %v2607_v55  ;;  %1933 = vmatpush1.bf16.msra.mxu1 %v2610_v56 }
  0xe0   :  { %1770 = vmatprep.subr.bf16.mxu0 %v2615_v57  ;;  %1934 = vmatprep.subr.bf16.mxu1 %v2618_v58 }
  0xe3   :  { %1771 = vmatpush1.bf16.msra.mxu0 %v2613_v59  ;;  %1935 = vmatpush1.bf16.msra.mxu1 %v2616_v60 }
  0xe4   :  { %1772 = vmatprep.subr.bf16.mxu0 %v2621_v61  ;;  %1936 = vmatprep.subr.bf16.mxu1 %v2624_v62 }
  0xe7   :  { %1773 = vmatpush1.bf16.msra.mxu0 %v2619_v63  ;;  %1937 = vmatpush1.bf16.msra.mxu1 %v2622_v0 }
  0xe8   :  { %1774 = vmatprep.subr.bf16.mxu0 %v2627_v1  ;;  %1938 = vmatprep.subr.bf16.mxu1 %v2630_v2 }
  0xeb   :  { %1775 = vmatpush1.bf16.msra.mxu0 %v2625_v3  ;;  %1939 = vmatpush1.bf16.msra.mxu1 %v2628_v4 }
  0xec   :  { %1776 = vmatprep.subr.bf16.mxu0 %v2633_v5  ;;  %1940 = vmatprep.subr.bf16.mxu1 %v2636_v6 }
  0xef   :  { %1777 = vmatpush1.bf16.msra.mxu0 %v2631_v7  ;;  %1941 = vmatpush1.bf16.msra.mxu1 %v2634_v8 }
  0xf0   :  { %1778 = vmatprep.subr.bf16.mxu0 %v2639_v9  ;;  %1942 = vmatprep.subr.bf16.mxu1 %v2642_v10 }
  0xf3   :  { %1779 = vmatpush1.bf16.msra.mxu0 %v2637_v11  ;;  %1943 = vmatpush1.bf16.msra.mxu1 %v2640_v12 }
  0xf4   :  { %1780 = vmatprep.subr.bf16.mxu0 %v2645_v13  ;;  %1944 = vmatprep.subr.bf16.mxu1 %v2648_v14 }
  0xf7   :  { %1781 = vmatpush1.bf16.msra.mxu0 %v2643_v16  ;;  %1945 = vmatpush1.bf16.msra.mxu1 %v2646_v17 }
  0xf8   :  { %1782 = vmatprep.subr.bf16.mxu0 %v2651_v18  ;;  %1946 = vmatprep.subr.bf16.mxu1 %v2654_v19 }
  0xfb   :  { %1783 = vmatpush1.bf16.msra.mxu0 %v2649_v22  ;;  %1947 = vmatpush1.bf16.msra.mxu1 %v2652_v23 }
  0xfc   :  { %1784 = vmatprep.subr.bf16.mxu0 %v2657_v24  ;;  %1948 = vmatprep.subr.bf16.mxu1 %v2660_v25 }
  0xff   :  { %1785 = vmatpush1.bf16.msra.mxu0 %v2655_v26  ;;  %1949 = vmatpush1.bf16.msra.mxu1 %v2658_v27 }
 0x102   :  { %1787 = vmatmul.mubr.bf16.vlgmr.msra.gmra.mrb[0].mxu0 %v340_v15  ;;  %1951 = vmatmul.mubr.bf16.vlgmr.msra.gmra.mrb[0].mxu1 %v340_v15 }
 0x1d5   :  { %v1788_v37 = vpop.f32.mrb[0].mxu0  ;;  %v1952_v38 = vpop.f32.mrb[0].mxu1 }
 0x1d6   :  { %v2246_v40 = vadd.f32 %v1788_v37, %v276_v34  ;;  %v2248_v41 = vadd.f32 %v1952_v38, %v284_v21  ;;  %v1790_v43 = vpop.f32.mrb[1].mxu0  ;;  %v1954_v44 = vpop.f32.mrb[1].mxu1 }
 0x1d7   :  { %v2247_v45 = vadd.f32 %v1790_v43, %v280_v35  ;;  %v2249_v46 = vadd.f32 %v1954_v44, %v288_v36  ;;  %v1792_v47 = vpop.f32.mrb[2].mxu0  ;;  %v1956_v48 = vpop.f32.mrb[2].mxu1 }
 0x1d8   :  { %v1959_v49 = vmax.f32 %v2246_v40, 0.0  ;;  %v1961_v50 = vmax.f32 %v2248_v41, 0.0  ;;  %v1793_v51 = vpop.f32.mrb[3].mxu0  ;;  %v1957_v52 = vpop.f32.mrb[3].mxu1 }
 0x1d9   :  { %v1960_v53 = vmax.f32 %v2247_v45, 0.0  ;;  %v1962_v55 = vmax.f32 %v2249_v46, 0.0 }
 0x1db   :  { %v1967_v56 = vcombine.low %v1959_v49, %v1960_v53  ;;  %v1968_v57 = vcombine.low %v1961_v50, %v1962_v55 }
 0x1dd   :  { %v1975_v58 = vrot.slane %v1967_v56, %v1974_v54  ;;  %v1982_v59 = vrot.slane %v1968_v57, %v1974_v54 }
 0x1df   :  { %v1983_v60 = vcombine.low %v1975_v58, %v1982_v59 }
 0x1e1   :  { %1985 = vst [vmem:[%s3497_s3] sm:$0xff] %v1983_v60 }

// kernel: tile.28
= control target key start
LH: loop header
LB: loop body
LE: loop exit
PB: predicated region body
PF: predicated region fallthrough
CT: control target
= control target key end

     0   :  { %s22_s0 = inlined_call_operand.vmem [shape: f32[64], index: 0, kind: input, shape index: {}]   ;;  %s23_s1 = inlined_call_operand.vmem [shape: f32[4,64], index: 1, kind: output, shape index: {}]  }
   0x1   :  { %v4_v0 = vld [vmem:[%s22_s0] ss:$0 sm:$0xff] }
   0x2   :  { %5 = vst [vmem:[%s23_s1] sm:$0xf] %v4_v0 }

// kernel: tile.29
= control target key start
LH: loop header
LB: loop body
LE: loop exit
PB: predicated region body
PF: predicated region fallthrough
CT: control target
= control target key end

     0   :  { %s6_s8 = smov 3  ;;  %vm8_vm0 = vcmask 523264   ;;  %s30_s9 = smov 64   ;;  %vm15_vm1 = vcmask 1048064   ;;  %s50_s0 = inlined_call_operand.vmem [shape: f32[4,64], index: 0, kind: input, shape index: {}]   ;;  %s51_s1 = inlined_call_operand.vmem [shape: f32[1,256], index: 1, kind: output, shape index: {}]  }
   0x1   :  { %v4_v0 = vld [vmem:[%s50_s0] sm:$0xf]  ;;  %s11_s0 = smov 3 }
   0x2   :  { %5 = vst [vmem:[#allocation1] sm:$0xf] %v4_v0 }
   0x9   :  { %v12_v1 = vld [vmem:[#allocation1 + $0x1] ss:$2 sm:%s11_s0]   ;;  %v7_v2 = vld [vmem:[#allocation1] ss:$2 sm:%s6_s8]  }
   0xa   :  { %13 = vrot.lane.b32.xlu0 %v12_v1, %s30_s9  ;;  %9 = vst.msk [vmem:[#allocation0] ss:$8 sm:$0x3] %vm8_vm0, %v7_v2  }
  0x7c   :  { %v14_v3 = vpop.permute.xlu0 %13  }
  0x7d   :  { %16 = vst.msk [vmem:[#allocation0] ss:$8 sm:$0x3] %vm15_vm1, %v14_v3  }
  0x84   :  { %v20_v4 = vld [vmem:[#allocation0] sm:$0x1]  ;;  %v24_v5 = vld [vmem:[#allocation0 + $0x8] sm:$0x1] }
  0x85   :  { %22 = vst [vmem:[%s51_s1] sm:$0x1] %v20_v4  ;;  %28 = vst [vmem:[%s51_s1 + $0x1] sm:$0x1] %v24_v5 }

// kernel: vae_forward.13
= control target key start
LH: loop header
LB: loop body
LE: loop exit
PB: predicated region body
PF: predicated region fallthrough
CT: control target
= control target key end

     0   :  { %s1009_s1 = inlined_call_operand.vmem [shape: bf16[512,256], index: 1, kind: input, shape index: {}]   ;;  %s1010_s0 = inlined_call_operand.vmem [shape: bf16[18,512], index: 0, kind: input, shape index: {}]   ;;  %s1011_s2 = inlined_call_operand.vmem [shape: f32[1,256], index: 2, kind: input, shape index: {}]   ;;  %s1012_s3 = inlined_call_operand.vmem [shape: f32[18,256], index: 3, kind: output, shape index: {}]  }
   0x1   :  { %v652_v0 = vld [vmem:[%s1009_s1 + $0x4] ss:$8 sps:$4 sm:$0xff]   ;;  %v656_v2 = vld [vmem:[%s1009_s1] ss:$8 sps:$4 sm:$0xff]   ;;  %v658_v4 = vld [vmem:[%s1009_s1 + $0x14] ss:$8 sps:$4 sm:$0xff]  }
   0x2   :  { %v654_v1 = vld [vmem:[%s1009_s1 + $0x104] ss:$8 sps:$4 sm:$0xff]   ;;  %450 = vmatprep.subr.bf16.mxu1 %v652_v0  ;;  %v657_v3 = vld [vmem:[%s1009_s1 + $0x100] ss:$8 sps:$4 sm:$0xff]   ;;  %v660_v5 = vld [vmem:[%s1009_s1 + $0x114] ss:$8 sps:$4 sm:$0xff]  }
   0x3   :  { %501 = vmatprep.subr.bf16.mxu0 %v654_v1  ;;  %451 = vmatpush1.bf16.msra.mxu1 %v656_v2  ;;  %v662_v6 = vld [vmem:[%s1009_s1 + $0x10] ss:$8 sps:$4 sm:$0xff]   ;;  %v664_v8 = vld [vmem:[%s1009_s1 + $0x24] ss:$8 sps:$4 sm:$0xff]   ;;  %v668_v10 = vld [vmem:[%s1009_s1 + $0x20] ss:$8 sps:$4 sm:$0xff]  }
   0x4   :  { %502 = vmatpush1.bf16.msra.mxu0 %v657_v3  ;;  %452 = vmatprep.subr.bf16.mxu1 %v658_v4  ;;  %v663_v7 = vld [vmem:[%s1009_s1 + $0x110] ss:$8 sps:$4 sm:$0xff]   ;;  %v666_v9 = vld [vmem:[%s1009_s1 + $0x124] ss:$8 sps:$4 sm:$0xff]   ;;  %v669_v11 = vld [vmem:[%s1009_s1 + $0x120] ss:$8 sps:$4 sm:$0xff]  }
   0x5   :  { %503 = vmatprep.subr.bf16.mxu0 %v660_v5  ;;  %v670_v12 = vld [vmem:[%s1009_s1 + $0x34] ss:$8 sps:$4 sm:$0xff]   ;;  %v674_v14 = vld [vmem:[%s1009_s1 + $0x30] ss:$8 sps:$4 sm:$0xff]   ;;  %v676_v16 = vld [vmem:[%s1009_s1 + $0x44] ss:$8 sps:$4 sm:$0xff]  }
   0x6   :  { %v672_v13 = vld [vmem:[%s1009_s1 + $0x134] ss:$8 sps:$4 sm:$0xff]   ;;  %v675_v15 = vld [vmem:[%s1009_s1 + $0x130] ss:$8 sps:$4 sm:$0xff]   ;;  %v678_v17 = vld [vmem:[%s1009_s1 + $0x144] ss:$8 sps:$4 sm:$0xff]  }
   0x7   :  { %453 = vmatpush1.bf16.msra.mxu1 %v662_v6  ;;  %v680_v18 = vld [vmem:[%s1009_s1 + $0x40] ss:$8 sps:$4 sm:$0xff]   ;;  %v682_v20 = vld [vmem:[%s1009_s1 + $0x54] ss:$8 sps:$4 sm:$0xff]   ;;  %v686_v22 = vld [vmem:[%s1009_s1 + $0x50] ss:$8 sps:$4 sm:$0xff]  }
   0x8   :  { %504 = vmatpush1.bf16.msra.mxu0 %v663_v7  ;;  %454 = vmatprep.subr.bf16.mxu1 %v664_v8  ;;  %v681_v19 = vld [vmem:[%s1009_s1 + $0x140] ss:$8 sps:$4 sm:$0xff]   ;;  %v684_v21 = vld [vmem:[%s1009_s1 + $0x154] ss:$8 sps:$4 sm:$0xff]   ;;  %v687_v23 = vld [vmem:[%s1009_s1 + $0x150] ss:$8 sps:$4 sm:$0xff]  }
   0x9   :  { %505 = vmatprep.subr.bf16.mxu0 %v666_v9  ;;  %v688_v24 = vld [vmem:[%s1009_s1 + $0x64] ss:$8 sps:$4 sm:$0xff]   ;;  %v692_v26 = vld [vmem:[%s1009_s1 + $0x60] ss:$8 sps:$4 sm:$0xff]   ;;  %v694_v28 = vld [vmem:[%s1009_s1 + $0x74] ss:$8 sps:$4 sm:$0xff]  }
   0xa   :  { %v690_v25 = vld [vmem:[%s1009_s1 + $0x164] ss:$8 sps:$4 sm:$0xff]   ;;  %v693_v27 = vld [vmem:[%s1009_s1 + $0x160] ss:$8 sps:$4 sm:$0xff]   ;;  %v696_v29 = vld [vmem:[%s1009_s1 + $0x174] ss:$8 sps:$4 sm:$0xff]  }
   0xb   :  { %455 = vmatpush1.bf16.msra.mxu1 %v668_v10  ;;  %v698_v30 = vld [vmem:[%s1009_s1 + $0x70] ss:$8 sps:$4 sm:$0xff]   ;;  %v700_v32 = vld [vmem:[%s1009_s1 + $0x84] ss:$8 sps:$4 sm:$0xff]   ;;  %v704_v34 = vld [vmem:[%s1009_s1 + $0x80] ss:$8 sps:$4 sm:$0xff]   ;;  %v86_v10 = vlaneseq }
   0xc   :  { %506 = vmatpush1.bf16.msra.mxu0 %v669_v11  ;;  %456 = vmatprep.subr.bf16.mxu1 %v670_v12  ;;  %v699_v31 = vld [vmem:[%s1009_s1 + $0x170] ss:$8 sps:$4 sm:$0xff]   ;;  %v702_v33 = vld [vmem:[%s1009_s1 + $0x184] ss:$8 sps:$4 sm:$0xff]   ;;  %v705_v35 = vld [vmem:[%s1009_s1 + $0x180] ss:$8 sps:$4 sm:$0xff]  }
   0xd   :  { %507 = vmatprep.subr.bf16.mxu0 %v672_v13  ;;  %v706_v36 = vld [vmem:[%s1009_s1 + $0x94] ss:$8 sps:$4 sm:$0xff]   ;;  %v710_v38 = vld [vmem:[%s1009_s1 + $0x90] ss:$8 sps:$4 sm:$0xff]   ;;  %v712_v40 = vld [vmem:[%s1009_s1 + $0xa4] ss:$8 sps:$4 sm:$0xff]  }
   0xe   :  { %v708_v37 = vld [vmem:[%s1009_s1 + $0x194] ss:$8 sps:$4 sm:$0xff]   ;;  %v711_v39 = vld [vmem:[%s1009_s1 + $0x190] ss:$8 sps:$4 sm:$0xff]   ;;  %v714_v41 = vld [vmem:[%s1009_s1 + $0x1a4] ss:$8 sps:$4 sm:$0xff]  }
   0xf   :  { %457 = vmatpush1.bf16.msra.mxu1 %v674_v14  ;;  %v716_v42 = vld [vmem:[%s1009_s1 + $0xa0] ss:$8 sps:$4 sm:$0xff]   ;;  %v718_v44 = vld [vmem:[%s1009_s1 + $0xb4] ss:$8 sps:$4 sm:$0xff]   ;;  %v722_v46 = vld [vmem:[%s1009_s1 + $0xb0] ss:$8 sps:$4 sm:$0xff]  }
  0x10   :  { %508 = vmatpush1.bf16.msra.mxu0 %v675_v15  ;;  %458 = vmatprep.subr.bf16.mxu1 %v676_v16  ;;  %v717_v43 = vld [vmem:[%s1009_s1 + $0x1a0] ss:$8 sps:$4 sm:$0xff]   ;;  %v720_v45 = vld [vmem:[%s1009_s1 + $0x1b4] ss:$8 sps:$4 sm:$0xff]   ;;  %v723_v48 = vld [vmem:[%s1009_s1 + $0x1b0] ss:$8 sps:$4 sm:$0xff]  }
  0x11   :  { %509 = vmatprep.subr.bf16.mxu0 %v678_v17  ;;  %v750_v47 = vld [vmem:[%s1010_s0 + $0x4] ss:$16 sps:$4 sm:$0xff]   ;;  %v753_v51 = vld [vmem:[%s1010_s0 + $0xc] ss:$16 sps:$4 sm:$0xff]   ;;  %v728_v52 = vld [vmem:[%s1009_s1 + $0xc0] ss:$8 sps:$4 sm:$0xff]  }
  0x12   :  { %v724_v49 = vld [vmem:[%s1009_s1 + $0xc4] ss:$8 sps:$4 sm:$0xff]   ;;  %482 = vmatprep.mubr.bf16.mxu1 %v750_v47  ;;  %533 = vmatprep.mubr.bf16.mxu0 %v753_v51  ;;  %v729_v53 = vld [vmem:[%s1009_s1 + $0x1c0] ss:$8 sps:$4 sm:$0xff]   ;;  %v730_v54 = vld [vmem:[%s1009_s1 + $0xd4] ss:$8 sps:$4 sm:$0xff]  }
  0x13   :  { %459 = vmatpush1.bf16.msra.mxu1 %v680_v18  ;;  %v726_v50 = vld [vmem:[%s1009_s1 + $0x1c4] ss:$8 sps:$4 sm:$0xff]   ;;  %v732_v55 = vld [vmem:[%s1009_s1 + $0x1d4] ss:$8 sps:$4 sm:$0xff]   ;;  %v734_v56 = vld [vmem:[%s1009_s1 + $0xd0] ss:$8 sps:$4 sm:$0xff]  }
  0x14   :  { %510 = vmatpush1.bf16.msra.mxu0 %v681_v19  ;;  %460 = vmatprep.subr.bf16.mxu1 %v682_v20  ;;  %v735_v57 = vld [vmem:[%s1009_s1 + $0x1d0] ss:$8 sps:$4 sm:$0xff]   ;;  %v736_v58 = vld [vmem:[%s1009_s1 + $0xe4] ss:$8 sps:$4 sm:$0xff]   ;;  %v740_v60 = vld [vmem:[%s1009_s1 + $0xe0] ss:$8 sps:$4 sm:$0xff]  }
  0x15   :  { %511 = vmatprep.subr.bf16.mxu0 %v684_v21  ;;  %v738_v59 = vld [vmem:[%s1009_s1 + $0x1e4] ss:$8 sps:$4 sm:$0xff]   ;;  %v741_v61 = vld [vmem:[%s1009_s1 + $0x1e0] ss:$8 sps:$4 sm:$0xff]   ;;  %v742_v62 = vld [vmem:[%s1009_s1 + $0xf4] ss:$8 sps:$4 sm:$0xff]  }
  0x16   :  { %v744_v63 = vld [vmem:[%s1009_s1 + $0x1f4] ss:$8 sps:$4 sm:$0xff]   ;;  %v746_v0 = vld [vmem:[%s1009_s1 + $0xf0] ss:$8 sps:$4 sm:$0xff]   ;;  %v18_v2 = vld [vmem:[%s1010_s0 + $0x20] sm:$0x11] }
  0x17   :  { %461 = vmatpush1.bf16.msra.mxu1 %v686_v22  ;;  %v747_v1 = vld [vmem:[%s1009_s1 + $0x1f0] ss:$8 sps:$4 sm:$0xff]   ;;  %v19_v3 = vld [vmem:[%s1010_s0 + $0x28] sm:$0x11]  ;;  %v573_v6 = vcombine.high %v18_v2, %v18_v2  ;;  %v572_v8 = vcombine.low %v18_v2, %v18_v2  ;;  %v87_v11 = vshrl.u32 %v86_v10, 7 }
  0x18   :  { %512 = vmatpush1.bf16.msra.mxu0 %v687_v23  ;;  %462 = vmatprep.subr.bf16.mxu1 %v688_v24  ;;  %v748_v4 = vld [vmem:[%s1010_s0] ss:$16 sps:$4 sm:$0xff]   ;;  %v751_v5 = vld [vmem:[%s1010_s0 + $0x8] ss:$16 sps:$4 sm:$0xff]   ;;  %v575_v7 = vcombine.high %v19_v3, %v19_v3  ;;  %v574_v9 = vcombine.low %v19_v3, %v19_v3 }
  0x19   :  { %513 = vmatprep.subr.bf16.mxu0 %v690_v25  ;;  %v88_v12 = vsub.s32 0, %v87_v11  ;;  %v84_v13 = vld [vmem:[%s1011_s2] sm:$0x3]  ;;  %v92_v14 = vsub.s32 1, %v87_v11 }
  0x1b   :  { %463 = vmatpush1.bf16.msra.mxu1 %v692_v26  ;;  %v89_v15 = vrot.slane %v84_v13, %v88_v12  ;;  %v93_v16 = vrot.slane %v84_v13, %v92_v14 }
  0x1c   :  { %514 = vmatpush1.bf16.msra.mxu0 %v693_v27  ;;  %464 = vmatprep.subr.bf16.mxu1 %v694_v28 }
  0x1d   :  { %515 = vmatprep.subr.bf16.mxu0 %v696_v29 }
  0x1f   :  { %465 = vmatpush1.bf16.msra.mxu1 %v698_v30 }
  0x20   :  { %516 = vmatpush1.bf16.msra.mxu0 %v699_v31  ;;  %466 = vmatprep.subr.bf16.mxu1 %v700_v32 }
  0x21   :  { %517 = vmatprep.subr.bf16.mxu0 %v702_v33 }
  0x23   :  { %467 = vmatpush1.bf16.msra.mxu1 %v704_v34 }
  0x24   :  { %518 = vmatpush1.bf16.msra.mxu0 %v705_v35  ;;  %468 = vmatprep.subr.bf16.mxu1 %v706_v36 }
  0x25   :  { %519 = vmatprep.subr.bf16.mxu0 %v708_v37 }
  0x27   :  { %469 = vmatpush1.bf16.msra.mxu1 %v710_v38 }
  0x28   :  { %520 = vmatpush1.bf16.msra.mxu0 %v711_v39  ;;  %470 = vmatprep.subr.bf16.mxu1 %v712_v40 }
  0x29   :  { %521 = vmatprep.subr.bf16.mxu0 %v714_v41 }
  0x2b   :  { %471 = vmatpush1.bf16.msra.mxu1 %v716_v42 }
  0x2c   :  { %522 = vmatpush1.bf16.msra.mxu0 %v717_v43  ;;  %472 = vmatprep.subr.bf16.mxu1 %v718_v44 }
  0x2d   :  { %523 = vmatprep.subr.bf16.mxu0 %v720_v45 }
  0x2f   :  { %473 = vmatpush1.bf16.msra.mxu1 %v722_v46 }
  0x30   :  { %524 = vmatpush1.bf16.msra.mxu0 %v723_v48  ;;  %474 = vmatprep.subr.bf16.mxu1 %v724_v49 }
  0x31   :  { %525 = vmatprep.subr.bf16.mxu0 %v726_v50 }
  0x33   :  { %475 = vmatpush1.bf16.msra.mxu1 %v728_v52 }
  0x34   :  { %526 = vmatpush1.bf16.msra.mxu0 %v729_v53  ;;  %476 = vmatprep.subr.bf16.mxu1 %v730_v54 }
  0x35   :  { %527 = vmatprep.subr.bf16.mxu0 %v732_v55 }
  0x37   :  { %477 = vmatpush1.bf16.msra.mxu1 %v734_v56 }
  0x38   :  { %528 = vmatpush1.bf16.msra.mxu0 %v735_v57  ;;  %478 = vmatprep.subr.bf16.mxu1 %v736_v58 }
  0x39   :  { %529 = vmatprep.subr.bf16.mxu0 %v738_v59 }
  0x3b   :  { %479 = vmatpush1.bf16.msra.mxu1 %v740_v60 }
  0x3c   :  { %530 = vmatpush1.bf16.msra.mxu0 %v741_v61  ;;  %480 = vmatprep.subr.bf16.mxu1 %v742_v62 }
  0x3d   :  { %531 = vmatprep.subr.bf16.mxu0 %v744_v63 }
  0x3f   :  { %481 = vmatpush1.bf16.msra.mxu1 %v746_v0 }
  0x40   :  { %532 = vmatpush1.bf16.msra.mxu0 %v747_v1 }
  0x42   :  { %483 = vmatmul.mubr.bf16.vlgmr.msra.gmra.mrb[0].mxu1 %v748_v4 }
  0x43   :  { %534 = vmatmul.mubr.bf16.vlgmr.msra.gmra.mrb[0].mxu0 %v751_v5  ;;  %492 = vmatprep.mubr.bf16.mxu1 %v573_v6 }
  0x44   :  { %543 = vmatprep.mubr.bf16.mxu0 %v575_v7 }
  0x4a   :  { %493 = vmatmul.mubr.bf16.gmra.mrb[4].mxu1 %v572_v8 }
  0x4b   :  { %544 = vmatmul.mubr.bf16.gmra.mrb[4].mxu0 %v574_v9 }
 0x115   :  { %v484_v17 = vpop.f32.mrb[0].mxu1 }
 0x116   :  { %v535_v18 = vpop.f32.mrb[0].mxu0  ;;  %v485_v19 = vadd.f32 %v484_v17, %v89_v15  ;;  %v486_v20 = vpop.f32.mrb[1].mxu1 }
 0x117   :  { %v537_v21 = vpop.f32.mrb[1].mxu0  ;;  %v487_v22 = vadd.f32 %v486_v20, %v93_v16  ;;  %v488_v23 = vpop.f32.mrb[2].mxu1 }
 0x118   :  { %v539_v24 = vpop.f32.mrb[2].mxu0  ;;  %v536_v25 = vadd.f32 %v535_v18, %v485_v19  ;;  %v489_v26 = vadd.f32 %v488_v23, %v89_v15  ;;  %v490_v27 = vpop.f32.mrb[3].mxu1 }
 0x119   :  { %v541_v28 = vpop.f32.mrb[3].mxu0  ;;  %v538_v29 = vadd.f32 %v537_v21, %v487_v22  ;;  %v491_v30 = vadd.f32 %v490_v27, %v93_v16 }
 0x11a   :  { %v552_v31 = vmax.f32 %v536_v25, 0.0  ;;  %v540_v32 = vadd.f32 %v539_v24, %v489_v26 }
 0x11b   :  { %v553_v33 = vmax.f32 %v538_v29, 0.0  ;;  %v542_v34 = vadd.f32 %v541_v28, %v491_v30 }
 0x11c   :  { %558 = vst [vmem:[%s1012_s3] sm:$0xff] %v552_v31  ;;  %v554_v35 = vmax.f32 %v540_v32, 0.0 }
 0x11d   :  { %559 = vst [vmem:[%s1012_s3 + $0x8] sm:$0xff] %v553_v33  ;;  %v555_v36 = vmax.f32 %v542_v34, 0.0  ;;  %v494_v37 = vpop.f32.mrb[4].mxu1 }
 0x11e   :  { %v545_v38 = vpop.f32.mrb[4].mxu0  ;;  %560 = vst [vmem:[%s1012_s3 + $0x10] sm:$0xff] %v554_v35  ;;  %v495_v39 = vadd.f32 %v494_v37, %v89_v15  ;;  %v496_v40 = vpop.f32.mrb[5].mxu1 }
 0x11f   :  { %v547_v41 = vpop.f32.mrb[5].mxu0  ;;  %561 = vst [vmem:[%s1012_s3 + $0x18] sm:$0xff] %v555_v36  ;;  %v497_v42 = vadd.f32 %v496_v40, %v93_v16  ;;  %v498_v43 = vpop.f32.mrb[6].mxu1 }
 0x120   :  { %v549_v44 = vpop.f32.mrb[6].mxu0  ;;  %v546_v45 = vadd.f32 %v545_v38, %v495_v39  ;;  %v499_v46 = vpop.f32.mrb[7].mxu1 }
 0x121   :  { %v550_v47 = vpop.f32.mrb[7].mxu0  ;;  %v548_v48 = vadd.f32 %v547_v41, %v497_v42 }
 0x122   :  { %v556_v49 = vmax.f32 %v546_v45, 0.0 }
 0x123   :  { %v557_v50 = vmax.f32 %v548_v48, 0.0 }
 0x124   :  { %562 = vst [vmem:[%s1012_s3 + $0x20] sm:$0x3] %v556_v49 }
 0x125   :  { %563 = vst [vmem:[%s1012_s3 + $0x28] sm:$0x3] %v557_v50 }

// kernel: tile.33
= control target key start
LH: loop header
LB: loop body
LE: loop exit
PB: predicated region body
PF: predicated region fallthrough
CT: control target
= control target key end

     0   :  { %s22_s0 = inlined_call_operand.vmem [shape: f32[32], index: 0, kind: input, shape index: {}]   ;;  %s23_s1 = inlined_call_operand.vmem [shape: f32[4,32], index: 1, kind: output, shape index: {}]  }
   0x1   :  { %v4_v0 = vld [vmem:[%s22_s0] ss:$0 sm:$0xff] }
   0x2   :  { %5 = vst [vmem:[%s23_s1] sm:$0xf] %v4_v0 }

// kernel: tile.34
= control target key start
LH: loop header
LB: loop body
LE: loop exit
PB: predicated region body
PF: predicated region fallthrough
CT: control target
= control target key end

     0   :  { %vm7_vm0 = vcmask 261120   ;;  %s37_s8 = smov 32   ;;  %s38_s9 = smov 64   ;;  %vm13_vm1 = vcmask 1048320   ;;  %vm19_vm2 = vcmask 785920   ;;  %vm25_vm3 = vcmask 523520   ;;  %s55_s0 = inlined_call_operand.vmem [shape: f32[4,32], index: 0, kind: input, shape index: {}]   ;;  %s56_s1 = inlined_call_operand.vmem [shape: f32[1,128], index: 1, kind: output, shape index: {}]  }
   0x1   :  { %v4_v0 = vld [vmem:[%s55_s0] sm:$0xf]  ;;  %s36_s0 = smov 96  }
   0x2   :  { %5 = vst [vmem:[#allocation1] sm:$0xf] %v4_v0 }
   0x9   :  { %v10_v1 = vld [vmem:[#allocation1 + $0x3] sm:$0x1]   ;;  %v22_v2 = vld [vmem:[#allocation1 + $0x1] sm:$0x1]   ;;  %v6_v3 = vld [vmem:[#allocation1] sm:$0x1]  }
   0xa   :  { %11 = vrot.lane.b32.xlu0 %v10_v1, %s36_s0  ;;  %23 = vrot.lane.b32.xlu1 %v22_v2, %s37_s8  ;;  %v16_v4 = vld [vmem:[#allocation1 + $0x2] sm:$0x1]   ;;  %8 = vst.msk [vmem:[#allocation0] sm:$0x1] %vm7_vm0, %v6_v3  }
   0xe   :  { %17 = vrot.lane.b32.xlu0 %v16_v4, %s38_s9 }
  0x7c   :  { %v12_v5 = vpop.permute.xlu0 %11   ;;  %v24_v6 = vpop.permute.xlu1 %23  }
  0x7d   :  { %14 = vst.msk [vmem:[#allocation0] sm:$0x1] %vm13_vm1, %v12_v5  }
  0x80   :  { %v18_v7 = vpop.permute.xlu0 %17  }
  0x81   :  { %20 = vst.msk [vmem:[#allocation0] sm:$0x1] %vm19_vm2, %v18_v7  }
  0x82   :  { %26 = vst.msk [vmem:[#allocation0] sm:$0x1] %vm25_vm3, %v24_v6  }
  0x89   :  { %v30_v8 = vld [vmem:[#allocation0] sm:$0x1] }
  0x8a   :  { %32 = vst [vmem:[%s56_s1] sm:$0x1] %v30_v8 }

// kernel: vae_forward.14
= control target key start
LH: loop header
LB: loop body
LE: loop exit
PB: predicated region body
PF: predicated region fallthrough
CT: control target
= control target key end

     0   :  { %s653_s1 = inlined_call_operand.vmem [shape: bf16[256,128], index: 1, kind: input, shape index: {}]   ;;  %s654_s0 = inlined_call_operand.vmem [shape: bf16[98,256], index: 0, kind: input, shape index: {}]   ;;  %s655_s2 = inlined_call_operand.vmem [shape: f32[1,128], index: 2, kind: input, shape index: {}]   ;;  %s656_s3 = inlined_call_operand.vmem [shape: f32[98,128], index: 3, kind: output, shape index: {}]  }
   0x1   :  { %v453_v0 = vld [vmem:[%s653_s1 + $0x40] sm:$0xff]   ;;  %v455_v2 = vld [vmem:[%s653_s1 + $0x48] sm:$0xff]   ;;  %v457_v4 = vld [vmem:[%s653_s1 + $0x50] sm:$0xff]  }
   0x2   :  { %v454_v1 = vld [vmem:[%s653_s1] sm:$0xff]   ;;  %379 = vmatprep.subr.bf16.mxu0 %v453_v0  ;;  %437 = vmatprep.subr.bf16.mxu1 %v453_v0  ;;  %v456_v3 = vld [vmem:[%s653_s1 + $0x8] sm:$0xff]   ;;  %v458_v5 = vld [vmem:[%s653_s1 + $0x10] sm:$0xff]  }
   0x3   :  { %380 = vmatpush3.bf16.msra.mxu0 %v454_v1  ;;  %445 = vmatpush3.bf16.msra.mxu1 %v454_v1  ;;  %v459_v6 = vld [vmem:[%s653_s1 + $0x58] sm:$0xff]   ;;  %v461_v8 = vld [vmem:[%s653_s1 + $0x60] sm:$0xff]   ;;  %v463_v10 = vld [vmem:[%s653_s1 + $0x68] sm:$0xff]  }
   0x4   :  { %381 = vmatprep.subr.bf16.mxu0 %v455_v2  ;;  %438 = vmatprep.subr.bf16.mxu1 %v455_v2  ;;  %v460_v7 = vld [vmem:[%s653_s1 + $0x18] sm:$0xff]   ;;  %v462_v9 = vld [vmem:[%s653_s1 + $0x20] sm:$0xff]   ;;  %v464_v13 = vld [vmem:[%s653_s1 + $0x28] sm:$0xff]  }
   0x5   :  { %v471_v11 = vld [vmem:[%s654_s0 + $0x4] ss:$8 sps:$4 sm:$0xff]   ;;  %v465_v14 = vld [vmem:[%s653_s1 + $0x70] sm:$0xff]   ;;  %v467_v16 = vld [vmem:[%s653_s1 + $0x78] sm:$0xff]  }
   0x6   :  { %v474_v12 = vld [vmem:[%s654_s0 + $0x44] ss:$8 sps:$4 sm:$0xff]   ;;  %262 = vmatprep.mubr.bf16.mxu0 %v471_v11  ;;  %v466_v15 = vld [vmem:[%s653_s1 + $0x30] sm:$0xff]   ;;  %v468_v17 = vld [vmem:[%s653_s1 + $0x38] sm:$0xff]  }
   0x7   :  { %382 = vmatpush3.bf16.msra.mxu0 %v456_v3  ;;  %446 = vmatpush3.bf16.msra.mxu1 %v456_v3  ;;  %v469_v18 = vld [vmem:[%s654_s0] ss:$8 sps:$4 sm:$0xff]   ;;  %v475_v20 = vld [vmem:[%s654_s0 + $0x14] ss:$8 sps:$4 sm:$0xff]   ;;  %v477_v23 = vld [vmem:[%s654_s0 + $0x10] ss:$8 sps:$4 sm:$0xff]  }
   0x8   :  { %383 = vmatprep.subr.bf16.mxu0 %v457_v4  ;;  %439 = vmatprep.subr.bf16.mxu1 %v457_v4  ;;  %v472_v19 = vld [vmem:[%s654_s0 + $0x40] ss:$8 sps:$4 sm:$0xff]   ;;  %v478_v21 = vld [vmem:[%s654_s0 + $0x54] ss:$8 sps:$4 sm:$0xff]   ;;  %v482_v24 = vld [vmem:[%s654_s0 + $0x50] ss:$8 sps:$4 sm:$0xff]  }
   0x9   :  { %294 = vmatprep.mubr.bf16.mxu1 %v474_v12  ;;  %v27_v22 = vld [vmem:[%s654_s0 + $0x60] sm:$0x11]  ;;  %v485_v29 = vld [vmem:[%s654_s0 + $0x34] ss:$8 sps:$4 sm:$0xff]   ;;  %v488_v30 = vld [vmem:[%s654_s0 + $0x30] ss:$8 sps:$4 sm:$0xff]  }
   0xa   :  { %v480_v25 = vld [vmem:[%s654_s0 + $0x24] ss:$8 sps:$4 sm:$0xff]   ;;  %v362_v26 = vcombine.high %v27_v22, %v27_v22  ;;  %v483_v27 = vld [vmem:[%s654_s0 + $0x20] ss:$8 sps:$4 sm:$0xff]   ;;  %v361_v28 = vcombine.low %v27_v22, %v27_v22 }
   0xb   :  { %384 = vmatpush3.bf16.msra.mxu0 %v458_v5  ;;  %447 = vmatpush3.bf16.msra.mxu1 %v458_v5  ;;  %v599_v33 = vld [vmem:[%s655_s2] ss:$0 sm:$0xff] }
   0xc   :  { %385 = vmatprep.subr.bf16.mxu0 %v459_v6  ;;  %440 = vmatprep.subr.bf16.mxu1 %v459_v6 }
   0xf   :  { %386 = vmatpush3.bf16.msra.mxu0 %v460_v7  ;;  %448 = vmatpush3.bf16.msra.mxu1 %v460_v7 }
  0x10   :  { %387 = vmatprep.subr.bf16.mxu0 %v461_v8  ;;  %441 = vmatprep.subr.bf16.mxu1 %v461_v8 }
  0x13   :  { %388 = vmatpush3.bf16.msra.mxu0 %v462_v9  ;;  %449 = vmatpush3.bf16.msra.mxu1 %v462_v9 }
  0x14   :  { %389 = vmatprep.subr.bf16.mxu0 %v463_v10  ;;  %442 = vmatprep.subr.bf16.mxu1 %v463_v10 }
  0x17   :  { %390 = vmatpush3.bf16.msra.mxu0 %v464_v13  ;;  %450 = vmatpush3.bf16.msra.mxu1 %v464_v13 }
  0x18   :  { %391 = vmatprep.subr.bf16.mxu0 %v465_v14  ;;  %443 = vmatprep.subr.bf16.mxu1 %v465_v14 }
  0x1b   :  { %392 = vmatpush3.bf16.msra.mxu0 %v466_v15  ;;  %451 = vmatpush3.bf16.msra.mxu1 %v466_v15 }
  0x1c   :  { %393 = vmatprep.subr.bf16.mxu0 %v467_v16  ;;  %444 = vmatprep.subr.bf16.mxu1 %v467_v16 }
  0x1f   :  { %394 = vmatpush3.bf16.msra.mxu0 %v468_v17  ;;  %452 = vmatpush3.bf16.msra.mxu1 %v468_v17 }
  0x22   :  { %263 = vmatmul.mubr.bf16.vlgmr.msra.gmra.mrb[0].mxu0 %v469_v18  ;;  %295 = vmatmul.mubr.bf16.vlgmr.msra.gmra.mrb[0].mxu1 %v472_v19 }
  0x23   :  { %270 = vmatprep.mubr.bf16.mxu0 %v475_v20  ;;  %302 = vmatprep.mubr.bf16.mxu1 %v478_v21 }
  0x2a   :  { %271 = vmatmul.mubr.bf16.gmra.mrb[4].mxu0 %v477_v23  ;;  %303 = vmatmul.mubr.bf16.gmra.mrb[4].mxu1 %v482_v24 }
  0x2b   :  { %278 = vmatprep.mubr.bf16.mxu0 %v480_v25  ;;  %310 = vmatprep.mubr.bf16.mxu1 %v362_v26 }
  0x32   :  { %279 = vmatmul.mubr.bf16.gmra.mrb[8].mxu0 %v483_v27  ;;  %311 = vmatmul.mubr.bf16.gmra.mrb[8].mxu1 %v361_v28 }
  0x33   :  { %286 = vmatprep.mubr.bf16.mxu0 %v485_v29 }
  0x3a   :  { %287 = vmatmul.mubr.bf16.gmra.mrb[12].mxu0 %v488_v30 }
  0xf5   :  { %v395_v31 = vpop.f32.mrb[0].mxu0  ;;  %v419_v32 = vpop.f32.mrb[0].mxu1 }
  0xf6   :  { %v396_v34 = vpop.f32.mrb[1].mxu0  ;;  %v420_v35 = vpop.f32.mrb[1].mxu1 }
  0xf7   :  { %v397_v36 = vadd.f32 %v396_v34, %v395_v31  ;;  %v398_v37 = vpop.f32.mrb[2].mxu0  ;;  %v421_v38 = vadd.f32 %v420_v35, %v419_v32  ;;  %v422_v39 = vpop.f32.mrb[2].mxu1 }
  0xf8   :  { %v399_v40 = vpop.f32.mrb[3].mxu0  ;;  %v423_v41 = vpop.f32.mrb[3].mxu1 }
  0xf9   :  { %v265_v42 = vadd.f32 %v397_v36, %v599_v33  ;;  %v400_v43 = vadd.f32 %v399_v40, %v398_v37  ;;  %v297_v44 = vadd.f32 %v421_v38, %v599_v33  ;;  %v424_v45 = vadd.f32 %v423_v41, %v422_v39 }
  0xfb   :  { %v318_v46 = vmax.f32 %v265_v42, 0.0  ;;  %v268_v47 = vadd.f32 %v400_v43, %v599_v33  ;;  %v326_v48 = vmax.f32 %v297_v44, 0.0  ;;  %v300_v49 = vadd.f32 %v424_v45, %v599_v33 }
  0xfd   :  { %331 = vst [vmem:[%s656_s3] sm:$0xff] %v318_v46  ;;  %v319_v50 = vmax.f32 %v268_v47, 0.0  ;;  %v401_v51 = vpop.f32.mrb[4].mxu0  ;;  %339 = vst [vmem:[%s656_s3 + $0x40] sm:$0xff] %v326_v48  ;;  %v327_v52 = vmax.f32 %v300_v49, 0.0  ;;  %v425_v53 = vpop.f32.mrb[4].mxu1 }
  0xfe   :  { %v402_v54 = vpop.f32.mrb[5].mxu0  ;;  %v426_v55 = vpop.f32.mrb[5].mxu1 }
  0xff   :  { %332 = vst [vmem:[%s656_s3 + $0x8] sm:$0xff] %v319_v50  ;;  %v403_v56 = vadd.f32 %v402_v54, %v401_v51  ;;  %v404_v57 = vpop.f32.mrb[6].mxu0  ;;  %340 = vst [vmem:[%s656_s3 + $0x48] sm:$0xff] %v327_v52  ;;  %v427_v58 = vadd.f32 %v426_v55, %v425_v53  ;;  %v428_v59 = vpop.f32.mrb[6].mxu1 }
 0x100   :  { %v405_v60 = vpop.f32.mrb[7].mxu0  ;;  %v429_v61 = vpop.f32.mrb[7].mxu1 }
 0x101   :  { %v273_v62 = vadd.f32 %v403_v56, %v599_v33  ;;  %v406_v63 = vadd.f32 %v405_v60, %v404_v57  ;;  %v305_v0 = vadd.f32 %v427_v58, %v599_v33  ;;  %v430_v1 = vadd.f32 %v429_v61, %v428_v59 }
 0x103   :  { %v320_v2 = vmax.f32 %v273_v62, 0.0  ;;  %v276_v3 = vadd.f32 %v406_v63, %v599_v33  ;;  %v328_v4 = vmax.f32 %v305_v0, 0.0  ;;  %v308_v5 = vadd.f32 %v430_v1, %v599_v33 }
 0x105   :  { %333 = vst [vmem:[%s656_s3 + $0x10] sm:$0xff] %v320_v2  ;;  %v321_v6 = vmax.f32 %v276_v3, 0.0  ;;  %v407_v7 = vpop.f32.mrb[8].mxu0  ;;  %341 = vst [vmem:[%s656_s3 + $0x50] sm:$0xff] %v328_v4  ;;  %v329_v8 = vmax.f32 %v308_v5, 0.0  ;;  %v431_v9 = vpop.f32.mrb[8].mxu1 }
 0x106   :  { %v408_v10 = vpop.f32.mrb[9].mxu0  ;;  %v432_v11 = vpop.f32.mrb[9].mxu1 }
 0x107   :  { %334 = vst [vmem:[%s656_s3 + $0x18] sm:$0xff] %v321_v6  ;;  %v409_v12 = vadd.f32 %v408_v10, %v407_v7  ;;  %v410_v13 = vpop.f32.mrb[10].mxu0  ;;  %342 = vst [vmem:[%s656_s3 + $0x58] sm:$0xff] %v329_v8  ;;  %v433_v14 = vadd.f32 %v432_v11, %v431_v9  ;;  %v434_v15 = vpop.f32.mrb[10].mxu1 }
 0x108   :  { %v411_v16 = vpop.f32.mrb[11].mxu0  ;;  %v435_v17 = vpop.f32.mrb[11].mxu1 }
 0x109   :  { %v281_v18 = vadd.f32 %v409_v12, %v599_v33  ;;  %v412_v19 = vadd.f32 %v411_v16, %v410_v13  ;;  %v313_v20 = vadd.f32 %v433_v14, %v599_v33 }
 0x10b   :  { %v322_v21 = vmax.f32 %v281_v18, 0.0  ;;  %v284_v22 = vadd.f32 %v412_v19, %v599_v33  ;;  %v330_v23 = vmax.f32 %v313_v20, 0.0 }
 0x10d   :  { %335 = vst [vmem:[%s656_s3 + $0x20] sm:$0xff] %v322_v21  ;;  %v323_v24 = vmax.f32 %v284_v22, 0.0  ;;  %v413_v25 = vpop.f32.mrb[12].mxu0  ;;  %343 = vst [vmem:[%s656_s3 + $0x60] sm:$0x3] %v330_v23 }
 0x10e   :  { %v414_v26 = vpop.f32.mrb[13].mxu0 }
 0x10f   :  { %336 = vst [vmem:[%s656_s3 + $0x28] sm:$0xff] %v323_v24  ;;  %v415_v27 = vadd.f32 %v414_v26, %v413_v25  ;;  %v416_v28 = vpop.f32.mrb[14].mxu0 }
 0x110   :  { %v417_v29 = vpop.f32.mrb[15].mxu0 }
 0x111   :  { %v289_v30 = vadd.f32 %v415_v27, %v599_v33  ;;  %v418_v31 = vadd.f32 %v417_v29, %v416_v28 }
 0x113   :  { %v324_v32 = vmax.f32 %v289_v30, 0.0  ;;  %v292_v34 = vadd.f32 %v418_v31, %v599_v33 }
 0x115   :  { %337 = vst [vmem:[%s656_s3 + $0x30] sm:$0xff] %v324_v32  ;;  %v325_v35 = vmax.f32 %v292_v34, 0.0 }
 0x117   :  { %338 = vst [vmem:[%s656_s3 + $0x38] sm:$0xff] %v325_v35 }

// kernel: vae_forward.15
= control target key start
LH: loop header
LB: loop body
LE: loop exit
PB: predicated region body
PF: predicated region fallthrough
CT: control target
= control target key end

     0   :  { %v1475_v0 = vmov 0.0   ;;  %vm1476_vm0 = vmmov 0   ;;  %vm921_vm1 = vcmask 31744   ;;  %vm978_vm2 = vcmask 25600   ;;  %s1969_s1 = inlined_call_operand.vmem [shape: bf16[128,4], index: 1, kind: input, shape index: {}]   ;;  %s1970_s0 = inlined_call_operand.vmem [shape: bf16[450,128], index: 0, kind: input, shape index: {}]   ;;  %s1971_s2 = inlined_call_operand.vmem [shape: f32[1,4], index: 2, kind: input, shape index: {}]   ;;  %s1972_s3 = inlined_call_operand.vmem [shape: f32[450,4], index: 3, kind: output, shape index: {}]  }
   0x1   :  { %1059 = vmatprep.subr.bf16.mxu0 %v1475_v0  ;;  %v1209_v1 = vld [vmem:[%s1969_s1] sm:$0xff]   ;;  %1191 = vmatprep.subr.bf16.mxu1 %v1475_v0  ;;  %v1210_v2 = vld [vmem:[%s1969_s1 + $0x8] sm:$0xff]   ;;  %v1211_v3 = vld [vmem:[%s1969_s1 + $0x10] sm:$0xff]  }
   0x2   :  { %1075 = vmatprep.mubr.msk.bf16.mxu0 %vm1476_vm0, %v1475_v0  ;;  %1135 = vmatprep.mubr.msk.bf16.mxu1 %vm1476_vm0, %v1475_v0  ;;  %v1212_v4 = vld [vmem:[%s1969_s1 + $0x18] sm:$0xff]   ;;  %v1213_v5 = vld [vmem:[%s1969_s1 + $0x20] sm:$0xff]   ;;  %v1214_v6 = vld [vmem:[%s1969_s1 + $0x28] sm:$0xff]  }
   0x3   :  { %1060 = vmatpush3.bf16.msra.mxu0 %v1209_v1  ;;  %1199 = vmatpush3.bf16.msra.mxu1 %v1209_v1  ;;  %v1215_v7 = vld [vmem:[%s1969_s1 + $0x30] sm:$0xff]   ;;  %v1216_v8 = vld [vmem:[%s1969_s1 + $0x38] sm:$0xff]   ;;  %v1217_v9 = vld [vmem:[%s1970_s0] sm:$0xff]  }
   0x4   :  { %1061 = vmatprep.subr.bf16.mxu0 %v1475_v0  ;;  %1192 = vmatprep.subr.bf16.mxu1 %v1475_v0  ;;  %v1218_v10 = vld [vmem:[%s1970_s0 + $0x78] sm:$0xff]   ;;  %v1219_v11 = vld [vmem:[%s1970_s0 + $0x8] sm:$0xff]   ;;  %v1220_v12 = vld [vmem:[%s1970_s0 + $0x80] sm:$0xff]  }
   0x5   :  { %v1221_v13 = vld [vmem:[%s1970_s0 + $0x10] sm:$0xff]   ;;  %v1222_v14 = vld [vmem:[%s1970_s0 + $0x88] sm:$0xff]   ;;  %v1223_v15 = vld [vmem:[%s1970_s0 + $0x18] sm:$0xff]  }
   0x6   :  { %v1224_v16 = vld [vmem:[%s1970_s0 + $0x90] sm:$0xff]   ;;  %v1225_v17 = vld [vmem:[%s1970_s0 + $0x20] sm:$0xff]   ;;  %v1226_v18 = vld [vmem:[%s1970_s0 + $0x98] sm:$0xff]  }
   0x7   :  { %1062 = vmatpush3.bf16.msra.mxu0 %v1210_v2  ;;  %1200 = vmatpush3.bf16.msra.mxu1 %v1210_v2  ;;  %v1227_v19 = vld [vmem:[%s1970_s0 + $0x28] sm:$0xff]   ;;  %v1228_v20 = vld [vmem:[%s1970_s0 + $0xa0] sm:$0xff]   ;;  %v1229_v21 = vld [vmem:[%s1970_s0 + $0x30] sm:$0xff]  }
   0x8   :  { %1063 = vmatprep.subr.bf16.mxu0 %v1475_v0  ;;  %1193 = vmatprep.subr.bf16.mxu1 %v1475_v0  ;;  %v1230_v22 = vld [vmem:[%s1970_s0 + $0xa8] sm:$0xff]   ;;  %v1231_v23 = vld [vmem:[%s1970_s0 + $0x38] sm:$0xff]   ;;  %v1232_v24 = vld [vmem:[%s1970_s0 + $0xb0] sm:$0xff]  }
   0x9   :  { %v1233_v25 = vld [vmem:[%s1970_s0 + $0x40] sm:$0xff]   ;;  %v1234_v26 = vld [vmem:[%s1970_s0 + $0xb8] sm:$0xff]   ;;  %v1235_v27 = vld [vmem:[%s1970_s0 + $0x48] sm:$0xff]  }
   0xa   :  { %v1236_v28 = vld [vmem:[%s1970_s0 + $0xc0] sm:$0xff]   ;;  %v1237_v29 = vld [vmem:[%s1970_s0 + $0x50] sm:$0xff]   ;;  %v1238_v30 = vld [vmem:[%s1970_s0 + $0xc8] sm:$0xff]  }
   0xb   :  { %1064 = vmatpush3.bf16.msra.mxu0 %v1211_v3  ;;  %1201 = vmatpush3.bf16.msra.mxu1 %v1211_v3  ;;  %v1239_v31 = vld [vmem:[%s1970_s0 + $0x58] sm:$0xff]   ;;  %v1240_v32 = vld [vmem:[%s1970_s0 + $0xd0] sm:$0xff]   ;;  %v1241_v33 = vld [vmem:[%s1970_s0 + $0x60] sm:$0xff]  }
   0xc   :  { %1065 = vmatprep.subr.bf16.mxu0 %v1475_v0  ;;  %1194 = vmatprep.subr.bf16.mxu1 %v1475_v0  ;;  %v1242_v34 = vld [vmem:[%s1970_s0 + $0xd8] sm:$0xff]   ;;  %v1243_v35 = vld [vmem:[%s1970_s0 + $0x68] sm:$0xff]   ;;  %v1244_v36 = vld [vmem:[%s1970_s0 + $0xe0] ss:$0 sps:$4 sm:$0x11]  }
   0xd   :  { %v1245_v37 = vld [vmem:[%s1970_s0 + $0x70] sm:$0xff]   ;;  %v1685_v38 = vld [vmem:[%s1971_s2] ss:$0 sm:$0xff] }
   0xf   :  { %1066 = vmatpush3.bf16.msra.mxu0 %v1212_v4  ;;  %1202 = vmatpush3.bf16.msra.mxu1 %v1212_v4 }
  0x10   :  { %1067 = vmatprep.subr.bf16.mxu0 %v1475_v0  ;;  %1195 = vmatprep.subr.bf16.mxu1 %v1475_v0 }
  0x13   :  { %1068 = vmatpush3.bf16.msra.mxu0 %v1213_v5  ;;  %1203 = vmatpush3.bf16.msra.mxu1 %v1213_v5 }
  0x14   :  { %1069 = vmatprep.subr.bf16.mxu0 %v1475_v0  ;;  %1196 = vmatprep.subr.bf16.mxu1 %v1475_v0 }
  0x17   :  { %1070 = vmatpush3.bf16.msra.mxu0 %v1214_v6  ;;  %1204 = vmatpush3.bf16.msra.mxu1 %v1214_v6 }
  0x18   :  { %1071 = vmatprep.subr.bf16.mxu0 %v1475_v0  ;;  %1197 = vmatprep.subr.bf16.mxu1 %v1475_v0 }
  0x1b   :  { %1072 = vmatpush3.bf16.msra.mxu0 %v1215_v7  ;;  %1205 = vmatpush3.bf16.msra.mxu1 %v1215_v7 }
  0x1c   :  { %1073 = vmatprep.subr.bf16.mxu0 %v1475_v0  ;;  %1198 = vmatprep.subr.bf16.mxu1 %v1475_v0 }
  0x1f   :  { %1074 = vmatpush3.bf16.msra.mxu0 %v1216_v8  ;;  %1206 = vmatpush3.bf16.msra.mxu1 %v1216_v8 }
  0x22   :  { %1076 = vmatmul.mubr.bf16.vlgmr.msra.gmra.mrb[0].mxu0 %v1217_v9  ;;  %1136 = vmatmul.mubr.bf16.vlgmr.msra.gmra.mrb[0].mxu1 %v1218_v10 }
  0x23   :  { %1079 = vmatprep.mubr.msk.bf16.mxu0 %vm1476_vm0, %v1475_v0  ;;  %1139 = vmatprep.mubr.msk.bf16.mxu1 %vm1476_vm0, %v1475_v0 }
  0x2a   :  { %1080 = vmatmul.mubr.bf16.gmra.mrb[4].mxu0 %v1219_v11  ;;  %1140 = vmatmul.mubr.bf16.gmra.mrb[4].mxu1 %v1220_v12 }
  0x2b   :  { %1083 = vmatprep.mubr.msk.bf16.mxu0 %vm1476_vm0, %v1475_v0  ;;  %1143 = vmatprep.mubr.msk.bf16.mxu1 %vm1476_vm0, %v1475_v0 }
  0x32   :  { %1084 = vmatmul.mubr.bf16.gmra.mrb[8].mxu0 %v1221_v13  ;;  %1144 = vmatmul.mubr.bf16.gmra.mrb[8].mxu1 %v1222_v14 }
  0x33   :  { %1087 = vmatprep.mubr.msk.bf16.mxu0 %vm1476_vm0, %v1475_v0  ;;  %1147 = vmatprep.mubr.msk.bf16.mxu1 %vm1476_vm0, %v1475_v0 }
  0x3a   :  { %1088 = vmatmul.mubr.bf16.gmra.mrb[12].mxu0 %v1223_v15  ;;  %1148 = vmatmul.mubr.bf16.gmra.mrb[12].mxu1 %v1224_v16 }
  0x3b   :  { %1091 = vmatprep.mubr.msk.bf16.mxu0 %vm1476_vm0, %v1475_v0  ;;  %1151 = vmatprep.mubr.msk.bf16.mxu1 %vm1476_vm0, %v1475_v0 }
  0x42   :  { %1092 = vmatmul.mubr.bf16.gmra.mrb[16].mxu0 %v1225_v17  ;;  %1152 = vmatmul.mubr.bf16.gmra.mrb[16].mxu1 %v1226_v18 }
  0x43   :  { %1095 = vmatprep.mubr.msk.bf16.mxu0 %vm1476_vm0, %v1475_v0  ;;  %1155 = vmatprep.mubr.msk.bf16.mxu1 %vm1476_vm0, %v1475_v0 }
  0x4a   :  { %1096 = vmatmul.mubr.bf16.gmra.mrb[20].mxu0 %v1227_v19  ;;  %1156 = vmatmul.mubr.bf16.gmra.mrb[20].mxu1 %v1228_v20 }
  0x4b   :  { %1099 = vmatprep.mubr.msk.bf16.mxu0 %vm1476_vm0, %v1475_v0  ;;  %1159 = vmatprep.mubr.msk.bf16.mxu1 %vm1476_vm0, %v1475_v0 }
  0x52   :  { %1100 = vmatmul.mubr.bf16.gmra.mrb[24].mxu0 %v1229_v21  ;;  %1160 = vmatmul.mubr.bf16.gmra.mrb[24].mxu1 %v1230_v22 }
  0x53   :  { %1103 = vmatprep.mubr.msk.bf16.mxu0 %vm1476_vm0, %v1475_v0  ;;  %1163 = vmatprep.mubr.msk.bf16.mxu1 %vm1476_vm0, %v1475_v0 }
  0x5a   :  { %1104 = vmatmul.mubr.bf16.gmra.mrb[28].mxu0 %v1231_v23  ;;  %1164 = vmatmul.mubr.bf16.gmra.mrb[28].mxu1 %v1232_v24 }
  0x5b   :  { %1107 = vmatprep.mubr.msk.bf16.mxu0 %vm1476_vm0, %v1475_v0  ;;  %1167 = vmatprep.mubr.msk.bf16.mxu1 %vm1476_vm0, %v1475_v0 }
  0x62   :  { %1108 = vmatmul.mubr.bf16.gmra.mrb[32].mxu0 %v1233_v25  ;;  %1168 = vmatmul.mubr.bf16.gmra.mrb[32].mxu1 %v1234_v26 }
  0x63   :  { %1111 = vmatprep.mubr.msk.bf16.mxu0 %vm1476_vm0, %v1475_v0  ;;  %1171 = vmatprep.mubr.msk.bf16.mxu1 %vm1476_vm0, %v1475_v0 }
  0x6a   :  { %1112 = vmatmul.mubr.bf16.gmra.mrb[36].mxu0 %v1235_v27  ;;  %1172 = vmatmul.mubr.bf16.gmra.mrb[36].mxu1 %v1236_v28 }
  0x6b   :  { %1115 = vmatprep.mubr.msk.bf16.mxu0 %vm1476_vm0, %v1475_v0  ;;  %1175 = vmatprep.mubr.msk.bf16.mxu1 %vm1476_vm0, %v1475_v0 }
  0x72   :  { %1116 = vmatmul.mubr.bf16.gmra.mrb[40].mxu0 %v1237_v29  ;;  %1176 = vmatmul.mubr.bf16.gmra.mrb[40].mxu1 %v1238_v30 }
  0x73   :  { %1119 = vmatprep.mubr.msk.bf16.mxu0 %vm1476_vm0, %v1475_v0  ;;  %1179 = vmatprep.mubr.msk.bf16.mxu1 %vm1476_vm0, %v1475_v0 }
  0x7a   :  { %1120 = vmatmul.mubr.bf16.gmra.mrb[44].mxu0 %v1239_v31  ;;  %1180 = vmatmul.mubr.bf16.gmra.mrb[44].mxu1 %v1240_v32 }
  0x7b   :  { %1123 = vmatprep.mubr.msk.bf16.mxu0 %vm1476_vm0, %v1475_v0  ;;  %1183 = vmatprep.mubr.msk.bf16.mxu1 %vm1476_vm0, %v1475_v0 }
  0x82   :  { %1124 = vmatmul.mubr.bf16.gmra.mrb[48].mxu0 %v1241_v33  ;;  %1184 = vmatmul.mubr.bf16.gmra.mrb[48].mxu1 %v1242_v34 }
  0x83   :  { %1127 = vmatprep.mubr.msk.bf16.mxu0 %vm1476_vm0, %v1475_v0  ;;  %1187 = vmatprep.mubr.msk.bf16.mxu1 %vm1476_vm0, %v1475_v0 }
  0x8a   :  { %1128 = vmatmul.mubr.bf16.gmra.mrb[52].mxu0 %v1243_v35  ;;  %1188 = vmatmul.mubr.bf16.gmra.mrb[52].mxu1 %v1244_v36 }
  0x8b   :  { %1131 = vmatprep.mubr.msk.bf16.mxu0 %vm1476_vm0, %v1475_v0 }
  0x92   :  { %1132 = vmatmul.mubr.bf16.gmra.mrb[56].mxu0 %v1245_v37 }
  0xf5   :  { %v349_v39 = vpop.f32.mrb[0].mxu0  ;;  %v469_v40 = vpop.f32.mrb[0].mxu1 }
  0xf6   :  { %v350_v41 = vadd.f32 %v1685_v38, %v349_v39  ;;  %v1077_v42 = vpop.f32.mrb[1].mxu0  ;;  %v470_v43 = vadd.f32 %v1685_v38, %v469_v40  ;;  %v1137_v44 = vpop.f32.mrb[1].mxu1 }
  0xf7   :  { %v352_v45 = vpop.f32.mrb[2].mxu0  ;;  %v472_v46 = vpop.f32.mrb[2].mxu1 }
  0xf8   :  { %v579_v47 = vsub.f32 0.0, %v350_v41  ;;  %v353_v48 = vadd.f32 %v1685_v38, %v352_v45  ;;  %v1078_v49 = vpop.f32.mrb[3].mxu0  ;;  %v609_v50 = vsub.f32 0.0, %v470_v43  ;;  %v473_v51 = vadd.f32 %v1685_v38, %v472_v46  ;;  %v1138_v52 = vpop.f32.mrb[3].mxu1 }
  0xfa   :  { %v636_v53 = vmul.f32 1.442695, %v579_v47  ;;  %v580_v54 = vsub.f32 0.0, %v353_v48  ;;  %v696_v55 = vmul.f32 1.442695, %v609_v50  ;;  %v610_v56 = vsub.f32 0.0, %v473_v51 }
  0xfc   :  { %1246 = vpow2.f32 %v636_v53  ;;  %v638_v57 = vmul.f32 1.442695, %v580_v54  ;;  %v698_v58 = vmul.f32 1.442695, %v610_v56 }
  0xfd   :  { %1248 = vpow2.f32 %v696_v55  ;;  %v357_v59 = vpop.f32.mrb[4].mxu0  ;;  %v477_v60 = vpop.f32.mrb[4].mxu1 }
  0xfe   :  { %1250 = vpow2.f32 %v638_v57  ;;  %v358_v61 = vadd.f32 %v1685_v38, %v357_v59  ;;  %v1081_v62 = vpop.f32.mrb[5].mxu0  ;;  %v478_v63 = vadd.f32 %v1685_v38, %v477_v60  ;;  %v1141_v0 = vpop.f32.mrb[5].mxu1 }
  0xff   :  { %1252 = vpow2.f32 %v698_v58  ;;  %v360_v1 = vpop.f32.mrb[6].mxu0  ;;  %v480_v2 = vpop.f32.mrb[6].mxu1 }
 0x100   :  { %v581_v3 = vsub.f32 0.0, %v358_v61  ;;  %v361_v4 = vadd.f32 %v1685_v38, %v360_v1  ;;  %v1082_v5 = vpop.f32.mrb[7].mxu0  ;;  %v611_v6 = vsub.f32 0.0, %v478_v63  ;;  %v481_v7 = vadd.f32 %v1685_v38, %v480_v2  ;;  %v1142_v8 = vpop.f32.mrb[7].mxu1 }
 0x102   :  { %v640_v9 = vmul.f32 1.442695, %v581_v3  ;;  %v582_v10 = vsub.f32 0.0, %v361_v4  ;;  %v700_v11 = vmul.f32 1.442695, %v611_v6  ;;  %v612_v12 = vsub.f32 0.0, %v481_v7 }
 0x104   :  { %1254 = vpow2.f32 %v640_v9  ;;  %v642_v13 = vmul.f32 1.442695, %v582_v10  ;;  %v702_v14 = vmul.f32 1.442695, %v612_v12 }
 0x105   :  { %1256 = vpow2.f32 %v700_v11  ;;  %v365_v15 = vpop.f32.mrb[8].mxu0  ;;  %v485_v16 = vpop.f32.mrb[8].mxu1 }
 0x106   :  { %v1247_v17 = vpop.eup %1246  ;;  %1258 = vpow2.f32 %v642_v13  ;;  %v366_v18 = vadd.f32 %v1685_v38, %v365_v15  ;;  %v1085_v19 = vpop.f32.mrb[9].mxu0  ;;  %v486_v20 = vadd.f32 %v1685_v38, %v485_v16 }
 0x107   :  { %v1145_v21 = vpop.f32.mrb[9].mxu1  ;;  %v1249_v22 = vpop.eup %1248  ;;  %v750_v23 = vadd.f32 1.0, %v1247_v17  ;;  %1260 = vpow2.f32 %v702_v14 }
 0x108   :  { %v368_v24 = vpop.f32.mrb[10].mxu0  ;;  %v488_v25 = vpop.f32.mrb[10].mxu1  ;;  %v780_v27 = vadd.f32 1.0, %v1249_v22  ;;  %v583_v28 = vsub.f32 0.0, %v366_v18  ;;  %v613_v31 = vsub.f32 0.0, %v486_v20 }
 0x109   :  { %v1251_v26 = vpop.eup %1250  ;;  %v369_v29 = vadd.f32 %v1685_v38, %v368_v24  ;;  %v1086_v30 = vpop.f32.mrb[11].mxu0  ;;  %1262 = vrcp.f32 %v750_v23  ;;  %v489_v35 = vadd.f32 %v1685_v38, %v488_v25 }
 0x10a   :  { %v1146_v32 = vpop.f32.mrb[11].mxu1  ;;  %v1253_v33 = vpop.eup %1252  ;;  %v751_v34 = vadd.f32 1.0, %v1251_v26  ;;  %1264 = vrcp.f32 %v780_v27  ;;  %v644_v37 = vmul.f32 1.442695, %v583_v28  ;;  %v704_v40 = vmul.f32 1.442695, %v613_v31 }
 0x10b   :  { %v781_v36 = vadd.f32 1.0, %v1253_v33  ;;  %v584_v39 = vsub.f32 0.0, %v369_v29  ;;  %v614_v41 = vsub.f32 0.0, %v489_v35 }
 0x10c   :  { %1266 = vrcp.f32 %v751_v34 }
 0x10d   :  { %1268 = vrcp.f32 %v781_v36  ;;  %v646_v42 = vmul.f32 1.442695, %v584_v39  ;;  %v373_v43 = vpop.f32.mrb[12].mxu0  ;;  %v706_v44 = vmul.f32 1.442695, %v614_v41  ;;  %v493_v45 = vpop.f32.mrb[12].mxu1 }
 0x10e   :  { %1270 = vpow2.f32 %v644_v37  ;;  %v1255_v46 = vpop.eup %1254  ;;  %v374_v47 = vadd.f32 %v1685_v38, %v373_v43  ;;  %v1089_v48 = vpop.f32.mrb[13].mxu0  ;;  %v494_v49 = vadd.f32 %v1685_v38, %v493_v45 }
 0x10f   :  { %1272 = vpow2.f32 %v646_v42  ;;  %v1149_v50 = vpop.f32.mrb[13].mxu1  ;;  %v1257_v51 = vpop.eup %1256  ;;  %v752_v52 = vadd.f32 1.0, %v1255_v46 }
 0x110   :  { %1274 = vpow2.f32 %v704_v40  ;;  %v376_v53 = vpop.f32.mrb[14].mxu0  ;;  %v496_v54 = vpop.f32.mrb[14].mxu1  ;;  %v782_v56 = vadd.f32 1.0, %v1257_v51  ;;  %v585_v57 = vsub.f32 0.0, %v374_v47  ;;  %v615_v63 = vsub.f32 0.0, %v494_v49 }
 0x111   :  { %v1259_v55 = vpop.eup %1258  ;;  %1276 = vpow2.f32 %v706_v44  ;;  %v377_v58 = vadd.f32 %v1685_v38, %v376_v53  ;;  %v1090_v59 = vpop.f32.mrb[15].mxu0  ;;  %v497_v0 = vadd.f32 %v1685_v38, %v496_v54 }
 0x112   :  { %v1150_v60 = vpop.f32.mrb[15].mxu1  ;;  %v1261_v61 = vpop.eup %1260  ;;  %1278 = vrcp.f32 %v752_v52  ;;  %v753_v62 = vadd.f32 1.0, %v1259_v55  ;;  %v648_v2 = vmul.f32 1.442695, %v585_v57  ;;  %v708_v5 = vmul.f32 1.442695, %v615_v63 }
 0x113   :  { %1280 = vrcp.f32 %v782_v56  ;;  %v783_v1 = vadd.f32 1.0, %v1261_v61  ;;  %v586_v3 = vsub.f32 0.0, %v377_v58  ;;  %v1263_v4 = vpop.eup %1262  ;;  %v616_v6 = vsub.f32 0.0, %v497_v0 }
 0x114   :  { %1282 = vrcp.f32 %v753_v62  ;;  %v1265_v7 = vpop.eup %1264  ;;  %922 = vst.msk [vmem:[%s1972_s3] sm:$0xff] %vm921_vm1, %v1263_v4 }
 0x115   :  { %1284 = vrcp.f32 %v783_v1  ;;  %v650_v8 = vmul.f32 1.442695, %v586_v3  ;;  %952 = vst.msk [vmem:[%s1972_s3 + $0xf0] sm:$0xff] %vm921_vm1, %v1265_v7  ;;  %v381_v10 = vpop.f32.mrb[16].mxu0  ;;  %v710_v11 = vmul.f32 1.442695, %v616_v6 }
 0x116   :  { %v1267_v9 = vpop.eup %1266  ;;  %1286 = vpow2.f32 %v648_v2  ;;  %v501_v12 = vpop.f32.mrb[16].mxu1  ;;  %v382_v14 = vadd.f32 %v1685_v38, %v381_v10 }
 0x117   :  { %v1269_v13 = vpop.eup %1268  ;;  %923 = vst.msk [vmem:[%s1972_s3 + $0x8] sm:$0xff] %vm921_vm1, %v1267_v9  ;;  %1288 = vpow2.f32 %v650_v8  ;;  %v1093_v15 = vpop.f32.mrb[17].mxu0  ;;  %v502_v16 = vadd.f32 %v1685_v38, %v501_v12 }
 0x118   :  { %v1153_v17 = vpop.f32.mrb[17].mxu1  ;;  %v1271_v18 = vpop.eup %1270  ;;  %953 = vst.msk [vmem:[%s1972_s3 + $0xf8] sm:$0xff] %vm921_vm1, %v1269_v13  ;;  %1290 = vpow2.f32 %v708_v5  ;;  %v587_v23 = vsub.f32 0.0, %v382_v14 }
 0x119   :  { %v384_v19 = vpop.f32.mrb[18].mxu0  ;;  %v504_v20 = vpop.f32.mrb[18].mxu1  ;;  %v754_v22 = vadd.f32 1.0, %v1271_v18  ;;  %1292 = vpow2.f32 %v710_v11  ;;  %v617_v29 = vsub.f32 0.0, %v502_v16 }
 0x11a   :  { %v1273_v21 = vpop.eup %1272  ;;  %v385_v24 = vadd.f32 %v1685_v38, %v384_v19  ;;  %v1094_v25 = vpop.f32.mrb[19].mxu0  ;;  %v505_v30 = vadd.f32 %v1685_v38, %v504_v20  ;;  %v652_v33 = vmul.f32 1.442695, %v587_v23 }
 0x11b   :  { %v1154_v26 = vpop.f32.mrb[19].mxu1  ;;  %v1275_v27 = vpop.eup %1274  ;;  %v755_v28 = vadd.f32 1.0, %v1273_v21  ;;  %1294 = vrcp.f32 %v754_v22  ;;  %v712_v41 = vmul.f32 1.442695, %v617_v29 }
 0x11c   :  { %v1277_v31 = vpop.eup %1276  ;;  %v784_v32 = vadd.f32 1.0, %v1275_v27  ;;  %v588_v34 = vsub.f32 0.0, %v385_v24  ;;  %v618_v37 = vsub.f32 0.0, %v505_v30 }
 0x11d   :  { %v1279_v35 = vpop.eup %1278  ;;  %1296 = vrcp.f32 %v755_v28  ;;  %v785_v36 = vadd.f32 1.0, %v1277_v31  ;;  %v389_v43 = vpop.f32.mrb[20].mxu0 }
 0x11e   :  { %v1281_v39 = vpop.eup %1280  ;;  %924 = vst.msk [vmem:[%s1972_s3 + $0x10] sm:$0xff] %vm921_vm1, %v1279_v35  ;;  %1298 = vrcp.f32 %v784_v32  ;;  %v654_v40 = vmul.f32 1.442695, %v588_v34  ;;  %v714_v44 = vmul.f32 1.442695, %v618_v37  ;;  %v509_v45 = vpop.f32.mrb[20].mxu1  ;;  %v390_v47 = vadd.f32 %v1685_v38, %v389_v43 }
 0x11f   :  { %v1283_v42 = vpop.eup %1282  ;;  %954 = vst.msk [vmem:[%s1972_s3 + $0x100] sm:$0xff] %vm921_vm1, %v1281_v39  ;;  %1300 = vrcp.f32 %v785_v36  ;;  %v1097_v48 = vpop.f32.mrb[21].mxu0  ;;  %v510_v49 = vadd.f32 %v1685_v38, %v509_v45 }
 0x120   :  { %v1285_v46 = vpop.eup %1284  ;;  %925 = vst.msk [vmem:[%s1972_s3 + $0x18] sm:$0xff] %vm921_vm1, %v1283_v42  ;;  %1302 = vpow2.f32 %v652_v33  ;;  %v1157_v50 = vpop.f32.mrb[21].mxu1  ;;  %v589_v56 = vsub.f32 0.0, %v390_v47 }
 0x121   :  { %v1287_v51 = vpop.eup %1286  ;;  %955 = vst.msk [vmem:[%s1972_s3 + $0x108] sm:$0xff] %vm921_vm1, %v1285_v46  ;;  %1304 = vpow2.f32 %v654_v40  ;;  %v392_v52 = vpop.f32.mrb[22].mxu0  ;;  %v619_v62 = vsub.f32 0.0, %v510_v49 }
 0x122   :  { %v512_v53 = vpop.f32.mrb[22].mxu1  ;;  %v1289_v54 = vpop.eup %1288  ;;  %v756_v55 = vadd.f32 1.0, %v1287_v51  ;;  %1306 = vpow2.f32 %v712_v41  ;;  %v393_v57 = vadd.f32 %v1685_v38, %v392_v52  ;;  %v656_v2 = vmul.f32 1.442695, %v589_v56 }
 0x123   :  { %v1098_v58 = vpop.f32.mrb[23].mxu0  ;;  %v1158_v59 = vpop.f32.mrb[23].mxu1  ;;  %v757_v61 = vadd.f32 1.0, %v1289_v54  ;;  %1308 = vpow2.f32 %v714_v44  ;;  %v513_v63 = vadd.f32 %v1685_v38, %v512_v53  ;;  %v716_v8 = vmul.f32 1.442695, %v619_v62 }
 0x124   :  { %v1291_v60 = vpop.eup %1290  ;;  %1310 = vrcp.f32 %v756_v55  ;;  %v590_v3 = vsub.f32 0.0, %v393_v57 }
 0x125   :  { %v1293_v0 = vpop.eup %1292  ;;  %v786_v1 = vadd.f32 1.0, %v1291_v60  ;;  %1312 = vrcp.f32 %v757_v61  ;;  %v620_v5 = vsub.f32 0.0, %v513_v63  ;;  %v397_v10 = vpop.f32.mrb[24].mxu0 }
 0x126   :  { %v787_v4 = vadd.f32 1.0, %v1293_v0  ;;  %v1295_v6 = vpop.eup %1294  ;;  %v658_v7 = vmul.f32 1.442695, %v590_v3  ;;  %v517_v12 = vpop.f32.mrb[24].mxu1  ;;  %v398_v14 = vadd.f32 %v1685_v38, %v397_v10 }
 0x127   :  { %1314 = vrcp.f32 %v786_v1  ;;  %v1297_v9 = vpop.eup %1296  ;;  %926 = vst.msk [vmem:[%s1972_s3 + $0x20] sm:$0xff] %vm921_vm1, %v1295_v6  ;;  %v718_v11 = vmul.f32 1.442695, %v620_v5  ;;  %v1101_v15 = vpop.f32.mrb[25].mxu0  ;;  %v518_v16 = vadd.f32 %v1685_v38, %v517_v12 }
 0x128   :  { %1316 = vrcp.f32 %v787_v4  ;;  %v1299_v13 = vpop.eup %1298  ;;  %927 = vst.msk [vmem:[%s1972_s3 + $0x28] sm:$0xff] %vm921_vm1, %v1297_v9  ;;  %v1161_v17 = vpop.f32.mrb[25].mxu1  ;;  %v591_v22 = vsub.f32 0.0, %v398_v14 }
 0x129   :  { %1318 = vpow2.f32 %v656_v2  ;;  %v1301_v18 = vpop.eup %1300  ;;  %956 = vst.msk [vmem:[%s1972_s3 + $0x110] sm:$0xff] %vm921_vm1, %v1299_v13  ;;  %v400_v19 = vpop.f32.mrb[26].mxu0  ;;  %v621_v28 = vsub.f32 0.0, %v518_v16 }
 0x12a   :  { %1320 = vpow2.f32 %v658_v7  ;;  %v520_v20 = vpop.f32.mrb[26].mxu1  ;;  %v1303_v21 = vpop.eup %1302  ;;  %957 = vst.msk [vmem:[%s1972_s3 + $0x118] sm:$0xff] %vm921_vm1, %v1301_v18  ;;  %v401_v23 = vadd.f32 %v1685_v38, %v400_v19  ;;  %v660_v35 = vmul.f32 1.442695, %v591_v22 }
 0x12b   :  { %1322 = vpow2.f32 %v716_v8  ;;  %v1102_v24 = vpop.f32.mrb[27].mxu0  ;;  %v1162_v25 = vpop.f32.mrb[27].mxu1  ;;  %v758_v27 = vadd.f32 1.0, %v1303_v21  ;;  %v521_v29 = vadd.f32 %v1685_v38, %v520_v20  ;;  %v720_v42 = vmul.f32 1.442695, %v621_v28 }
 0x12c   :  { %v1305_v26 = vpop.eup %1304  ;;  %1324 = vpow2.f32 %v718_v11  ;;  %v592_v32 = vsub.f32 0.0, %v401_v23 }
 0x12d   :  { %v1307_v30 = vpop.eup %1306  ;;  %v759_v31 = vadd.f32 1.0, %v1305_v26  ;;  %1326 = vrcp.f32 %v758_v27  ;;  %v622_v36 = vsub.f32 0.0, %v521_v29  ;;  %v405_v43 = vpop.f32.mrb[28].mxu0 }
 0x12e   :  { %v1309_v33 = vpop.eup %1308  ;;  %v788_v34 = vadd.f32 1.0, %v1307_v30  ;;  %v662_v40 = vmul.f32 1.442695, %v592_v32  ;;  %v525_v44 = vpop.f32.mrb[28].mxu1  ;;  %v406_v46 = vadd.f32 %v1685_v38, %v405_v43 }
 0x12f   :  { %v1311_v37 = vpop.eup %1310  ;;  %1328 = vrcp.f32 %v759_v31  ;;  %v789_v39 = vadd.f32 1.0, %v1309_v33  ;;  %v1105_v47 = vpop.f32.mrb[29].mxu0  ;;  %v722_v48 = vmul.f32 1.442695, %v622_v36  ;;  %v526_v49 = vadd.f32 %v1685_v38, %v525_v44 }
 0x130   :  { %v1313_v41 = vpop.eup %1312  ;;  %928 = vst.msk [vmem:[%s1972_s3 + $0x30] sm:$0xff] %vm921_vm1, %v1311_v37  ;;  %1330 = vrcp.f32 %v788_v34  ;;  %v1165_v50 = vpop.f32.mrb[29].mxu1  ;;  %v593_v55 = vsub.f32 0.0, %v406_v46 }
 0x131   :  { %v1315_v45 = vpop.eup %1314  ;;  %929 = vst.msk [vmem:[%s1972_s3 + $0x38] sm:$0xff] %vm921_vm1, %v1313_v41  ;;  %1332 = vrcp.f32 %v789_v39  ;;  %v408_v52 = vpop.f32.mrb[30].mxu0  ;;  %v623_v61 = vsub.f32 0.0, %v526_v49 }
 0x132   :  { %v1317_v51 = vpop.eup %1316  ;;  %958 = vst.msk [vmem:[%s1972_s3 + $0x120] sm:$0xff] %vm921_vm1, %v1315_v45  ;;  %1334 = vpow2.f32 %v660_v35  ;;  %v528_v53 = vpop.f32.mrb[30].mxu1  ;;  %v409_v56 = vadd.f32 %v1685_v38, %v408_v52  ;;  %v664_v4 = vmul.f32 1.442695, %v593_v55 }
 0x133   :  { %v1319_v54 = vpop.eup %1318  ;;  %959 = vst.msk [vmem:[%s1972_s3 + $0x128] sm:$0xff] %vm921_vm1, %v1317_v51  ;;  %1336 = vpow2.f32 %v662_v40  ;;  %v1106_v57 = vpop.f32.mrb[31].mxu0  ;;  %v529_v62 = vadd.f32 %v1685_v38, %v528_v53  ;;  %v724_v9 = vmul.f32 1.442695, %v623_v61 }
 0x134   :  { %v1166_v58 = vpop.f32.mrb[31].mxu1  ;;  %v1321_v59 = vpop.eup %1320  ;;  %v760_v60 = vadd.f32 1.0, %v1319_v54  ;;  %1338 = vpow2.f32 %v720_v42  ;;  %v594_v1 = vsub.f32 0.0, %v409_v56 }
 0x135   :  { %v1323_v63 = vpop.eup %1322  ;;  %v761_v0 = vadd.f32 1.0, %v1321_v59  ;;  %1340 = vpow2.f32 %v722_v48  ;;  %v624_v5 = vsub.f32 0.0, %v529_v62  ;;  %v413_v10 = vpop.f32.mrb[32].mxu0 }
 0x136   :  { %v1325_v2 = vpop.eup %1324  ;;  %1342 = vrcp.f32 %v760_v60  ;;  %v790_v3 = vadd.f32 1.0, %v1323_v63  ;;  %v666_v7 = vmul.f32 1.442695, %v594_v1  ;;  %v533_v11 = vpop.f32.mrb[32].mxu1  ;;  %v414_v13 = vadd.f32 %v1685_v38, %v413_v10 }
 0x137   :  { %1344 = vrcp.f32 %v761_v0  ;;  %v791_v6 = vadd.f32 1.0, %v1325_v2  ;;  %v1327_v8 = vpop.eup %1326  ;;  %v1109_v14 = vpop.f32.mrb[33].mxu0  ;;  %v726_v15 = vmul.f32 1.442695, %v624_v5  ;;  %v534_v16 = vadd.f32 %v1685_v38, %v533_v11 }
 0x138   :  { %1346 = vrcp.f32 %v790_v3  ;;  %930 = vst.msk [vmem:[%s1972_s3 + $0x40] sm:$0xff] %vm921_vm1, %v1327_v8  ;;  %v1169_v17 = vpop.f32.mrb[33].mxu1  ;;  %v416_v19 = vpop.f32.mrb[34].mxu0  ;;  %v595_v22 = vsub.f32 0.0, %v414_v13 }
 0x139   :  { %v1329_v12 = vpop.eup %1328  ;;  %1348 = vrcp.f32 %v791_v6  ;;  %v536_v20 = vpop.f32.mrb[34].mxu1  ;;  %v417_v23 = vadd.f32 %v1685_v38, %v416_v19  ;;  %v625_v31 = vsub.f32 0.0, %v534_v16 }
 0x13a   :  { %v1331_v18 = vpop.eup %1330  ;;  %931 = vst.msk [vmem:[%s1972_s3 + $0x48] sm:$0xff] %vm921_vm1, %v1329_v12  ;;  %1350 = vpow2.f32 %v664_v4  ;;  %v1110_v24 = vpop.f32.mrb[35].mxu0  ;;  %v537_v27 = vadd.f32 %v1685_v38, %v536_v20  ;;  %v668_v37 = vmul.f32 1.442695, %v595_v22 }
 0x13b   :  { %v1333_v21 = vpop.eup %1332  ;;  %960 = vst.msk [vmem:[%s1972_s3 + $0x130] sm:$0xff] %vm921_vm1, %v1331_v18  ;;  %1352 = vpow2.f32 %v666_v7  ;;  %v1170_v25 = vpop.f32.mrb[35].mxu1  ;;  %v596_v30 = vsub.f32 0.0, %v417_v23  ;;  %v728_v45 = vmul.f32 1.442695, %v625_v31 }
 0x13c   :  { %v1335_v26 = vpop.eup %1334  ;;  %961 = vst.msk [vmem:[%s1972_s3 + $0x138] sm:$0xff] %vm921_vm1, %v1333_v21  ;;  %1354 = vpow2.f32 %v724_v9  ;;  %v626_v34 = vsub.f32 0.0, %v537_v27 }
 0x13d   :  { %v1337_v28 = vpop.eup %1336  ;;  %v762_v29 = vadd.f32 1.0, %v1335_v26  ;;  %1356 = vpow2.f32 %v726_v15  ;;  %v670_v41 = vmul.f32 1.442695, %v596_v30  ;;  %v421_v42 = vpop.f32.mrb[36].mxu0 }
 0x13e   :  { %v1339_v32 = vpop.eup %1338  ;;  %v763_v33 = vadd.f32 1.0, %v1337_v28  ;;  %v541_v43 = vpop.f32.mrb[36].mxu1  ;;  %v422_v46 = vadd.f32 %v1685_v38, %v421_v42  ;;  %v730_v51 = vmul.f32 1.442695, %v626_v34 }
 0x13f   :  { %v1341_v35 = vpop.eup %1340  ;;  %1358 = vrcp.f32 %v762_v29  ;;  %v792_v36 = vadd.f32 1.0, %v1339_v32  ;;  %v1113_v47 = vpop.f32.mrb[37].mxu0  ;;  %v542_v48 = vadd.f32 %v1685_v38, %v541_v43 }
 0x140   :  { %v1343_v39 = vpop.eup %1342  ;;  %1360 = vrcp.f32 %v763_v33  ;;  %v793_v40 = vadd.f32 1.0, %v1341_v35  ;;  %v1173_v49 = vpop.f32.mrb[37].mxu1  ;;  %v597_v55 = vsub.f32 0.0, %v422_v46 }
 0x141   :  { %v1345_v44 = vpop.eup %1344  ;;  %932 = vst.msk [vmem:[%s1972_s3 + $0x50] sm:$0xff] %vm921_vm1, %v1343_v39  ;;  %1362 = vrcp.f32 %v792_v36  ;;  %v424_v52 = vpop.f32.mrb[38].mxu0  ;;  %v627_v0 = vsub.f32 0.0, %v542_v48 }
 0x142   :  { %v1347_v50 = vpop.eup %1346  ;;  %933 = vst.msk [vmem:[%s1972_s3 + $0x58] sm:$0xff] %vm921_vm1, %v1345_v44  ;;  %1364 = vrcp.f32 %v793_v40  ;;  %v544_v53 = vpop.f32.mrb[38].mxu1  ;;  %v425_v56 = vadd.f32 %v1685_v38, %v424_v52  ;;  %v672_v6 = vmul.f32 1.442695, %v597_v55 }
 0x143   :  { %v1349_v54 = vpop.eup %1348  ;;  %962 = vst.msk [vmem:[%s1972_s3 + $0x140] sm:$0xff] %vm921_vm1, %v1347_v50  ;;  %1366 = vpow2.f32 %v668_v37  ;;  %v1114_v57 = vpop.f32.mrb[39].mxu0  ;;  %v545_v60 = vadd.f32 %v1685_v38, %v544_v53  ;;  %v732_v12 = vmul.f32 1.442695, %v627_v0 }
 0x144   :  { %v1174_v58 = vpop.f32.mrb[39].mxu1  ;;  %v1351_v59 = vpop.eup %1350  ;;  %963 = vst.msk [vmem:[%s1972_s3 + $0x148] sm:$0xff] %vm921_vm1, %v1349_v54  ;;  %1368 = vpow2.f32 %v670_v41  ;;  %v598_v63 = vsub.f32 0.0, %v425_v56 }
 0x145   :  { %v1353_v61 = vpop.eup %1352  ;;  %v764_v62 = vadd.f32 1.0, %v1351_v59  ;;  %1370 = vpow2.f32 %v728_v45  ;;  %v628_v3 = vsub.f32 0.0, %v545_v60  ;;  %v429_v9 = vpop.f32.mrb[40].mxu0 }
 0x146   :  { %v1355_v1 = vpop.eup %1354  ;;  %v765_v2 = vadd.f32 1.0, %v1353_v61  ;;  %1372 = vpow2.f32 %v730_v51  ;;  %v674_v8 = vmul.f32 1.442695, %v598_v63  ;;  %v549_v10 = vpop.f32.mrb[40].mxu1  ;;  %v430_v13 = vadd.f32 %v1685_v38, %v429_v9 }
 0x147   :  { %v1357_v4 = vpop.eup %1356  ;;  %1374 = vrcp.f32 %v764_v62  ;;  %v794_v5 = vadd.f32 1.0, %v1355_v1  ;;  %v1117_v14 = vpop.f32.mrb[41].mxu0  ;;  %v550_v15 = vadd.f32 %v1685_v38, %v549_v10  ;;  %v734_v18 = vmul.f32 1.442695, %v628_v3 }
 0x148   :  { %1376 = vrcp.f32 %v765_v2  ;;  %v795_v7 = vadd.f32 1.0, %v1357_v4  ;;  %v1177_v16 = vpop.f32.mrb[41].mxu1  ;;  %v432_v19 = vpop.f32.mrb[42].mxu0  ;;  %v599_v22 = vsub.f32 0.0, %v430_v13 }
 0x149   :  { %v1359_v11 = vpop.eup %1358  ;;  %1378 = vrcp.f32 %v794_v5  ;;  %v552_v20 = vpop.f32.mrb[42].mxu1  ;;  %v433_v23 = vadd.f32 %v1685_v38, %v432_v19  ;;  %v629_v31 = vsub.f32 0.0, %v550_v15 }
 0x14a   :  { %v1361_v17 = vpop.eup %1360  ;;  %934 = vst.msk [vmem:[%s1972_s3 + $0x60] sm:$0xff] %vm921_vm1, %v1359_v11  ;;  %1380 = vrcp.f32 %v795_v7  ;;  %v1118_v24 = vpop.f32.mrb[43].mxu0  ;;  %v553_v27 = vadd.f32 %v1685_v38, %v552_v20  ;;  %v676_v29 = vmul.f32 1.442695, %v599_v22 }
 0x14b   :  { %v1363_v21 = vpop.eup %1362  ;;  %935 = vst.msk [vmem:[%s1972_s3 + $0x68] sm:$0xff] %vm921_vm1, %v1361_v17  ;;  %1382 = vpow2.f32 %v672_v6  ;;  %v1178_v25 = vpop.f32.mrb[43].mxu1  ;;  %v600_v30 = vsub.f32 0.0, %v433_v23  ;;  %v736_v45 = vmul.f32 1.442695, %v629_v31 }
 0x14c   :  { %v1365_v26 = vpop.eup %1364  ;;  %964 = vst.msk [vmem:[%s1972_s3 + $0x150] sm:$0xff] %vm921_vm1, %v1363_v21  ;;  %1384 = vpow2.f32 %v674_v8  ;;  %v630_v34 = vsub.f32 0.0, %v553_v27 }
 0x14d   :  { %v1367_v28 = vpop.eup %1366  ;;  %965 = vst.msk [vmem:[%s1972_s3 + $0x158] sm:$0xff] %vm921_vm1, %v1365_v26  ;;  %1386 = vpow2.f32 %v732_v12  ;;  %v678_v40 = vmul.f32 1.442695, %v600_v30  ;;  %v437_v41 = vpop.f32.mrb[44].mxu0 }
 0x14e   :  { %v1369_v32 = vpop.eup %1368  ;;  %v766_v33 = vadd.f32 1.0, %v1367_v28  ;;  %1388 = vpow2.f32 %v734_v18  ;;  %v557_v42 = vpop.f32.mrb[44].mxu1  ;;  %v438_v46 = vadd.f32 %v1685_v38, %v437_v41  ;;  %v738_v50 = vmul.f32 1.442695, %v630_v34 }
 0x14f   :  { %v1371_v35 = vpop.eup %1370  ;;  %v767_v36 = vadd.f32 1.0, %v1369_v32  ;;  %1390 = vpow2.f32 %v676_v29  ;;  %v1121_v47 = vpop.f32.mrb[45].mxu0  ;;  %v558_v52 = vadd.f32 %v1685_v38, %v557_v42 }
 0x150   :  { %v1373_v37 = vpop.eup %1372  ;;  %1392 = vrcp.f32 %v766_v33  ;;  %v796_v39 = vadd.f32 1.0, %v1371_v35  ;;  %v1181_v48 = vpop.f32.mrb[45].mxu1  ;;  %v601_v55 = vsub.f32 0.0, %v438_v46 }
 0x151   :  { %v1375_v43 = vpop.eup %1374  ;;  %1394 = vrcp.f32 %v767_v36  ;;  %v797_v44 = vadd.f32 1.0, %v1373_v37  ;;  %v440_v51 = vpop.f32.mrb[46].mxu0  ;;  %v631_v2 = vsub.f32 0.0, %v558_v52 }
 0x152   :  { %v1377_v49 = vpop.eup %1376  ;;  %936 = vst.msk [vmem:[%s1972_s3 + $0x70] sm:$0xff] %vm921_vm1, %v1375_v43  ;;  %1396 = vrcp.f32 %v796_v39  ;;  %v560_v53 = vpop.f32.mrb[46].mxu1  ;;  %v441_v56 = vadd.f32 %v1685_v38, %v440_v51  ;;  %v680_v62 = vmul.f32 1.442695, %v601_v55 }
 0x153   :  { %v1379_v54 = vpop.eup %1378  ;;  %937 = vst.msk [vmem:[%s1972_s3 + $0x78] sm:$0xff] %vm921_vm1, %v1377_v49  ;;  %1398 = vrcp.f32 %v797_v44  ;;  %v1122_v57 = vpop.f32.mrb[47].mxu0  ;;  %v561_v60 = vadd.f32 %v1685_v38, %v560_v53  ;;  %v740_v18 = vmul.f32 1.442695, %v631_v2 }
 0x154   :  { %v1182_v58 = vpop.f32.mrb[47].mxu1  ;;  %v1381_v59 = vpop.eup %1380  ;;  %966 = vst.msk [vmem:[%s1972_s3 + $0x160] sm:$0xff] %vm921_vm1, %v1379_v54  ;;  %1400 = vpow2.f32 %v678_v40  ;;  %v602_v63 = vsub.f32 0.0, %v441_v56 }
 0x155   :  { %v1383_v61 = vpop.eup %1382  ;;  %967 = vst.msk [vmem:[%s1972_s3 + $0x168] sm:$0xff] %vm921_vm1, %v1381_v59  ;;  %1402 = vpow2.f32 %v736_v45  ;;  %v445_v7 = vpop.f32.mrb[48].mxu0  ;;  %v632_v8 = vsub.f32 0.0, %v561_v60  ;;  %v1474_v45 = vld [vmem:[%s1971_s2] ss:$0 sm:$0xff] }
 0x156   :  { %v1385_v0 = vpop.eup %1384  ;;  %v768_v1 = vadd.f32 1.0, %v1383_v61  ;;  %1404 = vpow2.f32 %v738_v50  ;;  %v565_v9 = vpop.f32.mrb[48].mxu1  ;;  %v682_v12 = vmul.f32 1.442695, %v602_v63  ;;  %v446_v13 = vadd.f32 %v1685_v38, %v445_v7 }
 0x157   :  { %v1387_v3 = vpop.eup %1386  ;;  %v769_v4 = vadd.f32 1.0, %v1385_v0  ;;  %1406 = vpow2.f32 %v680_v62  ;;  %v1125_v14 = vpop.f32.mrb[49].mxu0  ;;  %v566_v20 = vadd.f32 %v1685_v38, %v565_v9  ;;  %v742_v28 = vmul.f32 1.442695, %v632_v8 }
 0x158   :  { %v1389_v5 = vpop.eup %1388  ;;  %1408 = vrcp.f32 %v768_v1  ;;  %v798_v6 = vadd.f32 1.0, %v1387_v3  ;;  %v1185_v15 = vpop.f32.mrb[49].mxu1  ;;  %v603_v23 = vsub.f32 0.0, %v446_v13 }
 0x159   :  { %v1391_v10 = vpop.eup %1390  ;;  %1410 = vrcp.f32 %v769_v4  ;;  %v799_v11 = vadd.f32 1.0, %v1389_v5  ;;  %v448_v19 = vpop.f32.mrb[50].mxu0  ;;  %v633_v34 = vsub.f32 0.0, %v566_v20 }
 0x15a   :  { %v1393_v16 = vpop.eup %1392  ;;  %1412 = vrcp.f32 %v798_v6  ;;  %v770_v17 = vadd.f32 1.0, %v1391_v10  ;;  %v568_v21 = vpop.f32.mrb[50].mxu1  ;;  %v449_v24 = vadd.f32 %v1685_v38, %v448_v19  ;;  %v684_v31 = vmul.f32 1.442695, %v603_v23 }
 0x15b   :  { %v1395_v22 = vpop.eup %1394  ;;  %938 = vst.msk [vmem:[%s1972_s3 + $0x80] sm:$0xff] %vm921_vm1, %v1393_v16  ;;  %1414 = vrcp.f32 %v799_v11  ;;  %v1126_v25 = vpop.f32.mrb[51].mxu0  ;;  %v569_v29 = vadd.f32 %v1685_v38, %v568_v21  ;;  %v744_v51 = vmul.f32 1.442695, %v633_v34 }
 0x15c   :  { %v1186_v26 = vpop.f32.mrb[51].mxu1  ;;  %v1397_v27 = vpop.eup %1396  ;;  %939 = vst.msk [vmem:[%s1972_s3 + $0x88] sm:$0xff] %vm921_vm1, %v1395_v22  ;;  %1416 = vrcp.f32 %v770_v17  ;;  %v604_v32 = vsub.f32 0.0, %v449_v24 }
 0x15d   :  { %v1399_v30 = vpop.eup %1398  ;;  %968 = vst.msk [vmem:[%s1972_s3 + $0x170] sm:$0xff] %vm921_vm1, %v1397_v27  ;;  %1418 = vpow2.f32 %v682_v12  ;;  %v453_v39 = vpop.f32.mrb[52].mxu0  ;;  %v634_v40 = vsub.f32 0.0, %v569_v29 }
 0x15e   :  { %v1401_v33 = vpop.eup %1400  ;;  %969 = vst.msk [vmem:[%s1972_s3 + $0x178] sm:$0xff] %vm921_vm1, %v1399_v30  ;;  %1420 = vpow2.f32 %v740_v18  ;;  %v573_v41 = vpop.f32.mrb[52].mxu1  ;;  %v686_v44 = vmul.f32 1.442695, %v604_v32  ;;  %v454_v46 = vadd.f32 %v1474_v45, %v453_v39 }
 0x15f   :  { %v1403_v35 = vpop.eup %1402  ;;  %v771_v36 = vadd.f32 1.0, %v1401_v33  ;;  %1422 = vpow2.f32 %v684_v31  ;;  %v1129_v47 = vpop.f32.mrb[53].mxu0  ;;  %v574_v53 = vadd.f32 %v1474_v45, %v573_v41  ;;  %v746_v61 = vmul.f32 1.442695, %v634_v40 }
 0x160   :  { %v1405_v38 = vpop.eup %1404  ;;  %v800_v37 = vadd.f32 1.0, %v1403_v35  ;;  %1424 = vpow2.f32 %v742_v28  ;;  %v1189_v48 = vpop.f32.mrb[53].mxu1  ;;  %v605_v56 = vsub.f32 0.0, %v454_v46 }
 0x161   :  { %v1407_v42 = vpop.eup %1406  ;;  %1426 = vrcp.f32 %v771_v36  ;;  %v801_v43 = vadd.f32 1.0, %v1405_v38  ;;  %v456_v52 = vpop.f32.mrb[54].mxu0  ;;  %v635_v2 = vsub.f32 0.0, %v574_v53 }
 0x162   :  { %v1409_v49 = vpop.eup %1408  ;;  %1428 = vrcp.f32 %v800_v37  ;;  %v772_v50 = vadd.f32 1.0, %v1407_v42  ;;  %v576_v54 = vpop.f32.mrb[54].mxu1  ;;  %v457_v57 = vadd.f32 %v1474_v45, %v456_v52  ;;  %v688_v63 = vmul.f32 1.442695, %v605_v56 }
 0x163   :  { %v1411_v55 = vpop.eup %1410  ;;  %940 = vst.msk [vmem:[%s1972_s3 + $0x90] sm:$0xff] %vm921_vm1, %v1409_v49  ;;  %1430 = vrcp.f32 %v801_v43  ;;  %v1130_v58 = vpop.f32.mrb[55].mxu0  ;;  %v748_v14 = vmul.f32 1.442695, %v635_v2 }
 0x164   :  { %v1190_v59 = vpop.f32.mrb[55].mxu1  ;;  %v1413_v60 = vpop.eup %1412  ;;  %941 = vst.msk [vmem:[%s1972_s3 + $0x98] sm:$0xff] %vm921_vm1, %v1411_v55  ;;  %1432 = vrcp.f32 %v772_v50  ;;  %v606_v0 = vsub.f32 0.0, %v457_v57 }
 0x165   :  { %v1415_v62 = vpop.eup %1414  ;;  %970 = vst.msk [vmem:[%s1972_s3 + $0x180] sm:$0xff] %vm921_vm1, %v1413_v60  ;;  %1434 = vpow2.f32 %v686_v44  ;;  %v461_v7 = vpop.f32.mrb[56].mxu0 }
 0x166   :  { %v1417_v1 = vpop.eup %1416  ;;  %971 = vst.msk [vmem:[%s1972_s3 + $0x188] sm:$0xff] %vm921_vm1, %v1415_v62  ;;  %1436 = vpow2.f32 %v744_v51  ;;  %v690_v4 = vmul.f32 1.442695, %v606_v0  ;;  %v462_v10 = vadd.f32 %v1474_v45, %v461_v7  ;;  %v1133_v11 = vpop.f32.mrb[57].mxu0 }
 0x167   :  { %v1419_v3 = vpop.eup %1418  ;;  %942 = vst.msk [vmem:[%s1972_s3 + $0xa0] sm:$0xff] %vm921_vm1, %v1417_v1  ;;  %1438 = vpow2.f32 %v688_v63  ;;  %v464_v15 = vpop.f32.mrb[58].mxu0 }
 0x168   :  { %v1421_v5 = vpop.eup %1420  ;;  %v773_v6 = vadd.f32 1.0, %v1419_v3  ;;  %1440 = vpow2.f32 %v746_v61  ;;  %v607_v18 = vsub.f32 0.0, %v462_v10  ;;  %v465_v19 = vadd.f32 %v1474_v45, %v464_v15  ;;  %v1134_v20 = vpop.f32.mrb[59].mxu0 }
 0x169   :  { %v1423_v8 = vpop.eup %1422  ;;  %v802_v9 = vadd.f32 1.0, %v1421_v5  ;;  %1442 = vpow2.f32 %v690_v4 }
 0x16a   :  { %v1425_v12 = vpop.eup %1424  ;;  %1444 = vrcp.f32 %v773_v6  ;;  %v774_v13 = vadd.f32 1.0, %v1423_v8  ;;  %v692_v23 = vmul.f32 1.442695, %v607_v18  ;;  %v608_v24 = vsub.f32 0.0, %v465_v19 }
 0x16b   :  { %v1427_v16 = vpop.eup %1426  ;;  %1446 = vrcp.f32 %v802_v9  ;;  %v803_v17 = vadd.f32 1.0, %v1425_v12 }
 0x16c   :  { %v1429_v21 = vpop.eup %1428  ;;  %943 = vst.msk [vmem:[%s1972_s3 + $0xa8] sm:$0xff] %vm921_vm1, %v1427_v16  ;;  %1448 = vrcp.f32 %v774_v13  ;;  %v694_v27 = vmul.f32 1.442695, %v608_v24 }
 0x16d   :  { %v1431_v22 = vpop.eup %1430  ;;  %972 = vst.msk [vmem:[%s1972_s3 + $0x190] sm:$0xff] %vm921_vm1, %v1429_v21  ;;  %1450 = vrcp.f32 %v803_v17 }
 0x16e   :  { %v1433_v25 = vpop.eup %1432  ;;  %973 = vst.msk [vmem:[%s1972_s3 + $0x198] sm:$0xff] %vm921_vm1, %v1431_v22  ;;  %1452 = vpow2.f32 %v748_v14 }
 0x16f   :  { %v1435_v26 = vpop.eup %1434  ;;  %944 = vst.msk [vmem:[%s1972_s3 + $0xb0] sm:$0xff] %vm921_vm1, %v1433_v25  ;;  %1454 = vpow2.f32 %v692_v23 }
 0x170   :  { %v1437_v28 = vpop.eup %1436  ;;  %v775_v29 = vadd.f32 1.0, %v1435_v26  ;;  %1456 = vpow2.f32 %v694_v27 }
 0x171   :  { %v1439_v30 = vpop.eup %1438  ;;  %v804_v31 = vadd.f32 1.0, %v1437_v28 }
 0x172   :  { %v1441_v32 = vpop.eup %1440  ;;  %1458 = vrcp.f32 %v775_v29  ;;  %v776_v33 = vadd.f32 1.0, %v1439_v30 }
 0x173   :  { %v1443_v34 = vpop.eup %1442  ;;  %1460 = vrcp.f32 %v804_v31  ;;  %v805_v35 = vadd.f32 1.0, %v1441_v32 }
 0x174   :  { %v1445_v36 = vpop.eup %1444  ;;  %1462 = vrcp.f32 %v776_v33  ;;  %v777_v38 = vadd.f32 1.0, %v1443_v34 }
 0x175   :  { %v1447_v37 = vpop.eup %1446  ;;  %945 = vst.msk [vmem:[%s1972_s3 + $0xb8] sm:$0xff] %vm921_vm1, %v1445_v36  ;;  %1464 = vrcp.f32 %v805_v35 }
 0x176   :  { %v1449_v39 = vpop.eup %1448  ;;  %974 = vst.msk [vmem:[%s1972_s3 + $0x1a0] sm:$0xff] %vm921_vm1, %v1447_v37  ;;  %1466 = vrcp.f32 %v777_v38 }
 0x177   :  { %v1451_v40 = vpop.eup %1450  ;;  %946 = vst.msk [vmem:[%s1972_s3 + $0xc0] sm:$0xff] %vm921_vm1, %v1449_v39 }
 0x178   :  { %v1453_v41 = vpop.eup %1452  ;;  %975 = vst.msk [vmem:[%s1972_s3 + $0x1a8] sm:$0xff] %vm921_vm1, %v1451_v40 }
 0x179   :  { %v1455_v42 = vpop.eup %1454  ;;  %v806_v43 = vadd.f32 1.0, %v1453_v41 }
 0x17a   :  { %v778_v44 = vadd.f32 1.0, %v1455_v42  ;;  %v1457_v45 = vpop.eup %1456 }
 0x17b   :  { %1468 = vrcp.f32 %v806_v43  ;;  %v779_v47 = vadd.f32 1.0, %v1457_v45 }
 0x17c   :  { %v1459_v46 = vpop.eup %1458  ;;  %1470 = vrcp.f32 %v778_v44 }
 0x17d   :  { %v1461_v48 = vpop.eup %1460  ;;  %947 = vst.msk [vmem:[%s1972_s3 + $0xc8] sm:$0xff] %vm921_vm1, %v1459_v46  ;;  %1472 = vrcp.f32 %v779_v47 }
 0x17e   :  { %v1463_v49 = vpop.eup %1462  ;;  %976 = vst.msk [vmem:[%s1972_s3 + $0x1b0] sm:$0xff] %vm921_vm1, %v1461_v48 }
 0x17f   :  { %v1465_v50 = vpop.eup %1464  ;;  %948 = vst.msk [vmem:[%s1972_s3 + $0xd0] sm:$0xff] %vm921_vm1, %v1463_v49 }
 0x180   :  { %v1467_v51 = vpop.eup %1466  ;;  %977 = vst.msk [vmem:[%s1972_s3 + $0x1b8] sm:$0xff] %vm921_vm1, %v1465_v50 }
 0x181   :  { %949 = vst.msk [vmem:[%s1972_s3 + $0xd8] sm:$0xff] %vm921_vm1, %v1467_v51 }
 0x185   :  { %v1469_v52 = vpop.eup %1468 }
 0x186   :  { %v1471_v53 = vpop.eup %1470  ;;  %979 = vst.msk [vmem:[%s1972_s3 + $0x1c0] sm:$0x3] %vm978_vm2, %v1469_v52 }
 0x187   :  { %950 = vst.msk [vmem:[%s1972_s3 + $0xe0] sm:$0xff] %vm921_vm1, %v1471_v53  ;;  %v1473_v54 = vpop.eup %1472 }
 0x188   :  { %951 = vst.msk [vmem:[%s1972_s3 + $0xe8] sm:$0xff] %vm921_vm1, %v1473_v54 }

</bundles_post_ra>
